<compile_context>
chip_gen: v6e
topology: v6e:2x2x1
jax: 0.10.0
libtpu: 0.0.40
codegen_flags: <defaults>
</compile_context>

<pallas_src>
import functools

import numpy as np
import jax
import jax.numpy as jnp
from jax.experimental import pallas as pl
from jax.experimental.pallas import tpu as pltpu

BN_EPS = 1e-5
LANE = 128


def _round_up(n, m):
    return ((n + m - 1) // m) * m


# ------------------------------------------------------------------ host-side prep
def _build_tconv_layer(w_t, bias, *, stride, pad, out_pad, hin, win, k_pad, batch):
    """Precompute matmul operands for one ConvTranspose2d layer.

    PyTorch semantics: out[b, co, oh, ow] += x[b, ci, ih, iw] * W[ci, co, kh, kw]
    for oh = ih*stride - pad + kh, ow = iw*stride - pad + kw, cropped to the output.
    Activation layout in-kernel: rows = (b, h), lanes = (w*C + c), lane-padded.
    """
    w_t = np.asarray(w_t, np.float32)
    bias = np.asarray(bias, np.float32)
    cin, cout, k, _ = w_t.shape
    hout = (hin - 1) * stride - 2 * pad + k + out_pad
    wout = (win - 1) * stride - 2 * pad + k + out_pad
    n_real = wout * cout
    n_pad = _round_up(n_real, LANE)

    # W_kh : (k, K_pad, N_pad) — folds channel contraction + 1-D transposed conv on W.
    wk = np.zeros((k, k_pad, n_pad), np.float32)
    for kh in range(k):
        for iw in range(win):
            for ow in range(wout):
                kw = ow + pad - stride * iw
                if 0 <= kw < k:
                    wk[kh, iw * cin:(iw + 1) * cin, ow * cout:(ow + 1) * cout] = w_t[:, :, kh, kw]

    # A_kh : (k, B*Hout, B*Hin) — 0/1 row routing along H, block-diagonal over batch.
    a = np.zeros((k, batch * hout, batch * hin), np.float32)
    for kh in range(k):
        for ih in range(hin):
            oh = stride * ih - pad + kh
            if 0 <= oh < hout:
                for b in range(batch):
                    a[kh, b * hout + oh, b * hin + ih] = 1.0

    # bias tiled over w into the real lanes; BN pooling matrix T (lane -> channel).
    bias_flat = np.zeros((1, n_pad), np.float32)
    t = np.zeros((n_pad, cout), np.float32)
    for ow in range(wout):
        bias_flat[0, ow * cout:(ow + 1) * cout] = bias
        t[ow * cout:(ow + 1) * cout, :] = np.eye(cout, dtype=np.float32)

    return dict(wk=wk, a=a, bias=bias_flat, t=t, tt=np.ascontiguousarray(t.T),
                hout=hout, wout=wout, cout=cout, n_pad=n_pad,
                count=float(batch * hout * wout))


def prepare_decoder(params, channels, batch):
    """One-time transform of PyTorch-layout params into fused-kernel operands."""
    lin_w = np.asarray(params["lin_w"], np.float32).T            # (latent, 128)
    lin_b = np.asarray(params["lin_b"], np.float32).reshape(1, -1)

    l2 = _build_tconv_layer(params["ct1_w"], params["ct1_b"], stride=1, pad=0, out_pad=0,
                            hin=1, win=1, k_pad=128, batch=batch)
    l3 = _build_tconv_layer(params["ct2_w"], params["ct2_b"], stride=2, pad=1, out_pad=0,
                            hin=l2["hout"], win=l2["wout"], k_pad=l2["n_pad"], batch=batch)
    l4 = _build_tconv_layer(params["ct3_w"], params["ct3_b"], stride=2, pad=1, out_pad=1,
                            hin=l3["hout"], win=l3["wout"], k_pad=l3["n_pad"], batch=batch)
    l5 = _build_tconv_layer(params["ct4_w"], params["ct4_b"], stride=2, pad=1, out_pad=1,
                            hin=l4["hout"], win=l4["wout"], k_pad=l4["n_pad"], batch=batch)

    g2 = np.asarray(params["bn1_g"], np.float32).reshape(1, -1)
    b2 = np.asarray(params["bn1_b"], np.float32).reshape(1, -1)
    g3 = np.asarray(params["bn2_g"], np.float32).reshape(1, -1)
    b3 = np.asarray(params["bn2_b"], np.float32).reshape(1, -1)

    operands = [lin_w, lin_b,
                l2["wk"], l2["a"], l2["bias"], g2, b2, l2["t"], l2["tt"],
                l3["wk"], l3["a"], l3["bias"], g3, b3, l3["t"], l3["tt"],
                l4["wk"], l4["a"], l4["bias"],
                l5["wk"], l5["a"], l5["bias"]]
    operands = [jnp.asarray(o) for o in operands]
    meta = dict(count2=l2["count"], count3=l3["count"],
                out_rows=batch * l5["hout"], out_lanes=l5["n_pad"],
                hout=l5["hout"], wout=l5["wout"], channels=channels)
    return operands, meta


# ------------------------------------------------------------------ kernel helpers
def _tconv(x2d, w_ref, a_ref, bias_ref):
    """Transposed conv as sum_kh A_kh @ (X @ W_kh) + bias (all MXU matmuls)."""
    k = w_ref.shape[0]
    acc = None
    for i in range(k):
        y = jnp.dot(x2d, w_ref[i], preferred_element_type=jnp.float32)
        z = jnp.dot(a_ref[i], y, preferred_element_type=jnp.float32)
        acc = z if acc is None else acc + z
    return acc + bias_ref[...]


def _bn_relu(y, g_ref, b_ref, t_ref, tt_ref, count):
    """Training-mode BatchNorm2d (batch stats, biased var) + ReLU, single pass."""
    s = jnp.sum(y, axis=0, keepdims=True)                 # (1, N_pad)
    sq = jnp.sum(y * y, axis=0, keepdims=True)            # (1, N_pad)
    s_c = jnp.dot(s, t_ref[...], preferred_element_type=jnp.float32)    # (1, C)
    sq_c = jnp.dot(sq, t_ref[...], preferred_element_type=jnp.float32)  # (1, C)
    inv_n = 1.0 / count
    mean = s_c * inv_n
    var = jnp.maximum(sq_c * inv_n - mean * mean, 0.0)
    inv = jax.lax.rsqrt(var + BN_EPS)
    scale_c = g_ref[...] * inv
    shift_c = b_ref[...] - mean * scale_c
    scale = jnp.dot(scale_c, tt_ref[...], preferred_element_type=jnp.float32)  # (1, N_pad)
    shift = jnp.dot(shift_c, tt_ref[...], preferred_element_type=jnp.float32)
    return jnp.maximum(y * scale + shift, 0.0)


def _decoder_kernel(x_ref, lw_ref, lb_ref,
                    w2_ref, a2_ref, bb2_ref, g2_ref, be2_ref, t2_ref, t2t_ref,
                    w3_ref, a3_ref, bb3_ref, g3_ref, be3_ref, t3_ref, t3t_ref,
                    w4_ref, a4_ref, bb4_ref,
                    w5_ref, a5_ref, bb5_ref,
                    o_ref, *, count2, count3):
    # Linear(latent -> 128) + ReLU                          : (B, 128)
    h = jnp.dot(x_ref[...], lw_ref[...], preferred_element_type=jnp.float32) + lb_ref[...]
    h = jnp.maximum(h, 0.0)
    # ConvTranspose2d(128->64, k=4) + BN + ReLU             : rows B*4,  lanes 4*64
    z = _tconv(h, w2_ref, a2_ref, bb2_ref)
    z = _bn_relu(z, g2_ref, be2_ref, t2_ref, t2t_ref, count2)
    # ConvTranspose2d(64->32, k=3, s=2, p=1) + BN + ReLU    : rows B*7,  lanes 7*32 (pad 256)
    z = _tconv(z, w3_ref, a3_ref, bb3_ref)
    z = _bn_relu(z, g3_ref, be3_ref, t3_ref, t3t_ref, count3)
    # ConvTranspose2d(32->16, k=3, s=2, p=1, op=1) + ReLU   : rows B*14, lanes 14*16 (pad 256)
    z = jnp.maximum(_tconv(z, w4_ref, a4_ref, bb4_ref), 0.0)
    # ConvTranspose2d(16->C, k=3, s=2, p=1, op=1) + Sigmoid : rows B*28, lanes 28*C (pad 128)
    z = jax.nn.sigmoid(_tconv(z, w5_ref, a5_ref, bb5_ref))
    o_ref[...] = z.astype(o_ref.dtype)


def _full_spec(shape):
    zeros = (0,) * len(shape)
    return pl.BlockSpec(shape, lambda i: zeros)


# ------------------------------------------------------------------ forward
def decoder_forward(x, operands, meta):
    """x: (B, latent) -> (B, channels, 28, 28), matching the PyTorch module."""
    batch = x.shape[0]
    channels = meta["channels"]
    out_rows, out_lanes = meta["out_rows"], meta["out_lanes"]

    kernel = functools.partial(_decoder_kernel,
                               count2=meta["count2"], count3=meta["count3"])
    ins = [x.astype(jnp.float32)] + list(operands)

    out2d = pl.pallas_call(
        kernel,
        out_shape=jax.ShapeDtypeStruct((out_rows, out_lanes), jnp.float32),
        grid=(1,),
        in_specs=[_full_spec(a.shape) for a in ins],
        out_specs=pl.BlockSpec((out_rows, out_lanes), lambda i: (0, 0)),
        compiler_params=pltpu.CompilerParams(dimension_semantics=("arbitrary",)),
    )(*ins)

    hout, wout = meta["hout"], meta["wout"]
    y = out2d[:, : wout * channels].reshape(batch, hout, wout, channels)
    return jnp.transpose(y, (0, 3, 1, 2))   # NHWC -> NCHW


# ------------------------------------------------------------------ params (PyTorch layout)
def init_params(key, channels, latent_dimension):
    def uniform(k, shape, fan_in):
        bound = 1.0 / jnp.sqrt(float(fan_in))
        return jax.random.uniform(k, shape, jnp.float32, -bound, bound)

    ks = jax.random.split(key, 12)
    p = {}
    p["lin_w"] = uniform(ks[0], (128, latent_dimension), latent_dimension)
    p["lin_b"] = uniform(ks[1], (128,), latent_dimension)
    p["ct1_w"] = uniform(ks[2], (128, 64, 4, 4), 128 * 4 * 4)
    p["ct1_b"] = uniform(ks[3], (64,), 128 * 4 * 4)
    p["bn1_g"] = jnp.ones((64,), jnp.float32)
    p["bn1_b"] = jnp.zeros((64,), jnp.float32)
    p["ct2_w"] = uniform(ks[4], (64, 32, 3, 3), 64 * 3 * 3)
    p["ct2_b"] = uniform(ks[5], (32,), 64 * 3 * 3)
    p["bn2_g"] = jnp.ones((32,), jnp.float32)
    p["bn2_b"] = jnp.zeros((32,), jnp.float32)
    p["ct3_w"] = uniform(ks[6], (32, 16, 3, 3), 32 * 3 * 3)
    p["ct3_b"] = uniform(ks[7], (16,), 32 * 3 * 3)
    p["ct4_w"] = uniform(ks[8], (16, channels, 3, 3), 16 * 3 * 3)
    p["ct4_b"] = uniform(ks[9], (channels,), 16 * 3 * 3)
    return p


# ------------------------------------------------------------------ main
if __name__ == "__main__":
    CHANNELS = 3
    LATENT = 16
    BATCH = 2

    key = jax.random.PRNGKey(0)
    k_params, k_x = jax.random.split(key)
    params = init_params(k_params, CHANNELS, LATENT)
    x = jax.random.normal(k_x, (BATCH, LATENT), jnp.float32)

    # One-time, host-side weight preprocessing (hoisted out of the jitted forward).
    operands, meta = prepare_decoder(params, CHANNELS, BATCH)

    fwd = jax.jit(functools.partial(decoder_forward, meta=meta))
    out = jax.block_until_ready(fwd(x, operands))

    assert out.shape == (BATCH, CHANNELS, 28, 28), out.shape
    assert bool(jnp.all(jnp.isfinite(out)))
    assert bool(jnp.all(out >= 0.0)) and bool(jnp.all(out <= 1.0))  # sigmoid range
    print("KERNEL_OK")
</pallas_src>

<mosaic_0001>
module attributes {stable_mosaic.version = 11 : i64} {
  func.func @_decoder_kernel(%arg0: i32, %arg1: memref<2x16xf32, #tpu.memory_space<vmem>>, %arg2: memref<16x128xf32, #tpu.memory_space<vmem>>, %arg3: memref<1x128xf32, #tpu.memory_space<vmem>>, %arg4: memref<4x128x256xf32, #tpu.memory_space<vmem>>, %arg5: memref<4x8x2xf32, #tpu.memory_space<vmem>>, %arg6: memref<1x256xf32, #tpu.memory_space<vmem>>, %arg7: memref<1x64xf32, #tpu.memory_space<vmem>>, %arg8: memref<1x64xf32, #tpu.memory_space<vmem>>, %arg9: memref<256x64xf32, #tpu.memory_space<vmem>>, %arg10: memref<64x256xf32, #tpu.memory_space<vmem>>, %arg11: memref<3x256x256xf32, #tpu.memory_space<vmem>>, %arg12: memref<3x14x8xf32, #tpu.memory_space<vmem>>, %arg13: memref<1x256xf32, #tpu.memory_space<vmem>>, %arg14: memref<1x32xf32, #tpu.memory_space<vmem>>, %arg15: memref<1x32xf32, #tpu.memory_space<vmem>>, %arg16: memref<256x32xf32, #tpu.memory_space<vmem>>, %arg17: memref<32x256xf32, #tpu.memory_space<vmem>>, %arg18: memref<3x256x256xf32, #tpu.memory_space<vmem>>, %arg19: memref<3x28x14xf32, #tpu.memory_space<vmem>>, %arg20: memref<1x256xf32, #tpu.memory_space<vmem>>, %arg21: memref<3x256x128xf32, #tpu.memory_space<vmem>>, %arg22: memref<3x56x28xf32, #tpu.memory_space<vmem>>, %arg23: memref<1x128xf32, #tpu.memory_space<vmem>>, %arg24: memref<56x128xf32, #tpu.memory_space<vmem>>) attributes {dimension_semantics = [#tpu.dimension_semantics<arbitrary>], iteration_bounds = array<i64: 1>, scalar_prefetch = 0 : i64, scratch_operands = 0 : i64, tpu.core_type = #tpu.core_type<tc>, window_params = [{pipeline_mode = #tpu.pipeline_mode<synchronous>, transform_indices = @transform_0, window_bounds = array<i64: 2, 16>}, {pipeline_mode = #tpu.pipeline_mode<synchronous>, transform_indices = @transform_1, window_bounds = array<i64: 16, 128>}, {pipeline_mode = #tpu.pipeline_mode<synchronous>, transform_indices = @transform_2, window_bounds = array<i64: 1, 128>}, {pipeline_mode = #tpu.pipeline_mode<synchronous>, transform_indices = @transform_3, window_bounds = array<i64: 4, 128, 256>}, {pipeline_mode = #tpu.pipeline_mode<synchronous>, transform_indices = @transform_4, window_bounds = array<i64: 4, 8, 2>}, {pipeline_mode = #tpu.pipeline_mode<synchronous>, transform_indices = @transform_5, window_bounds = array<i64: 1, 256>}, {pipeline_mode = #tpu.pipeline_mode<synchronous>, transform_indices = @transform_6, window_bounds = array<i64: 1, 64>}, {pipeline_mode = #tpu.pipeline_mode<synchronous>, transform_indices = @transform_7, window_bounds = array<i64: 1, 64>}, {pipeline_mode = #tpu.pipeline_mode<synchronous>, transform_indices = @transform_8, window_bounds = array<i64: 256, 64>}, {pipeline_mode = #tpu.pipeline_mode<synchronous>, transform_indices = @transform_9, window_bounds = array<i64: 64, 256>}, {pipeline_mode = #tpu.pipeline_mode<synchronous>, transform_indices = @transform_10, window_bounds = array<i64: 3, 256, 256>}, {pipeline_mode = #tpu.pipeline_mode<synchronous>, transform_indices = @transform_11, window_bounds = array<i64: 3, 14, 8>}, {pipeline_mode = #tpu.pipeline_mode<synchronous>, transform_indices = @transform_12, window_bounds = array<i64: 1, 256>}, {pipeline_mode = #tpu.pipeline_mode<synchronous>, transform_indices = @transform_13, window_bounds = array<i64: 1, 32>}, {pipeline_mode = #tpu.pipeline_mode<synchronous>, transform_indices = @transform_14, window_bounds = array<i64: 1, 32>}, {pipeline_mode = #tpu.pipeline_mode<synchronous>, transform_indices = @transform_15, window_bounds = array<i64: 256, 32>}, {pipeline_mode = #tpu.pipeline_mode<synchronous>, transform_indices = @transform_16, window_bounds = array<i64: 32, 256>}, {pipeline_mode = #tpu.pipeline_mode<synchronous>, transform_indices = @transform_17, window_bounds = array<i64: 3, 256, 256>}, {pipeline_mode = #tpu.pipeline_mode<synchronous>, transform_indices = @transform_18, window_bounds = array<i64: 3, 28, 14>}, {pipeline_mode = #tpu.pipeline_mode<synchronous>, transform_indices = @transform_19, window_bounds = array<i64: 1, 256>}, {pipeline_mode = #tpu.pipeline_mode<synchronous>, transform_indices = @transform_20, window_bounds = array<i64: 3, 256, 128>}, {pipeline_mode = #tpu.pipeline_mode<synchronous>, transform_indices = @transform_21, window_bounds = array<i64: 3, 56, 28>}, {pipeline_mode = #tpu.pipeline_mode<synchronous>, transform_indices = @transform_22, window_bounds = array<i64: 1, 128>}, {pipeline_mode = #tpu.pipeline_mode<synchronous>, transform_indices = @transform_23, window_bounds = array<i64: 56, 128>}]} {
    %c0 = arith.constant 0 : index
    %c0_0 = arith.constant 0 : index
    %0 = vector.load %arg1[%c0, %c0_0] : memref<2x16xf32, #tpu.memory_space<vmem>>, vector<2x16xf32>
    %c0_1 = arith.constant 0 : index
    %c0_2 = arith.constant 0 : index
    %1 = vector.load %arg2[%c0_1, %c0_2] : memref<16x128xf32, #tpu.memory_space<vmem>>, vector<16x128xf32>
    %cst = arith.constant dense<0.000000e+00> : vector<2x128xf32>
    %2 = tpu.matmul %0, %1, %cst {dimension_numbers = #tpu.dot_dimension_numbers<[1], [0], [0], [1], [0, 0, 1, 1], [], []>} : vector<2x16xf32>, vector<16x128xf32>, vector<2x128xf32> -> vector<2x128xf32>
    %c0_3 = arith.constant 0 : index
    %c0_4 = arith.constant 0 : index
    %3 = vector.load %arg3[%c0_3, %c0_4] : memref<1x128xf32, #tpu.memory_space<vmem>>, vector<1x128xf32>
    %4 = vector.broadcast %3 : vector<1x128xf32> to vector<2x128xf32>
    %5 = arith.addf %2, %4 : vector<2x128xf32>
    %cst_5 = arith.constant 0.000000e+00 : f32
    %6 = vector.broadcast %cst_5 : f32 to vector<2x128xf32>
    %7 = arith.maximumf %5, %6 : vector<2x128xf32>
    %c0_6 = arith.constant 0 : index
    %c0_7 = arith.constant 0 : index
    %c0_8 = arith.constant 0 : index
    %8 = vector.load %arg4[%c0_6, %c0_7, %c0_8] : memref<4x128x256xf32, #tpu.memory_space<vmem>>, vector<1x128x256xf32>
    %9 = vector.shape_cast %8 : vector<1x128x256xf32> to vector<128x256xf32>
    %cst_9 = arith.constant dense<0.000000e+00> : vector<2x256xf32>
    %10 = tpu.matmul %7, %9, %cst_9 {dimension_numbers = #tpu.dot_dimension_numbers<[1], [0], [0], [1], [0, 0, 1, 1], [], []>} : vector<2x128xf32>, vector<128x256xf32>, vector<2x256xf32> -> vector<2x256xf32>
    %c0_10 = arith.constant 0 : index
    %c0_11 = arith.constant 0 : index
    %c0_12 = arith.constant 0 : index
    %11 = vector.load %arg5[%c0_10, %c0_11, %c0_12] : memref<4x8x2xf32, #tpu.memory_space<vmem>>, vector<1x8x2xf32>
    %12 = vector.shape_cast %11 : vector<1x8x2xf32> to vector<8x2xf32>
    %cst_13 = arith.constant dense<0.000000e+00> : vector<8x256xf32>
    %13 = tpu.matmul %12, %10, %cst_13 {dimension_numbers = #tpu.dot_dimension_numbers<[1], [0], [0], [1], [0, 0, 1, 1], [], []>} : vector<8x2xf32>, vector<2x256xf32>, vector<8x256xf32> -> vector<8x256xf32>
    %c1 = arith.constant 1 : index
    %c0_14 = arith.constant 0 : index
    %c0_15 = arith.constant 0 : index
    %14 = vector.load %arg4[%c1, %c0_14, %c0_15] : memref<4x128x256xf32, #tpu.memory_space<vmem>>, vector<1x128x256xf32>
    %15 = vector.shape_cast %14 : vector<1x128x256xf32> to vector<128x256xf32>
    %cst_16 = arith.constant dense<0.000000e+00> : vector<2x256xf32>
    %16 = tpu.matmul %7, %15, %cst_16 {dimension_numbers = #tpu.dot_dimension_numbers<[1], [0], [0], [1], [0, 0, 1, 1], [], []>} : vector<2x128xf32>, vector<128x256xf32>, vector<2x256xf32> -> vector<2x256xf32>
    %c1_17 = arith.constant 1 : index
    %c0_18 = arith.constant 0 : index
    %c0_19 = arith.constant 0 : index
    %17 = vector.load %arg5[%c1_17, %c0_18, %c0_19] : memref<4x8x2xf32, #tpu.memory_space<vmem>>, vector<1x8x2xf32>
    %18 = vector.shape_cast %17 : vector<1x8x2xf32> to vector<8x2xf32>
    %cst_20 = arith.constant dense<0.000000e+00> : vector<8x256xf32>
    %19 = tpu.matmul %18, %16, %cst_20 {dimension_numbers = #tpu.dot_dimension_numbers<[1], [0], [0], [1], [0, 0, 1, 1], [], []>} : vector<8x2xf32>, vector<2x256xf32>, vector<8x256xf32> -> vector<8x256xf32>
    %20 = arith.addf %13, %19 : vector<8x256xf32>
    %c2 = arith.constant 2 : index
    %c0_21 = arith.constant 0 : index
    %c0_22 = arith.constant 0 : index
    %21 = vector.load %arg4[%c2, %c0_21, %c0_22] : memref<4x128x256xf32, #tpu.memory_space<vmem>>, vector<1x128x256xf32>
    %22 = vector.shape_cast %21 : vector<1x128x256xf32> to vector<128x256xf32>
    %cst_23 = arith.constant dense<0.000000e+00> : vector<2x256xf32>
    %23 = tpu.matmul %7, %22, %cst_23 {dimension_numbers = #tpu.dot_dimension_numbers<[1], [0], [0], [1], [0, 0, 1, 1], [], []>} : vector<2x128xf32>, vector<128x256xf32>, vector<2x256xf32> -> vector<2x256xf32>
    %c2_24 = arith.constant 2 : index
    %c0_25 = arith.constant 0 : index
    %c0_26 = arith.constant 0 : index
    %24 = vector.load %arg5[%c2_24, %c0_25, %c0_26] : memref<4x8x2xf32, #tpu.memory_space<vmem>>, vector<1x8x2xf32>
    %25 = vector.shape_cast %24 : vector<1x8x2xf32> to vector<8x2xf32>
    %cst_27 = arith.constant dense<0.000000e+00> : vector<8x256xf32>
    %26 = tpu.matmul %25, %23, %cst_27 {dimension_numbers = #tpu.dot_dimension_numbers<[1], [0], [0], [1], [0, 0, 1, 1], [], []>} : vector<8x2xf32>, vector<2x256xf32>, vector<8x256xf32> -> vector<8x256xf32>
    %27 = arith.addf %20, %26 : vector<8x256xf32>
    %c3 = arith.constant 3 : index
    %c0_28 = arith.constant 0 : index
    %c0_29 = arith.constant 0 : index
    %28 = vector.load %arg4[%c3, %c0_28, %c0_29] : memref<4x128x256xf32, #tpu.memory_space<vmem>>, vector<1x128x256xf32>
    %29 = vector.shape_cast %28 : vector<1x128x256xf32> to vector<128x256xf32>
    %cst_30 = arith.constant dense<0.000000e+00> : vector<2x256xf32>
    %30 = tpu.matmul %7, %29, %cst_30 {dimension_numbers = #tpu.dot_dimension_numbers<[1], [0], [0], [1], [0, 0, 1, 1], [], []>} : vector<2x128xf32>, vector<128x256xf32>, vector<2x256xf32> -> vector<2x256xf32>
    %c3_31 = arith.constant 3 : index
    %c0_32 = arith.constant 0 : index
    %c0_33 = arith.constant 0 : index
    %31 = vector.load %arg5[%c3_31, %c0_32, %c0_33] : memref<4x8x2xf32, #tpu.memory_space<vmem>>, vector<1x8x2xf32>
    %32 = vector.shape_cast %31 : vector<1x8x2xf32> to vector<8x2xf32>
    %cst_34 = arith.constant dense<0.000000e+00> : vector<8x256xf32>
    %33 = tpu.matmul %32, %30, %cst_34 {dimension_numbers = #tpu.dot_dimension_numbers<[1], [0], [0], [1], [0, 0, 1, 1], [], []>} : vector<8x2xf32>, vector<2x256xf32>, vector<8x256xf32> -> vector<8x256xf32>
    %34 = arith.addf %27, %33 : vector<8x256xf32>
    %c0_35 = arith.constant 0 : index
    %c0_36 = arith.constant 0 : index
    %35 = vector.load %arg6[%c0_35, %c0_36] : memref<1x256xf32, #tpu.memory_space<vmem>>, vector<1x256xf32>
    %36 = vector.broadcast %35 : vector<1x256xf32> to vector<8x256xf32>
    %37 = arith.addf %34, %36 : vector<8x256xf32>
    %cst_37 = arith.constant dense<0.000000e+00> : vector<256xf32>
    %38 = vector.multi_reduction <add>, %37, %cst_37 [0] : vector<8x256xf32> to vector<256xf32>
    %39 = vector.shape_cast %38 : vector<256xf32> to vector<1x256xf32>
    %40 = arith.mulf %37, %37 : vector<8x256xf32>
    %cst_38 = arith.constant dense<0.000000e+00> : vector<256xf32>
    %41 = vector.multi_reduction <add>, %40, %cst_38 [0] : vector<8x256xf32> to vector<256xf32>
    %42 = vector.shape_cast %41 : vector<256xf32> to vector<1x256xf32>
    %c0_39 = arith.constant 0 : index
    %c0_40 = arith.constant 0 : index
    %43 = vector.load %arg9[%c0_39, %c0_40] : memref<256x64xf32, #tpu.memory_space<vmem>>, vector<256x64xf32>
    %cst_41 = arith.constant dense<0.000000e+00> : vector<1x64xf32>
    %44 = tpu.matmul %39, %43, %cst_41 {dimension_numbers = #tpu.dot_dimension_numbers<[1], [0], [0], [1], [0, 0, 1, 1], [], []>} : vector<1x256xf32>, vector<256x64xf32>, vector<1x64xf32> -> vector<1x64xf32>
    %c0_42 = arith.constant 0 : index
    %c0_43 = arith.constant 0 : index
    %45 = vector.load %arg9[%c0_42, %c0_43] : memref<256x64xf32, #tpu.memory_space<vmem>>, vector<256x64xf32>
    %cst_44 = arith.constant dense<0.000000e+00> : vector<1x64xf32>
    %46 = tpu.matmul %42, %45, %cst_44 {dimension_numbers = #tpu.dot_dimension_numbers<[1], [0], [0], [1], [0, 0, 1, 1], [], []>} : vector<1x256xf32>, vector<256x64xf32>, vector<1x64xf32> -> vector<1x64xf32>
    %cst_45 = arith.constant 3.125000e-02 : f32
    %47 = vector.broadcast %cst_45 : f32 to vector<1x64xf32>
    %48 = arith.mulf %44, %47 : vector<1x64xf32>
    %cst_46 = arith.constant 3.125000e-02 : f32
    %49 = vector.broadcast %cst_46 : f32 to vector<1x64xf32>
    %50 = arith.mulf %46, %49 : vector<1x64xf32>
    %51 = arith.mulf %48, %48 : vector<1x64xf32>
    %52 = arith.subf %50, %51 : vector<1x64xf32>
    %cst_47 = arith.constant 0.000000e+00 : f32
    %53 = vector.broadcast %cst_47 : f32 to vector<1x64xf32>
    %54 = arith.maximumf %52, %53 : vector<1x64xf32>
    %cst_48 = arith.constant 9.99999974E-6 : f32
    %55 = vector.broadcast %cst_48 : f32 to vector<1x64xf32>
    %56 = arith.addf %54, %55 : vector<1x64xf32>
    %57 = math.rsqrt %56 : vector<1x64xf32>
    %c0_49 = arith.constant 0 : index
    %c0_50 = arith.constant 0 : index
    %58 = vector.load %arg7[%c0_49, %c0_50] : memref<1x64xf32, #tpu.memory_space<vmem>>, vector<1x64xf32>
    %59 = arith.mulf %58, %57 : vector<1x64xf32>
    %c0_51 = arith.constant 0 : index
    %c0_52 = arith.constant 0 : index
    %60 = vector.load %arg8[%c0_51, %c0_52] : memref<1x64xf32, #tpu.memory_space<vmem>>, vector<1x64xf32>
    %61 = arith.mulf %48, %59 : vector<1x64xf32>
    %62 = arith.subf %60, %61 : vector<1x64xf32>
    %c0_53 = arith.constant 0 : index
    %c0_54 = arith.constant 0 : index
    %63 = vector.load %arg10[%c0_53, %c0_54] : memref<64x256xf32, #tpu.memory_space<vmem>>, vector<64x256xf32>
    %cst_55 = arith.constant dense<0.000000e+00> : vector<1x256xf32>
    %64 = tpu.matmul %59, %63, %cst_55 {dimension_numbers = #tpu.dot_dimension_numbers<[1], [0], [0], [1], [0, 0, 1, 1], [], []>} : vector<1x64xf32>, vector<64x256xf32>, vector<1x256xf32> -> vector<1x256xf32>
    %c0_56 = arith.constant 0 : index
    %c0_57 = arith.constant 0 : index
    %65 = vector.load %arg10[%c0_56, %c0_57] : memref<64x256xf32, #tpu.memory_space<vmem>>, vector<64x256xf32>
    %cst_58 = arith.constant dense<0.000000e+00> : vector<1x256xf32>
    %66 = tpu.matmul %62, %65, %cst_58 {dimension_numbers = #tpu.dot_dimension_numbers<[1], [0], [0], [1], [0, 0, 1, 1], [], []>} : vector<1x64xf32>, vector<64x256xf32>, vector<1x256xf32> -> vector<1x256xf32>
    %67 = vector.broadcast %64 : vector<1x256xf32> to vector<8x256xf32>
    %68 = arith.mulf %37, %67 : vector<8x256xf32>
    %69 = vector.broadcast %66 : vector<1x256xf32> to vector<8x256xf32>
    %70 = arith.addf %68, %69 : vector<8x256xf32>
    %cst_59 = arith.constant 0.000000e+00 : f32
    %71 = vector.broadcast %cst_59 : f32 to vector<8x256xf32>
    %72 = arith.maximumf %70, %71 : vector<8x256xf32>
    %c0_60 = arith.constant 0 : index
    %c0_61 = arith.constant 0 : index
    %c0_62 = arith.constant 0 : index
    %73 = vector.load %arg11[%c0_60, %c0_61, %c0_62] : memref<3x256x256xf32, #tpu.memory_space<vmem>>, vector<1x256x256xf32>
    %74 = vector.shape_cast %73 : vector<1x256x256xf32> to vector<256x256xf32>
    %cst_63 = arith.constant dense<0.000000e+00> : vector<8x256xf32>
    %75 = tpu.matmul %72, %74, %cst_63 {dimension_numbers = #tpu.dot_dimension_numbers<[1], [0], [0], [1], [0, 0, 1, 1], [], []>} : vector<8x256xf32>, vector<256x256xf32>, vector<8x256xf32> -> vector<8x256xf32>
    %c0_64 = arith.constant 0 : index
    %c0_65 = arith.constant 0 : index
    %c0_66 = arith.constant 0 : index
    %76 = vector.load %arg12[%c0_64, %c0_65, %c0_66] : memref<3x14x8xf32, #tpu.memory_space<vmem>>, vector<1x14x8xf32>
    %77 = vector.shape_cast %76 : vector<1x14x8xf32> to vector<14x8xf32>
    %cst_67 = arith.constant dense<0.000000e+00> : vector<14x256xf32>
    %78 = tpu.matmul %77, %75, %cst_67 {dimension_numbers = #tpu.dot_dimension_numbers<[1], [0], [0], [1], [0, 0, 1, 1], [], []>} : vector<14x8xf32>, vector<8x256xf32>, vector<14x256xf32> -> vector<14x256xf32>
    %c1_68 = arith.constant 1 : index
    %c0_69 = arith.constant 0 : index
    %c0_70 = arith.constant 0 : index
    %79 = vector.load %arg11[%c1_68, %c0_69, %c0_70] : memref<3x256x256xf32, #tpu.memory_space<vmem>>, vector<1x256x256xf32>
    %80 = vector.shape_cast %79 : vector<1x256x256xf32> to vector<256x256xf32>
    %cst_71 = arith.constant dense<0.000000e+00> : vector<8x256xf32>
    %81 = tpu.matmul %72, %80, %cst_71 {dimension_numbers = #tpu.dot_dimension_numbers<[1], [0], [0], [1], [0, 0, 1, 1], [], []>} : vector<8x256xf32>, vector<256x256xf32>, vector<8x256xf32> -> vector<8x256xf32>
    %c1_72 = arith.constant 1 : index
    %c0_73 = arith.constant 0 : index
    %c0_74 = arith.constant 0 : index
    %82 = vector.load %arg12[%c1_72, %c0_73, %c0_74] : memref<3x14x8xf32, #tpu.memory_space<vmem>>, vector<1x14x8xf32>
    %83 = vector.shape_cast %82 : vector<1x14x8xf32> to vector<14x8xf32>
    %cst_75 = arith.constant dense<0.000000e+00> : vector<14x256xf32>
    %84 = tpu.matmul %83, %81, %cst_75 {dimension_numbers = #tpu.dot_dimension_numbers<[1], [0], [0], [1], [0, 0, 1, 1], [], []>} : vector<14x8xf32>, vector<8x256xf32>, vector<14x256xf32> -> vector<14x256xf32>
    %85 = arith.addf %78, %84 : vector<14x256xf32>
    %c2_76 = arith.constant 2 : index
    %c0_77 = arith.constant 0 : index
    %c0_78 = arith.constant 0 : index
    %86 = vector.load %arg11[%c2_76, %c0_77, %c0_78] : memref<3x256x256xf32, #tpu.memory_space<vmem>>, vector<1x256x256xf32>
    %87 = vector.shape_cast %86 : vector<1x256x256xf32> to vector<256x256xf32>
    %cst_79 = arith.constant dense<0.000000e+00> : vector<8x256xf32>
    %88 = tpu.matmul %72, %87, %cst_79 {dimension_numbers = #tpu.dot_dimension_numbers<[1], [0], [0], [1], [0, 0, 1, 1], [], []>} : vector<8x256xf32>, vector<256x256xf32>, vector<8x256xf32> -> vector<8x256xf32>
    %c2_80 = arith.constant 2 : index
    %c0_81 = arith.constant 0 : index
    %c0_82 = arith.constant 0 : index
    %89 = vector.load %arg12[%c2_80, %c0_81, %c0_82] : memref<3x14x8xf32, #tpu.memory_space<vmem>>, vector<1x14x8xf32>
    %90 = vector.shape_cast %89 : vector<1x14x8xf32> to vector<14x8xf32>
    %cst_83 = arith.constant dense<0.000000e+00> : vector<14x256xf32>
    %91 = tpu.matmul %90, %88, %cst_83 {dimension_numbers = #tpu.dot_dimension_numbers<[1], [0], [0], [1], [0, 0, 1, 1], [], []>} : vector<14x8xf32>, vector<8x256xf32>, vector<14x256xf32> -> vector<14x256xf32>
    %92 = arith.addf %85, %91 : vector<14x256xf32>
    %c0_84 = arith.constant 0 : index
    %c0_85 = arith.constant 0 : index
    %93 = vector.load %arg13[%c0_84, %c0_85] : memref<1x256xf32, #tpu.memory_space<vmem>>, vector<1x256xf32>
    %94 = vector.broadcast %93 : vector<1x256xf32> to vector<14x256xf32>
    %95 = arith.addf %92, %94 : vector<14x256xf32>
    %cst_86 = arith.constant dense<0.000000e+00> : vector<256xf32>
    %96 = vector.multi_reduction <add>, %95, %cst_86 [0] : vector<14x256xf32> to vector<256xf32>
    %97 = vector.shape_cast %96 : vector<256xf32> to vector<1x256xf32>
    %98 = arith.mulf %95, %95 : vector<14x256xf32>
    %cst_87 = arith.constant dense<0.000000e+00> : vector<256xf32>
    %99 = vector.multi_reduction <add>, %98, %cst_87 [0] : vector<14x256xf32> to vector<256xf32>
    %100 = vector.shape_cast %99 : vector<256xf32> to vector<1x256xf32>
    %c0_88 = arith.constant 0 : index
    %c0_89 = arith.constant 0 : index
    %101 = vector.load %arg16[%c0_88, %c0_89] : memref<256x32xf32, #tpu.memory_space<vmem>>, vector<256x32xf32>
    %cst_90 = arith.constant dense<0.000000e+00> : vector<1x32xf32>
    %102 = tpu.matmul %97, %101, %cst_90 {dimension_numbers = #tpu.dot_dimension_numbers<[1], [0], [0], [1], [0, 0, 1, 1], [], []>} : vector<1x256xf32>, vector<256x32xf32>, vector<1x32xf32> -> vector<1x32xf32>
    %c0_91 = arith.constant 0 : index
    %c0_92 = arith.constant 0 : index
    %103 = vector.load %arg16[%c0_91, %c0_92] : memref<256x32xf32, #tpu.memory_space<vmem>>, vector<256x32xf32>
    %cst_93 = arith.constant dense<0.000000e+00> : vector<1x32xf32>
    %104 = tpu.matmul %100, %103, %cst_93 {dimension_numbers = #tpu.dot_dimension_numbers<[1], [0], [0], [1], [0, 0, 1, 1], [], []>} : vector<1x256xf32>, vector<256x32xf32>, vector<1x32xf32> -> vector<1x32xf32>
    %cst_94 = arith.constant 0.0102040814 : f32
    %105 = vector.broadcast %cst_94 : f32 to vector<1x32xf32>
    %106 = arith.mulf %102, %105 : vector<1x32xf32>
    %cst_95 = arith.constant 0.0102040814 : f32
    %107 = vector.broadcast %cst_95 : f32 to vector<1x32xf32>
    %108 = arith.mulf %104, %107 : vector<1x32xf32>
    %109 = arith.mulf %106, %106 : vector<1x32xf32>
    %110 = arith.subf %108, %109 : vector<1x32xf32>
    %cst_96 = arith.constant 0.000000e+00 : f32
    %111 = vector.broadcast %cst_96 : f32 to vector<1x32xf32>
    %112 = arith.maximumf %110, %111 : vector<1x32xf32>
    %cst_97 = arith.constant 9.99999974E-6 : f32
    %113 = vector.broadcast %cst_97 : f32 to vector<1x32xf32>
    %114 = arith.addf %112, %113 : vector<1x32xf32>
    %115 = math.rsqrt %114 : vector<1x32xf32>
    %c0_98 = arith.constant 0 : index
    %c0_99 = arith.constant 0 : index
    %116 = vector.load %arg14[%c0_98, %c0_99] : memref<1x32xf32, #tpu.memory_space<vmem>>, vector<1x32xf32>
    %117 = arith.mulf %116, %115 : vector<1x32xf32>
    %c0_100 = arith.constant 0 : index
    %c0_101 = arith.constant 0 : index
    %118 = vector.load %arg15[%c0_100, %c0_101] : memref<1x32xf32, #tpu.memory_space<vmem>>, vector<1x32xf32>
    %119 = arith.mulf %106, %117 : vector<1x32xf32>
    %120 = arith.subf %118, %119 : vector<1x32xf32>
    %c0_102 = arith.constant 0 : index
    %c0_103 = arith.constant 0 : index
    %121 = vector.load %arg17[%c0_102, %c0_103] : memref<32x256xf32, #tpu.memory_space<vmem>>, vector<32x256xf32>
    %cst_104 = arith.constant dense<0.000000e+00> : vector<1x256xf32>
    %122 = tpu.matmul %117, %121, %cst_104 {dimension_numbers = #tpu.dot_dimension_numbers<[1], [0], [0], [1], [0, 0, 1, 1], [], []>} : vector<1x32xf32>, vector<32x256xf32>, vector<1x256xf32> -> vector<1x256xf32>
    %c0_105 = arith.constant 0 : index
    %c0_106 = arith.constant 0 : index
    %123 = vector.load %arg17[%c0_105, %c0_106] : memref<32x256xf32, #tpu.memory_space<vmem>>, vector<32x256xf32>
    %cst_107 = arith.constant dense<0.000000e+00> : vector<1x256xf32>
    %124 = tpu.matmul %120, %123, %cst_107 {dimension_numbers = #tpu.dot_dimension_numbers<[1], [0], [0], [1], [0, 0, 1, 1], [], []>} : vector<1x32xf32>, vector<32x256xf32>, vector<1x256xf32> -> vector<1x256xf32>
    %125 = vector.broadcast %122 : vector<1x256xf32> to vector<14x256xf32>
    %126 = arith.mulf %95, %125 : vector<14x256xf32>
    %127 = vector.broadcast %124 : vector<1x256xf32> to vector<14x256xf32>
    %128 = arith.addf %126, %127 : vector<14x256xf32>
    %cst_108 = arith.constant 0.000000e+00 : f32
    %129 = vector.broadcast %cst_108 : f32 to vector<14x256xf32>
    %130 = arith.maximumf %128, %129 : vector<14x256xf32>
    %c0_109 = arith.constant 0 : index
    %c0_110 = arith.constant 0 : index
    %c0_111 = arith.constant 0 : index
    %131 = vector.load %arg18[%c0_109, %c0_110, %c0_111] : memref<3x256x256xf32, #tpu.memory_space<vmem>>, vector<1x256x256xf32>
    %132 = vector.shape_cast %131 : vector<1x256x256xf32> to vector<256x256xf32>
    %cst_112 = arith.constant dense<0.000000e+00> : vector<14x256xf32>
    %133 = tpu.matmul %130, %132, %cst_112 {dimension_numbers = #tpu.dot_dimension_numbers<[1], [0], [0], [1], [0, 0, 1, 1], [], []>} : vector<14x256xf32>, vector<256x256xf32>, vector<14x256xf32> -> vector<14x256xf32>
    %c0_113 = arith.constant 0 : index
    %c0_114 = arith.constant 0 : index
    %c0_115 = arith.constant 0 : index
    %134 = vector.load %arg19[%c0_113, %c0_114, %c0_115] : memref<3x28x14xf32, #tpu.memory_space<vmem>>, vector<1x28x14xf32>
    %135 = vector.shape_cast %134 : vector<1x28x14xf32> to vector<28x14xf32>
    %cst_116 = arith.constant dense<0.000000e+00> : vector<28x256xf32>
    %136 = tpu.matmul %135, %133, %cst_116 {dimension_numbers = #tpu.dot_dimension_numbers<[1], [0], [0], [1], [0, 0, 1, 1], [], []>} : vector<28x14xf32>, vector<14x256xf32>, vector<28x256xf32> -> vector<28x256xf32>
    %c1_117 = arith.constant 1 : index
    %c0_118 = arith.constant 0 : index
    %c0_119 = arith.constant 0 : index
    %137 = vector.load %arg18[%c1_117, %c0_118, %c0_119] : memref<3x256x256xf32, #tpu.memory_space<vmem>>, vector<1x256x256xf32>
    %138 = vector.shape_cast %137 : vector<1x256x256xf32> to vector<256x256xf32>
    %cst_120 = arith.constant dense<0.000000e+00> : vector<14x256xf32>
    %139 = tpu.matmul %130, %138, %cst_120 {dimension_numbers = #tpu.dot_dimension_numbers<[1], [0], [0], [1], [0, 0, 1, 1], [], []>} : vector<14x256xf32>, vector<256x256xf32>, vector<14x256xf32> -> vector<14x256xf32>
    %c1_121 = arith.constant 1 : index
    %c0_122 = arith.constant 0 : index
    %c0_123 = arith.constant 0 : index
    %140 = vector.load %arg19[%c1_121, %c0_122, %c0_123] : memref<3x28x14xf32, #tpu.memory_space<vmem>>, vector<1x28x14xf32>
    %141 = vector.shape_cast %140 : vector<1x28x14xf32> to vector<28x14xf32>
    %cst_124 = arith.constant dense<0.000000e+00> : vector<28x256xf32>
    %142 = tpu.matmul %141, %139, %cst_124 {dimension_numbers = #tpu.dot_dimension_numbers<[1], [0], [0], [1], [0, 0, 1, 1], [], []>} : vector<28x14xf32>, vector<14x256xf32>, vector<28x256xf32> -> vector<28x256xf32>
    %143 = arith.addf %136, %142 : vector<28x256xf32>
    %c2_125 = arith.constant 2 : index
    %c0_126 = arith.constant 0 : index
    %c0_127 = arith.constant 0 : index
    %144 = vector.load %arg18[%c2_125, %c0_126, %c0_127] : memref<3x256x256xf32, #tpu.memory_space<vmem>>, vector<1x256x256xf32>
    %145 = vector.shape_cast %144 : vector<1x256x256xf32> to vector<256x256xf32>
    %cst_128 = arith.constant dense<0.000000e+00> : vector<14x256xf32>
    %146 = tpu.matmul %130, %145, %cst_128 {dimension_numbers = #tpu.dot_dimension_numbers<[1], [0], [0], [1], [0, 0, 1, 1], [], []>} : vector<14x256xf32>, vector<256x256xf32>, vector<14x256xf32> -> vector<14x256xf32>
    %c2_129 = arith.constant 2 : index
    %c0_130 = arith.constant 0 : index
    %c0_131 = arith.constant 0 : index
    %147 = vector.load %arg19[%c2_129, %c0_130, %c0_131] : memref<3x28x14xf32, #tpu.memory_space<vmem>>, vector<1x28x14xf32>
    %148 = vector.shape_cast %147 : vector<1x28x14xf32> to vector<28x14xf32>
    %cst_132 = arith.constant dense<0.000000e+00> : vector<28x256xf32>
    %149 = tpu.matmul %148, %146, %cst_132 {dimension_numbers = #tpu.dot_dimension_numbers<[1], [0], [0], [1], [0, 0, 1, 1], [], []>} : vector<28x14xf32>, vector<14x256xf32>, vector<28x256xf32> -> vector<28x256xf32>
    %150 = arith.addf %143, %149 : vector<28x256xf32>
    %c0_133 = arith.constant 0 : index
    %c0_134 = arith.constant 0 : index
    %151 = vector.load %arg20[%c0_133, %c0_134] : memref<1x256xf32, #tpu.memory_space<vmem>>, vector<1x256xf32>
    %152 = vector.broadcast %151 : vector<1x256xf32> to vector<28x256xf32>
    %153 = arith.addf %150, %152 : vector<28x256xf32>
    %cst_135 = arith.constant 0.000000e+00 : f32
    %154 = vector.broadcast %cst_135 : f32 to vector<28x256xf32>
    %155 = arith.maximumf %153, %154 : vector<28x256xf32>
    %c0_136 = arith.constant 0 : index
    %c0_137 = arith.constant 0 : index
    %c0_138 = arith.constant 0 : index
    %156 = vector.load %arg21[%c0_136, %c0_137, %c0_138] : memref<3x256x128xf32, #tpu.memory_space<vmem>>, vector<1x256x128xf32>
    %157 = vector.shape_cast %156 : vector<1x256x128xf32> to vector<256x128xf32>
    %cst_139 = arith.constant dense<0.000000e+00> : vector<28x128xf32>
    %158 = tpu.matmul %155, %157, %cst_139 {dimension_numbers = #tpu.dot_dimension_numbers<[1], [0], [0], [1], [0, 0, 1, 1], [], []>} : vector<28x256xf32>, vector<256x128xf32>, vector<28x128xf32> -> vector<28x128xf32>
    %c0_140 = arith.constant 0 : index
    %c0_141 = arith.constant 0 : index
    %c0_142 = arith.constant 0 : index
    %159 = vector.load %arg22[%c0_140, %c0_141, %c0_142] : memref<3x56x28xf32, #tpu.memory_space<vmem>>, vector<1x56x28xf32>
    %160 = vector.shape_cast %159 : vector<1x56x28xf32> to vector<56x28xf32>
    %cst_143 = arith.constant dense<0.000000e+00> : vector<56x128xf32>
    %161 = tpu.matmul %160, %158, %cst_143 {dimension_numbers = #tpu.dot_dimension_numbers<[1], [0], [0], [1], [0, 0, 1, 1], [], []>} : vector<56x28xf32>, vector<28x128xf32>, vector<56x128xf32> -> vector<56x128xf32>
    %c1_144 = arith.constant 1 : index
    %c0_145 = arith.constant 0 : index
    %c0_146 = arith.constant 0 : index
    %162 = vector.load %arg21[%c1_144, %c0_145, %c0_146] : memref<3x256x128xf32, #tpu.memory_space<vmem>>, vector<1x256x128xf32>
    %163 = vector.shape_cast %162 : vector<1x256x128xf32> to vector<256x128xf32>
    %cst_147 = arith.constant dense<0.000000e+00> : vector<28x128xf32>
    %164 = tpu.matmul %155, %163, %cst_147 {dimension_numbers = #tpu.dot_dimension_numbers<[1], [0], [0], [1], [0, 0, 1, 1], [], []>} : vector<28x256xf32>, vector<256x128xf32>, vector<28x128xf32> -> vector<28x128xf32>
    %c1_148 = arith.constant 1 : index
    %c0_149 = arith.constant 0 : index
    %c0_150 = arith.constant 0 : index
    %165 = vector.load %arg22[%c1_148, %c0_149, %c0_150] : memref<3x56x28xf32, #tpu.memory_space<vmem>>, vector<1x56x28xf32>
    %166 = vector.shape_cast %165 : vector<1x56x28xf32> to vector<56x28xf32>
    %cst_151 = arith.constant dense<0.000000e+00> : vector<56x128xf32>
    %167 = tpu.matmul %166, %164, %cst_151 {dimension_numbers = #tpu.dot_dimension_numbers<[1], [0], [0], [1], [0, 0, 1, 1], [], []>} : vector<56x28xf32>, vector<28x128xf32>, vector<56x128xf32> -> vector<56x128xf32>
    %168 = arith.addf %161, %167 : vector<56x128xf32>
    %c2_152 = arith.constant 2 : index
    %c0_153 = arith.constant 0 : index
    %c0_154 = arith.constant 0 : index
    %169 = vector.load %arg21[%c2_152, %c0_153, %c0_154] : memref<3x256x128xf32, #tpu.memory_space<vmem>>, vector<1x256x128xf32>
    %170 = vector.shape_cast %169 : vector<1x256x128xf32> to vector<256x128xf32>
    %cst_155 = arith.constant dense<0.000000e+00> : vector<28x128xf32>
    %171 = tpu.matmul %155, %170, %cst_155 {dimension_numbers = #tpu.dot_dimension_numbers<[1], [0], [0], [1], [0, 0, 1, 1], [], []>} : vector<28x256xf32>, vector<256x128xf32>, vector<28x128xf32> -> vector<28x128xf32>
    %c2_156 = arith.constant 2 : index
    %c0_157 = arith.constant 0 : index
    %c0_158 = arith.constant 0 : index
    %172 = vector.load %arg22[%c2_156, %c0_157, %c0_158] : memref<3x56x28xf32, #tpu.memory_space<vmem>>, vector<1x56x28xf32>
    %173 = vector.shape_cast %172 : vector<1x56x28xf32> to vector<56x28xf32>
    %cst_159 = arith.constant dense<0.000000e+00> : vector<56x128xf32>
    %174 = tpu.matmul %173, %171, %cst_159 {dimension_numbers = #tpu.dot_dimension_numbers<[1], [0], [0], [1], [0, 0, 1, 1], [], []>} : vector<56x28xf32>, vector<28x128xf32>, vector<56x128xf32> -> vector<56x128xf32>
    %175 = arith.addf %168, %174 : vector<56x128xf32>
    %c0_160 = arith.constant 0 : index
    %c0_161 = arith.constant 0 : index
    %176 = vector.load %arg23[%c0_160, %c0_161] : memref<1x128xf32, #tpu.memory_space<vmem>>, vector<1x128xf32>
    %177 = vector.broadcast %176 : vector<1x128xf32> to vector<56x128xf32>
    %178 = arith.addf %175, %177 : vector<56x128xf32>
    %179 = arith.negf %178 : vector<56x128xf32>
    %180 = math.exp %179 : vector<56x128xf32>
    %cst_162 = arith.constant 1.000000e+00 : f32
    %181 = vector.broadcast %cst_162 : f32 to vector<56x128xf32>
    %182 = arith.addf %181, %180 : vector<56x128xf32>
    %183 = arith.divf %181, %182 : vector<56x128xf32>
    %c0_163 = arith.constant 0 : index
    %c0_164 = arith.constant 0 : index
    %184 = vector.load %arg24[%c0_163, %c0_164] : memref<56x128xf32, #tpu.memory_space<vmem>>, vector<56x128xf32>
    tpu.vector_store %arg24[%c0_163, %c0_164], %183 {strides = array<i32>} : memref<56x128xf32, #tpu.memory_space<vmem>>, vector<56x128xf32>,
    return
  }
  func.func @transform_0(%arg0: i32) -> (i32, i32) {
    %c0_i32 = arith.constant 0 : i32
    %c0_i32_0 = arith.constant 0 : i32
    %c0_i32_1 = arith.constant 0 : i32
    return %c0_i32, %c0_i32_0 : i32, i32
  }
  func.func @transform_1(%arg0: i32) -> (i32, i32) {
    %c0_i32 = arith.constant 0 : i32
    %c0_i32_0 = arith.constant 0 : i32
    %c0_i32_1 = arith.constant 0 : i32
    return %c0_i32, %c0_i32_0 : i32, i32
  }
  func.func @transform_2(%arg0: i32) -> (i32, i32) {
    %c0_i32 = arith.constant 0 : i32
    %c0_i32_0 = arith.constant 0 : i32
    %c0_i32_1 = arith.constant 0 : i32
    return %c0_i32, %c0_i32_0 : i32, i32
  }
  func.func @transform_3(%arg0: i32) -> (i32, i32, i32) {
    %c0_i32 = arith.constant 0 : i32
    %c0_i32_0 = arith.constant 0 : i32
    %c0_i32_1 = arith.constant 0 : i32
    %c0_i32_2 = arith.constant 0 : i32
    return %c0_i32, %c0_i32_0, %c0_i32_1 : i32, i32, i32
  }
  func.func @transform_4(%arg0: i32) -> (i32, i32, i32) {
    %c0_i32 = arith.constant 0 : i32
    %c0_i32_0 = arith.constant 0 : i32
    %c0_i32_1 = arith.constant 0 : i32
    %c0_i32_2 = arith.constant 0 : i32
    return %c0_i32, %c0_i32_0, %c0_i32_1 : i32, i32, i32
  }
  func.func @transform_5(%arg0: i32) -> (i32, i32) {
    %c0_i32 = arith.constant 0 : i32
    %c0_i32_0 = arith.constant 0 : i32
    %c0_i32_1 = arith.constant 0 : i32
    return %c0_i32, %c0_i32_0 : i32, i32
  }
  func.func @transform_6(%arg0: i32) -> (i32, i32) {
    %c0_i32 = arith.constant 0 : i32
    %c0_i32_0 = arith.constant 0 : i32
    %c0_i32_1 = arith.constant 0 : i32
    return %c0_i32, %c0_i32_0 : i32, i32
  }
  func.func @transform_7(%arg0: i32) -> (i32, i32) {
    %c0_i32 = arith.constant 0 : i32
    %c0_i32_0 = arith.constant 0 : i32
    %c0_i32_1 = arith.constant 0 : i32
    return %c0_i32, %c0_i32_0 : i32, i32
  }
  func.func @transform_8(%arg0: i32) -> (i32, i32) {
    %c0_i32 = arith.constant 0 : i32
    %c0_i32_0 = arith.constant 0 : i32
    %c0_i32_1 = arith.constant 0 : i32
    return %c0_i32, %c0_i32_0 : i32, i32
  }
  func.func @transform_9(%arg0: i32) -> (i32, i32) {
    %c0_i32 = arith.constant 0 : i32
    %c0_i32_0 = arith.constant 0 : i32
    %c0_i32_1 = arith.constant 0 : i32
    return %c0_i32, %c0_i32_0 : i32, i32
  }
  func.func @transform_10(%arg0: i32) -> (i32, i32, i32) {
    %c0_i32 = arith.constant 0 : i32
    %c0_i32_0 = arith.constant 0 : i32
    %c0_i32_1 = arith.constant 0 : i32
    %c0_i32_2 = arith.constant 0 : i32
    return %c0_i32, %c0_i32_0, %c0_i32_1 : i32, i32, i32
  }
  func.func @transform_11(%arg0: i32) -> (i32, i32, i32) {
    %c0_i32 = arith.constant 0 : i32
    %c0_i32_0 = arith.constant 0 : i32
    %c0_i32_1 = arith.constant 0 : i32
    %c0_i32_2 = arith.constant 0 : i32
    return %c0_i32, %c0_i32_0, %c0_i32_1 : i32, i32, i32
  }
  func.func @transform_12(%arg0: i32) -> (i32, i32) {
    %c0_i32 = arith.constant 0 : i32
    %c0_i32_0 = arith.constant 0 : i32
    %c0_i32_1 = arith.constant 0 : i32
    return %c0_i32, %c0_i32_0 : i32, i32
  }
  func.func @transform_13(%arg0: i32) -> (i32, i32) {
    %c0_i32 = arith.constant 0 : i32
    %c0_i32_0 = arith.constant 0 : i32
    %c0_i32_1 = arith.constant 0 : i32
    return %c0_i32, %c0_i32_0 : i32, i32
  }
  func.func @transform_14(%arg0: i32) -> (i32, i32) {
    %c0_i32 = arith.constant 0 : i32
    %c0_i32_0 = arith.constant 0 : i32
    %c0_i32_1 = arith.constant 0 : i32
    return %c0_i32, %c0_i32_0 : i32, i32
  }
  func.func @transform_15(%arg0: i32) -> (i32, i32) {
    %c0_i32 = arith.constant 0 : i32
    %c0_i32_0 = arith.constant 0 : i32
    %c0_i32_1 = arith.constant 0 : i32
    return %c0_i32, %c0_i32_0 : i32, i32
  }
  func.func @transform_16(%arg0: i32) -> (i32, i32) {
    %c0_i32 = arith.constant 0 : i32
    %c0_i32_0 = arith.constant 0 : i32
    %c0_i32_1 = arith.constant 0 : i32
    return %c0_i32, %c0_i32_0 : i32, i32
  }
  func.func @transform_17(%arg0: i32) -> (i32, i32, i32) {
    %c0_i32 = arith.constant 0 : i32
    %c0_i32_0 = arith.constant 0 : i32
    %c0_i32_1 = arith.constant 0 : i32
    %c0_i32_2 = arith.constant 0 : i32
    return %c0_i32, %c0_i32_0, %c0_i32_1 : i32, i32, i32
  }
  func.func @transform_18(%arg0: i32) -> (i32, i32, i32) {
    %c0_i32 = arith.constant 0 : i32
    %c0_i32_0 = arith.constant 0 : i32
    %c0_i32_1 = arith.constant 0 : i32
    %c0_i32_2 = arith.constant 0 : i32
    return %c0_i32, %c0_i32_0, %c0_i32_1 : i32, i32, i32
  }
  func.func @transform_19(%arg0: i32) -> (i32, i32) {
    %c0_i32 = arith.constant 0 : i32
    %c0_i32_0 = arith.constant 0 : i32
    %c0_i32_1 = arith.constant 0 : i32
    return %c0_i32, %c0_i32_0 : i32, i32
  }
  func.func @transform_20(%arg0: i32) -> (i32, i32, i32) {
    %c0_i32 = arith.constant 0 : i32
    %c0_i32_0 = arith.constant 0 : i32
    %c0_i32_1 = arith.constant 0 : i32
    %c0_i32_2 = arith.constant 0 : i32
    return %c0_i32, %c0_i32_0, %c0_i32_1 : i32, i32, i32
  }
  func.func @transform_21(%arg0: i32) -> (i32, i32, i32) {
    %c0_i32 = arith.constant 0 : i32
    %c0_i32_0 = arith.constant 0 : i32
    %c0_i32_1 = arith.constant 0 : i32
    %c0_i32_2 = arith.constant 0 : i32
    return %c0_i32, %c0_i32_0, %c0_i32_1 : i32, i32, i32
  }
  func.func @transform_22(%arg0: i32) -> (i32, i32) {
    %c0_i32 = arith.constant 0 : i32
    %c0_i32_0 = arith.constant 0 : i32
    %c0_i32_1 = arith.constant 0 : i32
    return %c0_i32, %c0_i32_0 : i32, i32
  }
  func.func @transform_23(%arg0: i32) -> (i32, i32) {
    %c0_i32 = arith.constant 0 : i32
    %c0_i32_0 = arith.constant 0 : i32
    %c0_i32_1 = arith.constant 0 : i32
    return %c0_i32, %c0_i32_0 : i32, i32
  }
}

</mosaic_0001>

<bundles_post_ra>
// kernel: decoder_forward.1
= control target key start
LH: loop header
LB: loop body
LE: loop exit
PB: predicated region body
PF: predicated region fallthrough
CT: control target
= control target key end

     0   :  { %s6593_s0 = inlined_call_operand.hbm [shape: f32[2,16], index: 0, kind: input, shape index: {}]   ;;  %s6594_s1 = inlined_call_operand.hbm [shape: f32[16,128], index: 1, kind: input, shape index: {}]   ;;  %s6595_s2 = inlined_call_operand.vmem [shape: f32[1,128], index: 2, kind: input, shape index: {}]   ;;  %s6596_s3 = inlined_call_operand.vmem [shape: f32[4,128,256], index: 3, kind: input, shape index: {}]   ;;  %s6597_s4 = inlined_call_operand.vmem [shape: f32[4,8,2], index: 4, kind: input, shape index: {}]   ;;  %s6598_s5 = inlined_call_operand.hbm [shape: f32[1,256], index: 5, kind: input, shape index: {}]   ;;  %s6599_s6 = inlined_call_operand.hbm [shape: f32[1,64], index: 6, kind: input, shape index: {}]   ;;  %s6600_s7 = inlined_call_operand.hbm [shape: f32[1,64], index: 7, kind: input, shape index: {}]   ;;  %s6601_s8 = inlined_call_operand.vmem [shape: f32[256,64], index: 8, kind: input, shape index: {}]   ;;  %s6602_s9 = inlined_call_operand.hbm [shape: f32[64,256], index: 9, kind: input, shape index: {}]   ;;  %s6603_s10 = inlined_call_operand.hbm [shape: f32[3,256,256], index: 10, kind: input, shape index: {}]   ;;  %s6604_s11 = inlined_call_operand.vmem [shape: f32[3,14,8], index: 11, kind: input, shape index: {}]   ;;  %s6605_s12 = inlined_call_operand.hbm [shape: f32[1,256], index: 12, kind: input, shape index: {}]   ;;  %s6606_s13 = inlined_call_operand.hbm [shape: f32[1,32], index: 13, kind: input, shape index: {}]   ;;  %s6607_s14 = inlined_call_operand.hbm [shape: f32[1,32], index: 14, kind: input, shape index: {}]   ;;  %s6608_s15 = inlined_call_operand.vmem [shape: f32[256,32], index: 15, kind: input, shape index: {}]   ;;  %s6609_s16 = inlined_call_operand.hbm [shape: f32[32,256], index: 16, kind: input, shape index: {}]   ;;  %s6610_s17 = inlined_call_operand.hbm [shape: f32[3,256,256], index: 17, kind: input, shape index: {}]   ;;  %s6611_s18 = inlined_call_operand.vmem [shape: f32[3,28,14], index: 18, kind: input, shape index: {}]   ;;  %s6612_s19 = inlined_call_operand.hbm [shape: f32[1,256], index: 19, kind: input, shape index: {}]   ;;  %s6613_s20 = inlined_call_operand.hbm [shape: f32[3,256,128], index: 20, kind: input, shape index: {}]   ;;  %s6614_s21 = inlined_call_operand.vmem [shape: f32[3,56,28], index: 21, kind: input, shape index: {}]   ;;  %s6615_s22 = inlined_call_operand.vmem [shape: f32[1,128], index: 22, kind: input, shape index: {}]   ;;  %s6616_s23 = inlined_call_operand.vmem [shape: f32[56,128], index: 23, kind: output, shape index: {}]  }
   0x1   :  { %6619 = sst [smem:[#allocation32_spill]] %s6593_s0 }
   0x2   :  { %6620 = sst [smem:[#allocation33_spill]] %s6594_s1 }
   0x3   :  { %6621 = sst [smem:[#allocation34_spill]] %s6595_s2 }
   0x4   :  { %6622 = sst [smem:[#allocation35_spill]] %s6596_s3 }
   0x5   :  { %6623 = sst [smem:[#allocation36_spill]] %s6597_s4 }
   0x6   :  { %6624 = sst [smem:[#allocation37_spill]] %s6598_s5 }
   0x7   :  { %6625 = sst [smem:[#allocation38_spill]] %s6599_s6 }
   0x8   :  { %6626 = sst [smem:[#allocation39_spill]] %s6600_s7 }
   0x9   :  { %28 = vsyncpa [#allocation3], 0 }
   0xa   :  { %29 = vsyncpa [#allocation5], 0 }
   0xb   :  { %30 = vsyncpa [#allocation8], 0 }
   0xc   :  { %31 = vsyncpa [#allocation11], 0 }
   0xd   :  { %32 = vsyncpa [#allocation14], 0 }
   0xe   :  { %33 = vsyncpa [#allocation17], 0 }
   0xf   :  { %34 = vsyncpa [#allocation20], 0 }
  0x10   :  { %35 = vsyncpa [#allocation23], 0  ;;  %s5169_s4 = smov [#allocation4]  }
  0x11   :  { %s51_s30 = sshll.u32 %s5169_s4, 4  ;;  %s52_s30 = int_to_ptr.vmem [resolvable:$true] %s51_s30 }
  0x12   :  { %s4881_s24 = scalar_lea.vmem %s52_s30, 256  ;;  %p4886_p1 = scmp.lt.s32.totalorder %s52_s30, %s52_s30 }
  0x13   :  { %p4882_p0 = scmp.ne.s32.totalorder %s52_s30, %s4881_s24  ;;  %p4887_p2 = scmp.lt.s32.totalorder %s4881_s24, %s4881_s24 }
  0x15   :  { %p4888_p3 = por %p4887_p2, %p4886_p1 }
  0x17   :  { %p4889_p4 = pnand %p4888_p3, %p4882_p0 }
  0x19   :  { %4892 = shalt.err (!%p4889_p4)
}
  0x1a   :  { %s5170_s25 = smov 128   ;;  %s5171_s5 = smov 8  }
  0x1b   :  { %s6627_s2 = sld [smem:[#allocation33_spill]]  ;;  %s5172_s6 = smov [#allocation7]  }
  0x1c   :  { %s80_s27 = sshll.u32 %s5172_s6, 4  ;;  %s5173_s7 = smov [#allocation10]   ;;  %s81_s27 = int_to_ptr.vmem [resolvable:$true] %s80_s27 }
  0x1d   :  { %s101_s28 = sshll.u32 %s5173_s7, 4  ;;  %s4901_s29 = scalar_lea.vmem %s81_s27, 16  ;;  %s102_s28 = int_to_ptr.vmem [resolvable:$true] %s101_s28 }
  0x1e   :  { %p4902_p5 = scmp.ne.s32.totalorder %s81_s27, %s4901_s29  ;;  %s4905_s3 = scalar_lea.vmem %s81_s27, 32 }
  0x1f   :  { %p4906_p6 = scmp.lt.s32.totalorder %s81_s27, %s81_s27  ;;  %p4907_p7 = scmp.lt.s32.totalorder %s4905_s3, %s4901_s29 }
  0x21   :  { %57 = dma.hbm_to_vmem [thread:$0]  %s6627_s2, 256, %s52_s30, [#allocation5], %s5170_s25, %s5170_s25, %s5171_s5  }
  0x22   :  { %p4908_p8 = por %p4907_p7, %p4906_p6 }
  0x24   :  { %p4909_p9 = pnand %p4908_p8, %p4902_p5 }
  0x26   :  { %4912 = shalt.err (!%p4909_p9)
}
  0x27   :  { %s6628_s24 = sld [smem:[#allocation38_spill]]  ;;  %s4921_s1 = scalar_lea.vmem %s102_s28, 2048 }
  0x28   :  { %p4922_p10 = scmp.ne.s32.totalorder %s102_s28, %s4921_s1  ;;  %p4926_p11 = scmp.lt.s32.totalorder %s102_s28, %s102_s28 }
  0x29   :  { %p4927_p12 = scmp.lt.s32.totalorder %s4921_s1, %s4921_s1 }
  0x2b   :  { %p4928_p13 = por %p4927_p12, %p4926_p11 }
  0x2d   :  { %83 = dma.hbm_to_vmem [thread:$0]  %s6628_s24, 16, %s81_s27, [#allocation8]  }
  0x2e   :  { %p4929_p0 = pnand %p4928_p13, %p4922_p10 }
  0x30   :  { %4932 = shalt.err (!%p4929_p0)
}
  0x31   :  { %s5174_s30 = smov 256   ;;  %s5175_s26 = smov 16  }
  0x32   :  { %107 = dma.hbm_to_vmem [thread:$0]  %s6602_s9, 2048, %s102_s28, [#allocation11], %s5174_s30, %s5174_s30, %s5175_s26  }
  0x33   :  { %s5176_s7 = smov [#allocation13]   ;;  %s5177_s27 = smov [#allocation16]  }
  0x34   :  { %s128_s29 = sshll.u32 %s5176_s7, 4  ;;  %s148_s3 = sshll.u32 %s5177_s27, 4  ;;  %s129_s29 = int_to_ptr.vmem [resolvable:$true] %s128_s29  ;;  %s149_s3 = int_to_ptr.vmem [resolvable:$true] %s148_s3 }
  0x35   :  { %s4941_s0 = scalar_lea.vmem %s129_s29, 32  ;;  %p4946_p2 = scmp.lt.s32.totalorder %s129_s29, %s129_s29 }
  0x36   :  { %p4942_p1 = scmp.ne.s32.totalorder %s129_s29, %s4941_s0  ;;  %p4947_p3 = scmp.lt.s32.totalorder %s4941_s0, %s4941_s0 }
  0x38   :  { %p4948_p4 = por %p4947_p3, %p4946_p2 }
  0x3a   :  { %p4949_p5 = pnand %p4948_p4, %p4942_p1 }
  0x3c   :  { %4952 = shalt.err (!%p4949_p5)
}
  0x3d   :  { %131 = dma.hbm_to_vmem [thread:$0]  %s6605_s12, 32, %s129_s29, [#allocation14]  }
  0x3e   :  { %s4961_s1 = scalar_lea.vmem %s149_s3, 16  ;;  %s4965_s9 = scalar_lea.vmem %s149_s3, 32 }
  0x3f   :  { %p4962_p6 = scmp.ne.s32.totalorder %s149_s3, %s4961_s1  ;;  %p4966_p7 = scmp.lt.s32.totalorder %s149_s3, %s149_s3 }
  0x40   :  { %p4967_p8 = scmp.lt.s32.totalorder %s4965_s9, %s4961_s1 }
  0x42   :  { %p4968_p9 = por %p4967_p8, %p4966_p7 }
  0x44   :  { %p4969_p10 = pnand %p4968_p9, %p4962_p6 }
  0x46   :  { %4972 = shalt.err (!%p4969_p10)
}
  0x47   :  { %151 = dma.hbm_to_vmem [thread:$0]  %s6607_s14, 16, %s149_s3, [#allocation17]  }
  0x48   :  { %s5178_s6 = smov [#allocation19]   ;;  %s5179_s27 = smov [#allocation2]  }
  0x49   :  { %s171_s7 = sshll.u32 %s5178_s6, 4  ;;  %s42_s0 = sshll.u32 %s5179_s27, 4  ;;  %s172_s7 = int_to_ptr.vmem [resolvable:$true] %s171_s7  ;;  %s43_s0 = int_to_ptr.vmem [resolvable:$true] %s42_s0 }
  0x4a   :  { %s4981_s4 = scalar_lea.vmem %s172_s7, 24576  ;;  %p4986_p12 = scmp.lt.s32.totalorder %s172_s7, %s172_s7 }
  0x4b   :  { %p4982_p11 = scmp.ne.s32.totalorder %s172_s7, %s4981_s4  ;;  %p4987_p13 = scmp.lt.s32.totalorder %s4981_s4, %s4981_s4 }
  0x4d   :  { %p4988_p0 = por %p4987_p13, %p4986_p12 }
  0x4f   :  { %p4989_p1 = pnand %p4988_p0, %p4982_p11 }
  0x51   :  { %4992 = shalt.err (!%p4989_p1)
}
  0x52   :  { %177 = dma.hbm_to_vmem [thread:$0]  %s6610_s17, 24576, %s172_s7, [#allocation20], %s5174_s30, %s5174_s30, %s5175_s26  }
  0x53   :  { %s5001_s14 = scalar_lea.vmem %s43_s0, 32  ;;  %p5006_p3 = scmp.lt.s32.totalorder %s43_s0, %s43_s0 }
  0x54   :  { %p5002_p2 = scmp.ne.s32.totalorder %s43_s0, %s5001_s14  ;;  %p5007_p4 = scmp.lt.s32.totalorder %s5001_s14, %s5001_s14 }
  0x56   :  { %p5008_p5 = por %p5007_p4, %p5006_p3 }
  0x58   :  { %p5009_p6 = pnand %p5008_p5, %p5002_p2 }
  0x5a   :  { %5012 = shalt.err (!%p5009_p6)
}
  0x5b   :  { %s6629_s1 = sld [smem:[#allocation32_spill]]  ;;  %s5180_s9 = smov [#allocation6]  }
  0x5c   :  { %s70_s28 = sshll.u32 %s5180_s9, 4  ;;  %s5181_s2 = smov [#allocation9]   ;;  %s71_s28 = int_to_ptr.vmem [resolvable:$true] %s70_s28 }
  0x5d   :  { %s90_s6 = sshll.u32 %s5181_s2, 4  ;;  %s5021_s27 = scalar_lea.vmem %s71_s28, 32  ;;  %s91_s6 = int_to_ptr.vmem [resolvable:$true] %s90_s6 }
  0x5e   :  { %p5022_p7 = scmp.ne.s32.totalorder %s71_s28, %s5021_s27  ;;  %p5026_p8 = scmp.lt.s32.totalorder %s71_s28, %s71_s28 }
  0x5f   :  { %p5027_p9 = scmp.lt.s32.totalorder %s5021_s27, %s5021_s27 }
  0x61   :  { %45 = dma.hbm_to_vmem [thread:$0]  %s6629_s1, 32, %s43_s0, [#allocation3]  }
  0x62   :  { %p5028_p10 = por %p5027_p9, %p5026_p8 }
  0x64   :  { %p5029_p11 = pnand %p5028_p10, %p5022_p7 }
  0x66   :  { %5032 = shalt.err (!%p5029_p11)
}
  0x67   :  { %s6630_s4 = sld [smem:[#allocation37_spill]]  ;;  %s5041_s12 = scalar_lea.vmem %s91_s6, 16 }
  0x68   :  { %p5042_p12 = scmp.ne.s32.totalorder %s91_s6, %s5041_s12  ;;  %s5045_s0 = scalar_lea.vmem %s91_s6, 32 }
  0x69   :  { %p5046_p13 = scmp.lt.s32.totalorder %s91_s6, %s91_s6  ;;  %p5047_p0 = scmp.lt.s32.totalorder %s5045_s0, %s5041_s12 }
  0x6b   :  { %p5048_p1 = por %p5047_p0, %p5046_p13 }
  0x6d   :  { %73 = dma.hbm_to_vmem [thread:$0]  %s6630_s4, 32, %s71_s28, [#allocation5]  }
  0x6e   :  { %p5049_p2 = pnand %p5048_p1, %p5042_p12 }
  0x70   :  { %5052 = shalt.err (!%p5049_p2)
}
  0x71   :  { %s6631_s3 = sld [smem:[#allocation39_spill]]  ;;  %s5182_s24 = smov [#allocation12]  }
  0x72   :  { %s113_s1 = sshll.u32 %s5182_s24, 4  ;;  %s5183_s9 = smov [#allocation15]   ;;  %s114_s1 = int_to_ptr.vmem [resolvable:$true] %s113_s1 }
  0x73   :  { %s138_s2 = sshll.u32 %s5183_s9, 4  ;;  %s5061_s27 = scalar_lea.vmem %s114_s1, 24576  ;;  %s139_s2 = int_to_ptr.vmem [resolvable:$true] %s138_s2 }
  0x74   :  { %p5062_p3 = scmp.ne.s32.totalorder %s114_s1, %s5061_s27  ;;  %p5066_p4 = scmp.lt.s32.totalorder %s114_s1, %s114_s1 }
  0x75   :  { %p5067_p5 = scmp.lt.s32.totalorder %s5061_s27, %s5061_s27 }
  0x77   :  { %93 = dma.hbm_to_vmem [thread:$0]  %s6631_s3, 16, %s91_s6, [#allocation8]  }
  0x78   :  { %p5068_p6 = por %p5067_p5, %p5066_p4 }
  0x7a   :  { %p5069_p7 = pnand %p5068_p6, %p5062_p3 }
  0x7c   :  { %5072 = shalt.err (!%p5069_p7)
}
  0x7d   :  { %119 = dma.hbm_to_vmem [thread:$0]  %s6603_s10, 24576, %s114_s1, [#allocation11], %s5174_s30, %s5174_s30, %s5175_s26  }
  0x7e   :  { %s5081_s6 = scalar_lea.vmem %s139_s2, 16  ;;  %s5085_s7 = scalar_lea.vmem %s139_s2, 32 }
  0x7f   :  { %p5082_p8 = scmp.ne.s32.totalorder %s139_s2, %s5081_s6  ;;  %p5086_p9 = scmp.lt.s32.totalorder %s139_s2, %s139_s2 }
  0x80   :  { %p5087_p10 = scmp.lt.s32.totalorder %s5085_s7, %s5081_s6 }
  0x82   :  { %p5088_p11 = por %p5087_p10, %p5086_p9 }
  0x84   :  { %p5089_p12 = pnand %p5088_p11, %p5082_p8 }
  0x86   :  { %5092 = shalt.err (!%p5089_p12)
}
  0x87   :  { %141 = dma.hbm_to_vmem [thread:$0]  %s6606_s13, 16, %s139_s2, [#allocation14]  }
  0x88   :  { %s5184_s0 = smov [#allocation18]   ;;  %s5185_s14 = smov [#allocation21]  }
  0x89   :  { %s159_s29 = sshll.u32 %s5184_s0, 4  ;;  %s186_s3 = sshll.u32 %s5185_s14, 4  ;;  %s160_s29 = int_to_ptr.vmem [resolvable:$true] %s159_s29  ;;  %s187_s3 = int_to_ptr.vmem [resolvable:$true] %s186_s3 }
  0x8a   :  { %s5101_s24 = scalar_lea.vmem %s160_s29, 1024  ;;  %p5106_p0 = scmp.lt.s32.totalorder %s160_s29, %s160_s29 }
  0x8b   :  { %p5102_p13 = scmp.ne.s32.totalorder %s160_s29, %s5101_s24  ;;  %p5107_p1 = scmp.lt.s32.totalorder %s5101_s24, %s5101_s24 }
  0x8d   :  { %p5108_p2 = por %p5107_p1, %p5106_p0 }
  0x8f   :  { %p5109_p3 = pnand %p5108_p2, %p5102_p13 }
  0x91   :  { %5112 = shalt.err (!%p5109_p3)
}
  0x92   :  { %165 = dma.hbm_to_vmem [thread:$0]  %s6609_s16, 1024, %s160_s29, [#allocation17], %s5174_s30, %s5174_s30, %s5175_s26  }
  0x93   :  { %s5121_s13 = scalar_lea.vmem %s187_s3, 32  ;;  %p5126_p5 = scmp.lt.s32.totalorder %s187_s3, %s187_s3 }
  0x94   :  { %p5122_p4 = scmp.ne.s32.totalorder %s187_s3, %s5121_s13  ;;  %p5127_p6 = scmp.lt.s32.totalorder %s5121_s13, %s5121_s13 }
  0x96   :  { %p5128_p7 = por %p5127_p6, %p5126_p5 }
  0x98   :  { %p5129_p8 = pnand %p5128_p7, %p5122_p4 }
  0x9a   :  { %5132 = shalt.err (!%p5129_p8)
}
  0x9b   :  { %189 = dma.hbm_to_vmem [thread:$0]  %s6612_s19, 32, %s187_s3, [#allocation20]  }
  0x9c   :  { %s5186_s27 = smov [#allocation22]  }
  0x9d   :  { %s195_s28 = sshll.u32 %s5186_s27, 4  ;;  %s196_s28 = int_to_ptr.vmem [resolvable:$true] %s195_s28 }
  0x9e   :  { %s5141_s17 = scalar_lea.vmem %s196_s28, 12288  ;;  %p5146_p10 = scmp.lt.s32.totalorder %s196_s28, %s196_s28 }
  0x9f   :  { %p5142_p9 = scmp.ne.s32.totalorder %s196_s28, %s5141_s17  ;;  %p5147_p11 = scmp.lt.s32.totalorder %s5141_s17, %s5141_s17 }
  0xa1   :  { %p5148_p12 = por %p5147_p11, %p5146_p10 }
  0xa3   :  { %p5149_p13 = pnand %p5148_p12, %p5142_p9 }
  0xa5   :  { %5152 = shalt.err (!%p5149_p13)
}
  0xa6   :  { %201 = dma.hbm_to_vmem [thread:$0]  %s6613_s20, 12288, %s196_s28, [#allocation23], %s5170_s25, %s5170_s25, %s5171_s5  }
  0xa7   :  { %5153 = dma.done.wait [#allocation3], 32  }
  0xa8   :  { %5154 = vsyncadd [#allocation3], 4294967264 }
  0xa9   :  { %5155 = dma.done.wait [#allocation5], 288  }
  0xaa   :  { %5156 = vsyncadd [#allocation5], 4294967008 }
  0xab   :  { %5157 = dma.done.wait [#allocation8], 32  }
  0xac   :  { %5158 = vsyncadd [#allocation8], 4294967264 }
  0xad   :  { %5159 = dma.done.wait [#allocation11], 26624  }
  0xae   :  { %5160 = vsyncadd [#allocation11], 4294940672 }
  0xaf   :  { %5161 = dma.done.wait [#allocation14], 48  }
  0xb0   :  { %5162 = vsyncadd [#allocation14], 4294967248 }
  0xb1   :  { %5163 = dma.done.wait [#allocation17], 1040  }
  0xb2   :  { %5164 = vsyncadd [#allocation17], 4294966256 }
  0xb3   :  { %5165 = dma.done.wait [#allocation20], 24608  }
  0xb4   :  { %5166 = vsyncadd [#allocation20], 4294942688 }
  0xb5   :  { %5167 = dma.done.wait [#allocation23], 12288  }
  0xb6   :  { %5168 = vsyncadd [#allocation23], 4294955008  ;;  %v5187_v0 = vmov 0.0   ;;  %vm5188_vm0 = vmmov 0   ;;  %v250_v1 = vld [vmem:[#allocation4 + $0x8] sm:$0xff]  ;;  %v249_v2 = vld [vmem:[#allocation4] sm:$0xff] }
  0xb7   :  { %4719 = vmatprep.subr.mxu0 %v5187_v0  ;;  %4723 = vmatprep.mubr.msk.f32.mxu0 %vm5188_vm0, %v5187_v0  ;;  %v248_v3 = vld [vmem:[#allocation2] sm:$0x3]  ;;  %vm258_vm1 = vcmask 130048   ;;  %s6632_s25 = sld [smem:[#allocation35_spill]]  ;;  %vm547_vm2 = vcmask 1041408   ;;  %vm543_vm3 = vcmask 15360  }
  0xb8   :  { %429 = vmatprep.mubr.f32.mxu1 %v5187_v0  ;;  %4720 = vmatpush3.msra.mxu0 %v250_v1  ;;  %s6633_s13 = sld [smem:[#allocation34_spill]]  ;;  %vm1321_vm4 = vcmask 523264   ;;  %vm1768_vm5 = vcmask 64512   ;;  %vm2177_vm6 = vcmask 1045504   ;;  %vm2406_vm7 = vcmask 261120  }
  0xb9   :  { %4721 = vmatprep.subr.mxu0 %v5187_v0  ;;  %s6634_s27 = sld [smem:[#allocation36_spill]]  ;;  %vm2875_vm8 = vcmask 113664   ;;  %vm3652_vm9 = vcmask 1043456   ;;  %vm3630_vm10 = vcmask 228352  }
  0xba   :  { %4722 = vmatpush3.msra.mxu0 %v249_v2 }
  0xbb   :  { %4724 = vmatmul.mubr.msk.f32.vlgmr.msra.gmra.mxu0 %vm258_vm1, %v248_v3 }
  0xbc   :  { %534 = vmatprep.mubr.f32.mxu0 %v5187_v0 }
  0xbd   :  { %v364_v4 = vld [vmem:[%s6632_s25 + $0xf8] sm:$0xff]  ;;  %v363_v6 = vld [vmem:[%s6632_s25 + $0xf0] sm:$0xff]  ;;  %v362_v8 = vld [vmem:[%s6632_s25 + $0xe8] sm:$0xff] }
  0xbe   :  { %v4245_v5 = vld [vmem:[%s6632_s25 + $0x1f8] sm:$0xff]  ;;  %365 = vmatprep.subr.mxu1 %v364_v4  ;;  %v4244_v7 = vld [vmem:[%s6632_s25 + $0x1f0] sm:$0xff]  ;;  %v4243_v9 = vld [vmem:[%s6632_s25 + $0x1e8] sm:$0xff] }
  0xbf   :  { %366 = vmatpush1.msra.mxu1 %v363_v6  ;;  %v361_v10 = vld [vmem:[%s6632_s25 + $0xe0] sm:$0xff]  ;;  %470 = vmatprep.subr.mxu0 %v4245_v5  ;;  %v360_v12 = vld [vmem:[%s6632_s25 + $0xd8] sm:$0xff]  ;;  %v359_v14 = vld [vmem:[%s6632_s25 + $0xd0] sm:$0xff] }
  0xc0   :  { %v4242_v11 = vld [vmem:[%s6632_s25 + $0x1e0] sm:$0xff]  ;;  %471 = vmatpush1.msra.mxu0 %v4244_v7  ;;  %367 = vmatprep.subr.mxu1 %v362_v8  ;;  %v4241_v13 = vld [vmem:[%s6632_s25 + $0x1d8] sm:$0xff]  ;;  %v4240_v15 = vld [vmem:[%s6632_s25 + $0x1d0] sm:$0xff] }
  0xc1   :  { %472 = vmatprep.subr.mxu0 %v4243_v9  ;;  %368 = vmatpush1.msra.mxu1 %v361_v10  ;;  %v358_v16 = vld [vmem:[%s6632_s25 + $0xc8] sm:$0xff]  ;;  %v357_v18 = vld [vmem:[%s6632_s25 + $0xc0] sm:$0xff]  ;;  %v356_v20 = vld [vmem:[%s6632_s25 + $0xb8] sm:$0xff] }
  0xc2   :  { %473 = vmatpush1.msra.mxu0 %v4242_v11  ;;  %369 = vmatprep.subr.mxu1 %v360_v12  ;;  %v4239_v17 = vld [vmem:[%s6632_s25 + $0x1c8] sm:$0xff]  ;;  %v4238_v19 = vld [vmem:[%s6632_s25 + $0x1c0] sm:$0xff]  ;;  %v4237_v21 = vld [vmem:[%s6632_s25 + $0x1b8] sm:$0xff] }
  0xc3   :  { %474 = vmatprep.subr.mxu0 %v4241_v13  ;;  %370 = vmatpush1.msra.mxu1 %v359_v14  ;;  %v355_v22 = vld [vmem:[%s6632_s25 + $0xb0] sm:$0xff]  ;;  %v354_v24 = vld [vmem:[%s6632_s25 + $0xa8] sm:$0xff]  ;;  %v353_v26 = vld [vmem:[%s6632_s25 + $0xa0] sm:$0xff] }
  0xc4   :  { %475 = vmatpush1.msra.mxu0 %v4240_v15  ;;  %371 = vmatprep.subr.mxu1 %v358_v16  ;;  %v4236_v23 = vld [vmem:[%s6632_s25 + $0x1b0] sm:$0xff]  ;;  %v4235_v25 = vld [vmem:[%s6632_s25 + $0x1a8] sm:$0xff]  ;;  %v4234_v27 = vld [vmem:[%s6632_s25 + $0x1a0] sm:$0xff] }
  0xc5   :  { %476 = vmatprep.subr.mxu0 %v4239_v17  ;;  %372 = vmatpush1.msra.mxu1 %v357_v18  ;;  %v352_v28 = vld [vmem:[%s6632_s25 + $0x98] sm:$0xff]  ;;  %v351_v30 = vld [vmem:[%s6632_s25 + $0x90] sm:$0xff]  ;;  %v350_v32 = vld [vmem:[%s6632_s25 + $0x88] sm:$0xff] }
  0xc6   :  { %477 = vmatpush1.msra.mxu0 %v4238_v19  ;;  %373 = vmatprep.subr.mxu1 %v356_v20  ;;  %v4233_v29 = vld [vmem:[%s6632_s25 + $0x198] sm:$0xff]  ;;  %v4232_v31 = vld [vmem:[%s6632_s25 + $0x190] sm:$0xff]  ;;  %v4231_v33 = vld [vmem:[%s6632_s25 + $0x188] sm:$0xff] }
  0xc7   :  { %478 = vmatprep.subr.mxu0 %v4237_v21  ;;  %374 = vmatpush1.msra.mxu1 %v355_v22  ;;  %v349_v34 = vld [vmem:[%s6632_s25 + $0x80] sm:$0xff]  ;;  %v348_v36 = vld [vmem:[%s6632_s25 + $0x78] sm:$0xff]  ;;  %v347_v38 = vld [vmem:[%s6632_s25 + $0x70] sm:$0xff] }
  0xc8   :  { %479 = vmatpush1.msra.mxu0 %v4236_v23  ;;  %375 = vmatprep.subr.mxu1 %v354_v24  ;;  %v4230_v35 = vld [vmem:[%s6632_s25 + $0x180] sm:$0xff]  ;;  %v4229_v37 = vld [vmem:[%s6632_s25 + $0x178] sm:$0xff]  ;;  %v4228_v39 = vld [vmem:[%s6632_s25 + $0x170] sm:$0xff] }
  0xc9   :  { %480 = vmatprep.subr.mxu0 %v4235_v25  ;;  %376 = vmatpush1.msra.mxu1 %v353_v26  ;;  %v346_v40 = vld [vmem:[%s6632_s25 + $0x68] sm:$0xff]  ;;  %v345_v42 = vld [vmem:[%s6632_s25 + $0x60] sm:$0xff]  ;;  %v344_v44 = vld [vmem:[%s6632_s25 + $0x58] sm:$0xff] }
  0xca   :  { %481 = vmatpush1.msra.mxu0 %v4234_v27  ;;  %377 = vmatprep.subr.mxu1 %v352_v28  ;;  %v4227_v41 = vld [vmem:[%s6632_s25 + $0x168] sm:$0xff]  ;;  %v4226_v43 = vld [vmem:[%s6632_s25 + $0x160] sm:$0xff]  ;;  %v4225_v45 = vld [vmem:[%s6632_s25 + $0x158] sm:$0xff] }
  0xcb   :  { %482 = vmatprep.subr.mxu0 %v4233_v29  ;;  %378 = vmatpush1.msra.mxu1 %v351_v30  ;;  %v343_v46 = vld [vmem:[%s6632_s25 + $0x50] sm:$0xff]  ;;  %v342_v48 = vld [vmem:[%s6632_s25 + $0x48] sm:$0xff]  ;;  %v341_v50 = vld [vmem:[%s6632_s25 + $0x40] sm:$0xff] }
  0xcc   :  { %483 = vmatpush1.msra.mxu0 %v4232_v31  ;;  %379 = vmatprep.subr.mxu1 %v350_v32  ;;  %v4224_v47 = vld [vmem:[%s6632_s25 + $0x150] sm:$0xff]  ;;  %v4223_v49 = vld [vmem:[%s6632_s25 + $0x148] sm:$0xff]  ;;  %v4222_v51 = vld [vmem:[%s6632_s25 + $0x140] sm:$0xff] }
  0xcd   :  { %484 = vmatprep.subr.mxu0 %v4231_v33  ;;  %380 = vmatpush1.msra.mxu1 %v349_v34  ;;  %v340_v52 = vld [vmem:[%s6632_s25 + $0x38] sm:$0xff]  ;;  %v339_v54 = vld [vmem:[%s6632_s25 + $0x30] sm:$0xff]  ;;  %v338_v56 = vld [vmem:[%s6632_s25 + $0x28] sm:$0xff] }
  0xce   :  { %485 = vmatpush1.msra.mxu0 %v4230_v35  ;;  %381 = vmatprep.subr.mxu1 %v348_v36  ;;  %v4221_v53 = vld [vmem:[%s6632_s25 + $0x138] sm:$0xff]  ;;  %v4220_v55 = vld [vmem:[%s6632_s25 + $0x130] sm:$0xff]  ;;  %v4219_v57 = vld [vmem:[%s6632_s25 + $0x128] sm:$0xff] }
  0xcf   :  { %486 = vmatprep.subr.mxu0 %v4229_v37  ;;  %382 = vmatpush1.msra.mxu1 %v347_v38  ;;  %v337_v58 = vld [vmem:[%s6632_s25 + $0x20] sm:$0xff]  ;;  %v336_v60 = vld [vmem:[%s6632_s25 + $0x18] sm:$0xff]  ;;  %v335_v62 = vld [vmem:[%s6632_s25 + $0x10] sm:$0xff] }
  0xd0   :  { %487 = vmatpush1.msra.mxu0 %v4228_v39  ;;  %383 = vmatprep.subr.mxu1 %v346_v40  ;;  %v4218_v59 = vld [vmem:[%s6632_s25 + $0x120] sm:$0xff]  ;;  %v4217_v61 = vld [vmem:[%s6632_s25 + $0x118] sm:$0xff]  ;;  %v4216_v63 = vld [vmem:[%s6632_s25 + $0x110] sm:$0xff] }
  0xd1   :  { %488 = vmatprep.subr.mxu0 %v4227_v41  ;;  %384 = vmatpush1.msra.mxu1 %v345_v42  ;;  %v334_v1 = vld [vmem:[%s6632_s25 + $0x8] sm:$0xff]  ;;  %v333_v3 = vld [vmem:[%s6632_s25] sm:$0xff]  ;;  %v4284_v16 = vld [vmem:[%s6632_s25 + $0x2f8] sm:$0xff] }
  0xd2   :  { %489 = vmatpush1.msra.mxu0 %v4226_v43  ;;  %385 = vmatprep.subr.mxu1 %v344_v44  ;;  %v4215_v2 = vld [vmem:[%s6632_s25 + $0x108] sm:$0xff]  ;;  %v4214_v4 = vld [vmem:[%s6632_s25 + $0x100] sm:$0xff]  ;;  %v4283_v17 = vld [vmem:[%s6632_s25 + $0x2f0] sm:$0xff] }
  0xd3   :  { %490 = vmatprep.subr.mxu0 %v4225_v45  ;;  %386 = vmatpush1.msra.mxu1 %v343_v46  ;;  %v4212_v5 = vld [vmem:[%s6633_s13] ss:$0 sm:$0xff]  ;;  %v4246_v14 = vld [vmem:[%s6634_s27 + $0x8] sm:$0xff]  ;;  %v4280_v20 = vld [vmem:[%s6632_s25 + $0x2d8] sm:$0xff] }
  0xd4   :  { %491 = vmatpush1.msra.mxu0 %v4224_v47  ;;  %387 = vmatprep.subr.mxu1 %v342_v48  ;;  %v436_v15 = vld [vmem:[%s6634_s27] sm:$0xff]  ;;  %v4282_v18 = vld [vmem:[%s6632_s25 + $0x2e8] sm:$0xff]  ;;  %v4279_v21 = vld [vmem:[%s6632_s25 + $0x2d0] sm:$0xff] }
  0xd5   :  { %492 = vmatprep.subr.mxu0 %v4223_v49  ;;  %388 = vmatpush1.msra.mxu1 %v341_v50  ;;  %v4281_v19 = vld [vmem:[%s6632_s25 + $0x2e0] sm:$0xff]  ;;  %v4278_v22 = vld [vmem:[%s6632_s25 + $0x2c8] sm:$0xff]  ;;  %v4276_v24 = vld [vmem:[%s6632_s25 + $0x2b8] sm:$0xff] }
  0xd6   :  { %493 = vmatpush1.msra.mxu0 %v4222_v51  ;;  %389 = vmatprep.subr.mxu1 %v340_v52  ;;  %v4277_v23 = vld [vmem:[%s6632_s25 + $0x2c0] sm:$0xff]  ;;  %v4275_v25 = vld [vmem:[%s6632_s25 + $0x2b0] sm:$0xff]  ;;  %v4274_v26 = vld [vmem:[%s6632_s25 + $0x2a8] sm:$0xff] }
  0xd7   :  { %494 = vmatprep.subr.mxu0 %v4221_v53  ;;  %390 = vmatpush1.msra.mxu1 %v339_v54  ;;  %v4273_v27 = vld [vmem:[%s6632_s25 + $0x2a0] sm:$0xff]  ;;  %v4272_v28 = vld [vmem:[%s6632_s25 + $0x298] sm:$0xff]  ;;  %v4271_v29 = vld [vmem:[%s6632_s25 + $0x290] sm:$0xff] }
  0xd8   :  { %495 = vmatpush1.msra.mxu0 %v4220_v55  ;;  %391 = vmatprep.subr.mxu1 %v338_v56  ;;  %v4270_v30 = vld [vmem:[%s6632_s25 + $0x288] sm:$0xff]  ;;  %v4269_v31 = vld [vmem:[%s6632_s25 + $0x280] sm:$0xff]  ;;  %v4268_v32 = vld [vmem:[%s6632_s25 + $0x278] sm:$0xff] }
  0xd9   :  { %496 = vmatprep.subr.mxu0 %v4219_v57  ;;  %392 = vmatpush1.msra.mxu1 %v337_v58  ;;  %v4267_v33 = vld [vmem:[%s6632_s25 + $0x270] sm:$0xff]  ;;  %v4266_v34 = vld [vmem:[%s6632_s25 + $0x268] sm:$0xff]  ;;  %v4265_v35 = vld [vmem:[%s6632_s25 + $0x260] sm:$0xff] }
  0xda   :  { %497 = vmatpush1.msra.mxu0 %v4218_v59  ;;  %393 = vmatprep.subr.mxu1 %v336_v60  ;;  %v4264_v36 = vld [vmem:[%s6632_s25 + $0x258] sm:$0xff]  ;;  %v4263_v37 = vld [vmem:[%s6632_s25 + $0x250] sm:$0xff]  ;;  %v4262_v38 = vld [vmem:[%s6632_s25 + $0x248] sm:$0xff] }
  0xdb   :  { %498 = vmatprep.subr.mxu0 %v4217_v61  ;;  %394 = vmatpush1.msra.mxu1 %v335_v62  ;;  %v4261_v39 = vld [vmem:[%s6632_s25 + $0x240] sm:$0xff]  ;;  %v4260_v40 = vld [vmem:[%s6632_s25 + $0x238] sm:$0xff]  ;;  %v4259_v41 = vld [vmem:[%s6632_s25 + $0x230] sm:$0xff] }
  0xdc   :  { %499 = vmatpush1.msra.mxu0 %v4216_v63  ;;  %395 = vmatprep.subr.mxu1 %v334_v1  ;;  %v4258_v42 = vld [vmem:[%s6632_s25 + $0x228] sm:$0xff]  ;;  %v4257_v43 = vld [vmem:[%s6632_s25 + $0x220] sm:$0xff]  ;;  %v4256_v44 = vld [vmem:[%s6632_s25 + $0x218] sm:$0xff] }
  0xdd   :  { %500 = vmatprep.subr.mxu0 %v4215_v2  ;;  %396 = vmatpush1.msra.mxu1 %v333_v3  ;;  %v4255_v45 = vld [vmem:[%s6632_s25 + $0x210] sm:$0xff]  ;;  %v4254_v46 = vld [vmem:[%s6632_s25 + $0x208] sm:$0xff]  ;;  %v4253_v47 = vld [vmem:[%s6632_s25 + $0x200] sm:$0xff] }
  0xde   :  { %501 = vmatpush1.msra.mxu0 %v4214_v4  ;;  %v4285_v54 = vld [vmem:[%s6634_s27 + $0x10] sm:$0xff]  ;;  %v4320_v55 = vld [vmem:[%s6632_s25 + $0x3f8] sm:$0xff]  ;;  %v4318_v57 = vld [vmem:[%s6632_s25 + $0x3e8] sm:$0xff] }
  0xdf   :  { %v4319_v56 = vld [vmem:[%s6632_s25 + $0x3f0] sm:$0xff]  ;;  %v4317_v58 = vld [vmem:[%s6632_s25 + $0x3e0] sm:$0xff]  ;;  %v4316_v59 = vld [vmem:[%s6632_s25 + $0x3d8] sm:$0xff] }
  0xe0   :  { %v4315_v60 = vld [vmem:[%s6632_s25 + $0x3d0] sm:$0xff]  ;;  %v4314_v61 = vld [vmem:[%s6632_s25 + $0x3c8] sm:$0xff]  ;;  %v4313_v62 = vld [vmem:[%s6632_s25 + $0x3c0] sm:$0xff] }
  0xe1   :  { %v4312_v63 = vld [vmem:[%s6632_s25 + $0x3b8] sm:$0xff]  ;;  %v4311_v1 = vld [vmem:[%s6632_s25 + $0x3b0] sm:$0xff]  ;;  %v4310_v2 = vld [vmem:[%s6632_s25 + $0x3a8] sm:$0xff] }
  0xe2   :  { %v4309_v3 = vld [vmem:[%s6632_s25 + $0x3a0] sm:$0xff]  ;;  %v4308_v4 = vld [vmem:[%s6632_s25 + $0x398] sm:$0xff] }
 0x17b   :  { %v328_v6 = vpop.f32.mrf.mxu0 }
 0x17c   :  { %v329_v7 = vadd.f32 %v4212_v5, %v328_v6  ;;  %v4307_v5 = vld [vmem:[%s6632_s25 + $0x390] sm:$0xff]  ;;  %v4306_v6 = vld [vmem:[%s6632_s25 + $0x388] sm:$0xff] }
 0x17d   :  { %v4725_v8 = vpop.f32.mrf.mxu0 }
 0x17e   :  { %v5570_v9 = vmax.f32 %v329_v7, 0.0  ;;  %v4305_v7 = vld [vmem:[%s6632_s25 + $0x380] sm:$0xff]  ;;  %v4304_v8 = vld [vmem:[%s6632_s25 + $0x378] sm:$0xff] }
 0x180   :  { %430 = vmatmul.mubr.f32.vlgmr.msra.gmra.mxu1 %v5570_v9  ;;  %535 = vmatmul.mubr.f32.vlgmr.msra.gmra.mxu0 %v5570_v9 }
 0x181   :  { %618 = vmatprep.mubr.f32.mxu1 %v5187_v0  ;;  %698 = vmatprep.mubr.f32.mxu0 %v5187_v0 }
 0x240   :  { %v431_v10 = vpop.f32.mrf.mxu1  ;;  %v536_v11 = vpop.f32.mrf.mxu0 }
 0x242   :  { %v433_v12 = vpop.f32.mrf.mxu1  ;;  %v538_v13 = vpop.f32.mrf.mxu0 }
 0x243   :  { %4247 = vmatprep.subr.msk.mxu1 %vm547_vm2, %v538_v13  ;;  %4250 = vmatprep.subr.msk.mxu0 %vm547_vm2, %v433_v12  ;;  %v4301_v12 = vld [vmem:[%s6632_s25 + $0x360] sm:$0xff]  ;;  %v4300_v13 = vld [vmem:[%s6632_s25 + $0x358] sm:$0xff] }
 0x244   :  { %4248 = vmatpush1.msk.msra.mxu1 %vm547_vm2, %v536_v11  ;;  %4251 = vmatpush1.msk.msra.mxu0 %vm547_vm2, %v431_v10  ;;  %v4303_v10 = vld [vmem:[%s6632_s25 + $0x370] sm:$0xff]  ;;  %v4302_v11 = vld [vmem:[%s6632_s25 + $0x368] sm:$0xff] }
 0x245   :  { %4249 = vmatmul.mubr.msk.f32.vlgmr.msra.gmra.mxu1 %vm543_vm3, %v4246_v14  ;;  %4252 = vmatmul.mubr.msk.f32.vlgmr.msra.gmra.mxu0 %vm543_vm3, %v436_v15  ;;  %v4299_v14 = vld [vmem:[%s6632_s25 + $0x350] sm:$0xff]  ;;  %v4298_v15 = vld [vmem:[%s6632_s25 + $0x348] sm:$0xff] }
 0x246   :  { %738 = vmatprep.subr.mxu1 %v4284_v16  ;;  %802 = vmatprep.mubr.f32.mxu1 %v5187_v0  ;;  %v4297_v16 = vld [vmem:[%s6632_s25 + $0x340] sm:$0xff] }
 0x247   :  { %739 = vmatpush1.msra.mxu1 %v4283_v17  ;;  %884 = vmatprep.mubr.f32.mxu0 %v5187_v0  ;;  %v4296_v17 = vld [vmem:[%s6632_s25 + $0x338] sm:$0xff] }
 0x248   :  { %740 = vmatprep.subr.mxu1 %v4282_v18  ;;  %v4295_v18 = vld [vmem:[%s6632_s25 + $0x330] sm:$0xff] }
 0x249   :  { %741 = vmatpush1.msra.mxu1 %v4281_v19  ;;  %v4294_v19 = vld [vmem:[%s6632_s25 + $0x328] sm:$0xff] }
 0x24a   :  { %742 = vmatprep.subr.mxu1 %v4280_v20  ;;  %v4293_v20 = vld [vmem:[%s6632_s25 + $0x320] sm:$0xff] }
 0x24b   :  { %743 = vmatpush1.msra.mxu1 %v4279_v21  ;;  %v4292_v21 = vld [vmem:[%s6632_s25 + $0x318] sm:$0xff] }
 0x24c   :  { %744 = vmatprep.subr.mxu1 %v4278_v22  ;;  %v4291_v22 = vld [vmem:[%s6632_s25 + $0x310] sm:$0xff] }
 0x24d   :  { %745 = vmatpush1.msra.mxu1 %v4277_v23  ;;  %v4290_v23 = vld [vmem:[%s6632_s25 + $0x308] sm:$0xff] }
 0x24e   :  { %746 = vmatprep.subr.mxu1 %v4276_v24  ;;  %v4289_v24 = vld [vmem:[%s6632_s25 + $0x300] sm:$0xff] }
 0x24f   :  { %747 = vmatpush1.msra.mxu1 %v4275_v25  ;;  %v1152_v25 = vld [vmem:[%s6601_s8 + $0xf8] sm:$0xff] }
 0x250   :  { %748 = vmatprep.subr.mxu1 %v4274_v26  ;;  %v1136_v26 = vld [vmem:[%s6601_s8 + $0x78] sm:$0xff] }
 0x251   :  { %749 = vmatpush1.msra.mxu1 %v4273_v27  ;;  %v1151_v27 = vld [vmem:[%s6601_s8 + $0xf0] sm:$0xff] }
 0x252   :  { %750 = vmatprep.subr.mxu1 %v4272_v28  ;;  %v1135_v28 = vld [vmem:[%s6601_s8 + $0x70] sm:$0xff] }
 0x253   :  { %751 = vmatpush1.msra.mxu1 %v4271_v29  ;;  %v1134_v29 = vld [vmem:[%s6601_s8 + $0x68] sm:$0xff] }
 0x254   :  { %752 = vmatprep.subr.mxu1 %v4270_v30  ;;  %v1149_v30 = vld [vmem:[%s6601_s8 + $0xe0] sm:$0xff] }
 0x255   :  { %753 = vmatpush1.msra.mxu1 %v4269_v31  ;;  %v1133_v31 = vld [vmem:[%s6601_s8 + $0x60] sm:$0xff] }
 0x256   :  { %754 = vmatprep.subr.mxu1 %v4268_v32  ;;  %v1148_v32 = vld [vmem:[%s6601_s8 + $0xd8] sm:$0xff] }
 0x257   :  { %755 = vmatpush1.msra.mxu1 %v4267_v33  ;;  %v1132_v33 = vld [vmem:[%s6601_s8 + $0x58] sm:$0xff] }
 0x258   :  { %756 = vmatprep.subr.mxu1 %v4266_v34  ;;  %v1147_v34 = vld [vmem:[%s6601_s8 + $0xd0] sm:$0xff] }
 0x259   :  { %757 = vmatpush1.msra.mxu1 %v4265_v35  ;;  %v1131_v35 = vld [vmem:[%s6601_s8 + $0x50] sm:$0xff] }
 0x25a   :  { %758 = vmatprep.subr.mxu1 %v4264_v36 }
 0x25b   :  { %759 = vmatpush1.msra.mxu1 %v4263_v37 }
 0x25c   :  { %760 = vmatprep.subr.mxu1 %v4262_v38 }
 0x25d   :  { %761 = vmatpush1.msra.mxu1 %v4261_v39 }
 0x25e   :  { %762 = vmatprep.subr.mxu1 %v4260_v40 }
 0x25f   :  { %763 = vmatpush1.msra.mxu1 %v4259_v41 }
 0x260   :  { %764 = vmatprep.subr.mxu1 %v4258_v42 }
 0x261   :  { %765 = vmatpush1.msra.mxu1 %v4257_v43 }
 0x262   :  { %766 = vmatprep.subr.mxu1 %v4256_v44  ;;  %v4321_v44 = vld [vmem:[%s6634_s27 + $0x18] sm:$0xff] }
 0x263   :  { %767 = vmatpush1.msra.mxu1 %v4255_v45  ;;  %v1146_v45 = vld [vmem:[%s6601_s8 + $0xc8] sm:$0xff] }
 0x264   :  { %768 = vmatprep.subr.mxu1 %v4254_v46  ;;  %v1130_v46 = vld [vmem:[%s6601_s8 + $0x48] sm:$0xff] }
 0x265   :  { %769 = vmatpush1.msra.mxu1 %v4253_v47  ;;  %v1145_v47 = vld [vmem:[%s6601_s8 + $0xc0] sm:$0xff] }
 0x266   :  { %803 = vmatmul.mubr.f32.vlgmr.msra.gmra.mxu1 %v5570_v9 }
 0x267   :  { %1072 = vmatprep.mubr.f32.mxu1 %v5187_v0 }
 0x305   :  { %v620_v48 = vpop.f32.mrf.mxu1  ;;  %v700_v49 = vpop.f32.mrf.mxu0 }
 0x306   :  { %v5688_v50 = vadd.f32 %v700_v49, %v620_v48  ;;  %v1129_v48 = vld [vmem:[%s6601_s8 + $0x40] sm:$0xff]  ;;  %v1144_v49 = vld [vmem:[%s6601_s8 + $0xb8] sm:$0xff] }
 0x307   :  { %v5690_v51 = vpop.f32.mrf.mxu1  ;;  %v702_v36 = vpop.f32.mrf.mxu0 }
 0x308   :  { %v703_v38 = vadd.f32 %v702_v36, %v5690_v51  ;;  %v1143_v51 = vld [vmem:[%s6601_s8 + $0xb0] sm:$0xff] }
 0x326   :  { %v804_v52 = vpop.f32.mrf.mxu1 }
 0x328   :  { %v806_v53 = vpop.f32.mrf.mxu1 }
 0x329   :  { %4286 = vmatprep.subr.msk.mxu0 %vm547_vm2, %v806_v53  ;;  %v1142_v53 = vld [vmem:[%s6601_s8 + $0xa8] sm:$0xff] }
 0x32a   :  { %4287 = vmatpush1.msk.msra.mxu0 %vm547_vm2, %v804_v52  ;;  %v1127_v52 = vld [vmem:[%s6601_s8 + $0x30] sm:$0xff] }
 0x32b   :  { %4288 = vmatmul.mubr.msk.f32.vlgmr.msra.gmra.mxu0 %vm543_vm3, %v4285_v54  ;;  %926 = vmatprep.subr.mxu0 %v4320_v55  ;;  %v1126_v54 = vld [vmem:[%s6601_s8 + $0x28] sm:$0xff]  ;;  %v1141_v55 = vld [vmem:[%s6601_s8 + $0xa0] sm:$0xff] }
 0x32c   :  { %927 = vmatpush1.msra.mxu0 %v4319_v56  ;;  %990 = vmatprep.mubr.f32.mxu0 %v5187_v0  ;;  %v1125_v56 = vld [vmem:[%s6601_s8 + $0x20] sm:$0xff] }
 0x32d   :  { %928 = vmatprep.subr.mxu0 %v4318_v57  ;;  %v1140_v57 = vld [vmem:[%s6601_s8 + $0x98] sm:$0xff] }
 0x32e   :  { %929 = vmatpush1.msra.mxu0 %v4317_v58  ;;  %v1124_v58 = vld [vmem:[%s6601_s8 + $0x18] sm:$0xff] }
 0x32f   :  { %930 = vmatprep.subr.mxu0 %v4316_v59  ;;  %v1139_v59 = vld [vmem:[%s6601_s8 + $0x90] sm:$0xff] }
 0x330   :  { %931 = vmatpush1.msra.mxu0 %v4315_v60  ;;  %v1123_v60 = vld [vmem:[%s6601_s8 + $0x10] sm:$0xff] }
 0x331   :  { %932 = vmatprep.subr.mxu0 %v4314_v61  ;;  %v1138_v61 = vld [vmem:[%s6601_s8 + $0x88] sm:$0xff] }
 0x332   :  { %933 = vmatpush1.msra.mxu0 %v4313_v62  ;;  %v1122_v62 = vld [vmem:[%s6601_s8 + $0x8] sm:$0xff] }
 0x333   :  { %934 = vmatprep.subr.mxu0 %v4312_v63  ;;  %v1137_v63 = vld [vmem:[%s6601_s8 + $0x80] sm:$0xff] }
 0x334   :  { %935 = vmatpush1.msra.mxu0 %v4311_v1  ;;  %v1121_v1 = vld [vmem:[%s6601_s8] sm:$0xff] }
 0x335   :  { %936 = vmatprep.subr.mxu0 %v4310_v2  ;;  %v1083_v2 = vlaneseq }
 0x336   :  { %937 = vmatpush1.msra.mxu0 %v4309_v3 }
 0x337   :  { %938 = vmatprep.subr.mxu0 %v4308_v4  ;;  %v1084_v3 = vshrl.u32 %v1083_v2, 7 }
 0x338   :  { %939 = vmatpush1.msra.mxu0 %v4307_v5  ;;  %v1081_v5 = vld [vmem:[#allocation6] sm:$0x3] }
 0x339   :  { %940 = vmatprep.subr.mxu0 %v4306_v6  ;;  %v5904_v4 = vsub.s32 0, %v1084_v3  ;;  %v5906_v6 = vsub.s32 1, %v1084_v3 }
 0x33a   :  { %941 = vmatpush1.msra.mxu0 %v4305_v7 }
 0x33b   :  { %942 = vmatprep.subr.mxu0 %v4304_v8  ;;  %v1086_v7 = vrot.slane %v1081_v5, %v5904_v4 }
 0x33c   :  { %943 = vmatpush1.msra.mxu0 %v4303_v10 }
 0x33d   :  { %944 = vmatprep.subr.mxu0 %v4302_v11  ;;  %v1090_v11 = vrot.slane %v1081_v5, %v5906_v6 }
 0x33e   :  { %945 = vmatpush1.msra.mxu0 %v4301_v12 }
 0x33f   :  { %946 = vmatprep.subr.mxu0 %v4300_v13 }
 0x340   :  { %947 = vmatpush1.msra.mxu0 %v4299_v14 }
 0x341   :  { %948 = vmatprep.subr.mxu0 %v4298_v15 }
 0x342   :  { %949 = vmatpush1.msra.mxu0 %v4297_v16 }
 0x343   :  { %950 = vmatprep.subr.mxu0 %v4296_v17 }
 0x344   :  { %951 = vmatpush1.msra.mxu0 %v4295_v18 }
 0x345   :  { %952 = vmatprep.subr.mxu0 %v4294_v19 }
 0x346   :  { %953 = vmatpush1.msra.mxu0 %v4293_v20 }
 0x347   :  { %954 = vmatprep.subr.mxu0 %v4292_v21 }
 0x348   :  { %955 = vmatpush1.msra.mxu0 %v4291_v22 }
 0x349   :  { %956 = vmatprep.subr.mxu0 %v4290_v23 }
 0x34a   :  { %957 = vmatpush1.msra.mxu0 %v4289_v24 }
 0x34b   :  { %991 = vmatmul.mubr.f32.vlgmr.msra.gmra.mxu0 %v5570_v9  ;;  %4449 = vmatprep.subr.mxu0 %v1152_v25  ;;  %v1150_v9 = vld [vmem:[%s6601_s8 + $0xe8] sm:$0xff] }
 0x34c   :  { %4450 = vmatpush3.msra.mxu0 %v1136_v26 }
 0x34d   :  { %4451 = vmatprep.subr.mxu0 %v1151_v27 }
 0x34e   :  { %4452 = vmatpush3.msra.mxu0 %v1135_v28 }
 0x34f   :  { %4453 = vmatprep.subr.mxu0 %v1150_v9 }
 0x350   :  { %4454 = vmatpush3.msra.mxu0 %v1134_v29 }
 0x351   :  { %4455 = vmatprep.subr.mxu0 %v1149_v30 }
 0x352   :  { %4456 = vmatpush3.msra.mxu0 %v1133_v31 }
 0x353   :  { %4457 = vmatprep.subr.mxu0 %v1148_v32 }
 0x354   :  { %4458 = vmatpush3.msra.mxu0 %v1132_v33 }
 0x355   :  { %4459 = vmatprep.subr.mxu0 %v1147_v34 }
 0x356   :  { %4460 = vmatpush3.msra.mxu0 %v1131_v35 }
 0x357   :  { %4461 = vmatprep.subr.mxu0 %v1146_v45 }
 0x358   :  { %4462 = vmatpush3.msra.mxu0 %v1130_v46 }
 0x359   :  { %4463 = vmatprep.subr.mxu0 %v1145_v47 }
 0x35a   :  { %4464 = vmatpush3.msra.mxu0 %v1129_v48 }
 0x35b   :  { %4465 = vmatprep.subr.mxu0 %v1144_v49 }
 0x3eb   :  { %v886_v37 = vpop.f32.mrf.mxu0 }
 0x3ec   :  { %v5834_v39 = vadd.f32 %v886_v37, %v5688_v50  ;;  %v1128_v50 = vld [vmem:[%s6601_s8 + $0x38] sm:$0xff] }
 0x3ed   :  { %v888_v40 = vpop.f32.mrf.mxu0  ;;  %4466 = vmatpush3.msra.mxu0 %v1128_v50 }
 0x3ee   :  { %v5836_v41 = vadd.f32 %v888_v40, %v703_v38  ;;  %4467 = vmatprep.subr.mxu0 %v1143_v51 }
 0x3ef   :  { %4468 = vmatpush3.msra.mxu0 %v1127_v52 }
 0x3f0   :  { %4469 = vmatprep.subr.mxu0 %v1142_v53 }
 0x3f1   :  { %4470 = vmatpush3.msra.mxu0 %v1126_v54 }
 0x3f2   :  { %4471 = vmatprep.subr.mxu0 %v1141_v55 }
 0x3f3   :  { %4472 = vmatpush3.msra.mxu0 %v1125_v56 }
 0x3f4   :  { %4473 = vmatprep.subr.mxu0 %v1140_v57 }
 0x3f5   :  { %4474 = vmatpush3.msra.mxu0 %v1124_v58 }
 0x3f6   :  { %4475 = vmatprep.subr.mxu0 %v1139_v59 }
 0x3f7   :  { %4476 = vmatpush3.msra.mxu0 %v1123_v60 }
 0x3f8   :  { %4477 = vmatprep.subr.mxu0 %v1138_v61 }
 0x3f9   :  { %4478 = vmatpush3.msra.mxu0 %v1122_v62 }
 0x3fa   :  { %4479 = vmatprep.subr.mxu0 %v1137_v63 }
 0x3fb   :  { %4480 = vmatpush3.msra.mxu0 %v1121_v1 }
 0x40b   :  { %v992_v42 = vpop.f32.mrf.mxu0 }
 0x40d   :  { %v994_v43 = vpop.f32.mrf.mxu0 }
 0x40e   :  { %4322 = vmatprep.subr.msk.mxu1 %vm547_vm2, %v994_v43  ;;  %v1318_v43 = vld [vmem:[#allocation10 + $0x68] sm:$0xff] }
 0x40f   :  { %4323 = vmatpush1.msk.msra.mxu1 %vm547_vm2, %v992_v42  ;;  %v1319_v42 = vld [vmem:[#allocation10 + $0x70] sm:$0xff] }
 0x410   :  { %4324 = vmatmul.mubr.msk.f32.vlgmr.msra.gmra.mxu1 %vm543_vm3, %v4321_v44  ;;  %4414 = vmatprep.subr.mxu1 %v1152_v25  ;;  %v1317_v44 = vld [vmem:[#allocation10 + $0x60] sm:$0xff] }
 0x411   :  { %4415 = vmatpush3.msra.mxu1 %v1136_v26 }
 0x412   :  { %4416 = vmatprep.subr.mxu1 %v1151_v27 }
 0x413   :  { %4417 = vmatpush3.msra.mxu1 %v1135_v28 }
 0x414   :  { %4418 = vmatprep.subr.mxu1 %v1150_v9 }
 0x415   :  { %4419 = vmatpush3.msra.mxu1 %v1134_v29 }
 0x416   :  { %4420 = vmatprep.subr.mxu1 %v1149_v30 }
 0x417   :  { %4421 = vmatpush3.msra.mxu1 %v1133_v31 }
 0x418   :  { %4422 = vmatprep.subr.mxu1 %v1148_v32 }
 0x419   :  { %4423 = vmatpush3.msra.mxu1 %v1132_v33 }
 0x41a   :  { %4424 = vmatprep.subr.mxu1 %v1147_v34 }
 0x41b   :  { %4425 = vmatpush3.msra.mxu1 %v1131_v35 }
 0x41c   :  { %4426 = vmatprep.subr.mxu1 %v1146_v45  ;;  %v1316_v45 = vld [vmem:[#allocation10 + $0x58] sm:$0xff] }
 0x41d   :  { %4427 = vmatpush3.msra.mxu1 %v1130_v46  ;;  %v1315_v46 = vld [vmem:[#allocation10 + $0x50] sm:$0xff] }
 0x41e   :  { %4428 = vmatprep.subr.mxu1 %v1145_v47  ;;  %v1314_v47 = vld [vmem:[#allocation10 + $0x48] sm:$0xff] }
 0x41f   :  { %4429 = vmatpush3.msra.mxu1 %v1129_v48  ;;  %v1313_v48 = vld [vmem:[#allocation10 + $0x40] sm:$0xff] }
 0x420   :  { %4430 = vmatprep.subr.mxu1 %v1144_v49  ;;  %v1312_v49 = vld [vmem:[#allocation10 + $0x38] sm:$0xff] }
 0x421   :  { %4431 = vmatpush3.msra.mxu1 %v1128_v50  ;;  %v1311_v50 = vld [vmem:[#allocation10 + $0x30] sm:$0xff] }
 0x422   :  { %4432 = vmatprep.subr.mxu1 %v1143_v51  ;;  %v1310_v51 = vld [vmem:[#allocation10 + $0x28] sm:$0xff] }
 0x423   :  { %4433 = vmatpush3.msra.mxu1 %v1127_v52  ;;  %v1309_v52 = vld [vmem:[#allocation10 + $0x20] sm:$0xff] }
 0x424   :  { %4434 = vmatprep.subr.mxu1 %v1142_v53  ;;  %v1308_v53 = vld [vmem:[#allocation10 + $0x18] sm:$0xff] }
 0x425   :  { %4435 = vmatpush3.msra.mxu1 %v1126_v54  ;;  %v1307_v54 = vld [vmem:[#allocation10 + $0x10] sm:$0xff] }
 0x426   :  { %4436 = vmatprep.subr.mxu1 %v1141_v55  ;;  %v1306_v55 = vld [vmem:[#allocation10 + $0x8] sm:$0xff] }
 0x427   :  { %4437 = vmatpush3.msra.mxu1 %v1125_v56  ;;  %v1305_v56 = vld [vmem:[#allocation10] sm:$0xff] }
 0x428   :  { %4438 = vmatprep.subr.mxu1 %v1140_v57  ;;  %v1523_v57 = vld [vmem:[#allocation12 + $0xf8] sm:$0xff] }
 0x429   :  { %4439 = vmatpush3.msra.mxu1 %v1124_v58  ;;  %v1661_v58 = vld [vmem:[#allocation12 + $0x2f8] sm:$0xff] }
 0x42a   :  { %4440 = vmatprep.subr.mxu1 %v1139_v59 }
 0x42b   :  { %4441 = vmatpush3.msra.mxu1 %v1123_v60 }
 0x42c   :  { %4442 = vmatprep.subr.mxu1 %v1138_v61 }
 0x42d   :  { %4443 = vmatpush3.msra.mxu1 %v1122_v62 }
 0x42e   :  { %4444 = vmatprep.subr.mxu1 %v1137_v63 }
 0x42f   :  { %4445 = vmatpush3.msra.mxu1 %v1121_v1 }
 0x4d0   :  { %v1074_v8 = vpop.f32.mrf.mxu1 }
 0x4d1   :  { %v1079_v10 = vadd.f32 %v1074_v8, %v5834_v39 }
 0x4d2   :  { %v1076_v12 = vpop.f32.mrf.mxu1 }
 0x4d3   :  { %v5911_v13 = vadd.f32 %v1086_v7, %v1079_v10  ;;  %v1080_v14 = vadd.f32 %v1076_v12, %v5836_v41  ;;  %v1320_v41 = vld [vmem:[#allocation10 + $0x78] sm:$0xff] }
 0x4d4   :  { %1341 = vmatprep.subr.mxu1 %v1320_v41  ;;  %1415 = vmatprep.subr.mxu0 %v1320_v41  ;;  %v1509_v41 = vld [vmem:[#allocation12 + $0x88] sm:$0xff] }
 0x4d5   :  { %v1095_v15 = vrot.slane %v5911_v13, 4  ;;  %v1107_v16 = vmul.f32 %v5911_v13, %v5911_v13  ;;  %v5917_v17 = vadd.f32 %v1090_v11, %v1080_v14  ;;  %v1300_v11 = vld [vmem:[#allocation7] sm:$0x1] }
 0x4d7   :  { %v1096_v18 = vadd.f32 %v1095_v15, %v5911_v13  ;;  %v1109_v19 = vrot.slane %v1107_v16, 4  ;;  %v1101_v20 = vrot.slane %v5917_v17, 4  ;;  %v1108_v21 = vmul.f32 %v5917_v17, %v5917_v17  ;;  %v1522_v15 = vld [vmem:[#allocation12 + $0xf0] sm:$0xff] }
 0x4d9   :  { %v1102_v22 = vadd.f32 %v1101_v20, %v5917_v17  ;;  %v1097_v23 = vrot.slane %v1096_v18, 2  ;;  %v1115_v24 = vrot.slane %v1108_v21, 4  ;;  %v1110_v25 = vadd.f32 %v1109_v19, %v1107_v16  ;;  %v1302_v16 = vld [vmem:[#allocation9] sm:$0x1]  ;;  %v1520_v20 = vld [vmem:[#allocation12 + $0xe0] sm:$0xff] }
 0x4db   :  { %v1103_v26 = vrot.slane %v1102_v22, 2  ;;  %v1098_v27 = vadd.f32 %v1097_v23, %v1096_v18  ;;  %v1116_v28 = vadd.f32 %v1115_v24, %v1108_v21  ;;  %v1111_v9 = vrot.slane %v1110_v25, 2  ;;  %v1521_v18 = vld [vmem:[#allocation12 + $0xe8] sm:$0xff]  ;;  %v1519_v21 = vld [vmem:[#allocation12 + $0xd8] sm:$0xff]  ;;  %v1660_v23 = vld [vmem:[#allocation12 + $0x2f0] sm:$0xff] }
 0x4dc   :  { %v1518_v24 = vld [vmem:[#allocation12 + $0xd0] sm:$0xff] }
 0x4dd   :  { %v1104_v29 = vadd.f32 %v1103_v26, %v1102_v22  ;;  %v1117_v30 = vrot.slane %v1116_v28, 2  ;;  %v1112_v31 = vadd.f32 %v1111_v9, %v1110_v25  ;;  %v1099_v32 = vrot.slane %v1098_v27, 1  ;;  %v1659_v25 = vld [vmem:[#allocation12 + $0x2e8] sm:$0xff]  ;;  %v1657_v9 = vld [vmem:[#allocation12 + $0x2d8] sm:$0xff] }
 0x4de   :  { %v1517_v26 = vld [vmem:[#allocation12 + $0xc8] sm:$0xff] }
 0x4df   :  { %v1105_v33 = vrot.slane %v1104_v29, 1  ;;  %v1118_v34 = vadd.f32 %v1117_v30, %v1116_v28  ;;  %v1113_v35 = vrot.slane %v1112_v31, 1  ;;  %v1100_v38 = vadd.f32 %v1099_v32, %v1098_v27  ;;  %v1658_v27 = vld [vmem:[#allocation12 + $0x2e0] sm:$0xff]  ;;  %v1656_v30 = vld [vmem:[#allocation12 + $0x2d0] sm:$0xff]  ;;  %v1655_v32 = vld [vmem:[#allocation12 + $0x2c8] sm:$0xff] }
 0x4e0   :  { %v1516_v28 = vld [vmem:[#allocation12 + $0xc0] sm:$0xff] }
 0x4e1   :  { %v1106_v36 = vadd.f32 %v1105_v33, %v1104_v29  ;;  %v1119_v37 = vrot.slane %v1118_v34, 1  ;;  %v1114_v40 = vadd.f32 %v1113_v35, %v1112_v31  ;;  %v1515_v29 = vld [vmem:[#allocation12 + $0xb8] sm:$0xff]  ;;  %v1514_v31 = vld [vmem:[#allocation12 + $0xb0] sm:$0xff]  ;;  %v1513_v33 = vld [vmem:[#allocation12 + $0xa8] sm:$0xff] }
 0x4e2   :  { %v1512_v35 = vld [vmem:[#allocation12 + $0xa0] sm:$0xff] }
 0x4e3   :  { %1217 = vmatprep.mubr.f32.mxu1 %v1106_v36  ;;  %v1120_v39 = vadd.f32 %v1119_v37, %v1118_v34  ;;  %v1654_v34 = vld [vmem:[#allocation12 + $0x2c0] sm:$0xff]  ;;  %v1653_v36 = vld [vmem:[#allocation12 + $0x2b8] sm:$0xff] }
 0x4e4   :  { %1218 = vmatmul.mubr.f32.vlgmr.msra.gmra.mxu1 %v1100_v38  ;;  %v1511_v37 = vld [vmem:[#allocation12 + $0x98] sm:$0xff]  ;;  %v1652_v38 = vld [vmem:[#allocation12 + $0x2b0] sm:$0xff] }
 0x4e5   :  { %1287 = vmatprep.mubr.f32.mxu0 %v1120_v39  ;;  %1389 = vmatprep.mubr.f32.mxu1 %v5187_v0  ;;  %v1510_v39 = vld [vmem:[#allocation12 + $0x90] sm:$0xff] }
 0x4e6   :  { %1288 = vmatmul.mubr.f32.vlgmr.msra.gmra.mxu0 %v1114_v40  ;;  %1342 = vmatpush1.msra.mxu1 %v1319_v42  ;;  %v1651_v40 = vld [vmem:[#allocation12 + $0x2a8] sm:$0xff] }
 0x4e7   :  { %1463 = vmatprep.mubr.f32.mxu0 %v5187_v0  ;;  %1416 = vmatpush1.msra.mxu0 %v1319_v42  ;;  %v1650_v42 = vld [vmem:[#allocation12 + $0x2a0] sm:$0xff] }
 0x4e8   :  { %1343 = vmatprep.subr.mxu1 %v1318_v43  ;;  %1417 = vmatprep.subr.mxu0 %v1318_v43  ;;  %v1508_v43 = vld [vmem:[#allocation12 + $0x80] sm:$0xff] }
 0x4e9   :  { %1344 = vmatpush1.msra.mxu1 %v1317_v44  ;;  %1418 = vmatpush1.msra.mxu0 %v1317_v44  ;;  %v1649_v44 = vld [vmem:[#allocation12 + $0x298] sm:$0xff] }
 0x4ea   :  { %1345 = vmatprep.subr.mxu1 %v1316_v45  ;;  %1419 = vmatprep.subr.mxu0 %v1316_v45  ;;  %v1507_v45 = vld [vmem:[#allocation12 + $0x78] sm:$0xff] }
 0x4eb   :  { %1346 = vmatpush1.msra.mxu1 %v1315_v46  ;;  %1420 = vmatpush1.msra.mxu0 %v1315_v46  ;;  %v1648_v46 = vld [vmem:[#allocation12 + $0x290] sm:$0xff] }
 0x4ec   :  { %1347 = vmatprep.subr.mxu1 %v1314_v47  ;;  %1421 = vmatprep.subr.mxu0 %v1314_v47  ;;  %v1506_v47 = vld [vmem:[#allocation12 + $0x70] sm:$0xff] }
 0x4ed   :  { %1348 = vmatpush1.msra.mxu1 %v1313_v48  ;;  %1422 = vmatpush1.msra.mxu0 %v1313_v48  ;;  %v1647_v48 = vld [vmem:[#allocation12 + $0x288] sm:$0xff] }
 0x4ee   :  { %1349 = vmatprep.subr.mxu1 %v1312_v49  ;;  %1423 = vmatprep.subr.mxu0 %v1312_v49  ;;  %v1505_v49 = vld [vmem:[#allocation12 + $0x68] sm:$0xff] }
 0x4ef   :  { %1350 = vmatpush1.msra.mxu1 %v1311_v50  ;;  %1424 = vmatpush1.msra.mxu0 %v1311_v50  ;;  %v1646_v50 = vld [vmem:[#allocation12 + $0x280] sm:$0xff] }
 0x4f0   :  { %1351 = vmatprep.subr.mxu1 %v1310_v51  ;;  %1425 = vmatprep.subr.mxu0 %v1310_v51  ;;  %v1504_v51 = vld [vmem:[#allocation12 + $0x60] sm:$0xff] }
 0x4f1   :  { %1352 = vmatpush1.msra.mxu1 %v1309_v52  ;;  %1426 = vmatpush1.msra.mxu0 %v1309_v52  ;;  %v1645_v52 = vld [vmem:[#allocation12 + $0x278] sm:$0xff] }
 0x4f2   :  { %1353 = vmatprep.subr.mxu1 %v1308_v53  ;;  %1427 = vmatprep.subr.mxu0 %v1308_v53  ;;  %v1503_v53 = vld [vmem:[#allocation12 + $0x58] sm:$0xff] }
 0x4f3   :  { %1354 = vmatpush1.msra.mxu1 %v1307_v54  ;;  %1428 = vmatpush1.msra.mxu0 %v1307_v54  ;;  %v1644_v54 = vld [vmem:[#allocation12 + $0x270] sm:$0xff] }
 0x4f4   :  { %1355 = vmatprep.subr.mxu1 %v1306_v55  ;;  %1429 = vmatprep.subr.mxu0 %v1306_v55  ;;  %v1502_v55 = vld [vmem:[#allocation12 + $0x50] sm:$0xff] }
 0x4f5   :  { %1356 = vmatpush1.msra.mxu1 %v1305_v56  ;;  %1430 = vmatpush1.msra.mxu0 %v1305_v56  ;;  %v1643_v56 = vld [vmem:[#allocation12 + $0x268] sm:$0xff] }
 0x4f6   :  { %1556 = vmatprep.subr.mxu1 %v1523_v57  ;;  %1694 = vmatprep.subr.mxu0 %v1661_v58  ;;  %v1501_v57 = vld [vmem:[#allocation12 + $0x48] sm:$0xff]  ;;  %v1642_v58 = vld [vmem:[#allocation12 + $0x260] sm:$0xff] }
 0x5a4   :  { %v4446_v59 = vpop.f32.mrf.mxu1 }
 0x5a6   :  { %v4447_v60 = vpop.f32.mrf.mxu1  ;;  %v4481_v61 = vpop.f32.mrf.mxu0 }
 0x5a7   :  { %v4448_v62 = vadd.f32 %v4447_v60, %v4446_v59  ;;  %v1500_v59 = vld [vmem:[#allocation12 + $0x40] sm:$0xff]  ;;  %v1641_v60 = vld [vmem:[#allocation12 + $0x258] sm:$0xff] }
 0x5a8   :  { %v4482_v63 = vpop.f32.mrf.mxu0 }
 0x5a9   :  { %v1293_v1 = vmul.f32 0.03125, %v4448_v62  ;;  %v4483_v2 = vadd.f32 %v4482_v63, %v4481_v61  ;;  %v1499_v61 = vld [vmem:[#allocation12 + $0x38] sm:$0xff]  ;;  %v1640_v62 = vld [vmem:[#allocation12 + $0x250] sm:$0xff] }
 0x5aa   :  { %v1498_v63 = vld [vmem:[#allocation12 + $0x30] sm:$0xff] }
 0x5ab   :  { %v1295_v3 = vmul.f32 %v1293_v1, %v1293_v1  ;;  %v1294_v5 = vmul.f32 0.03125, %v4483_v2  ;;  %v1497_v2 = vld [vmem:[#allocation12 + $0x28] sm:$0xff] }
 0x5ad   :  { %v1296_v7 = vsub.f32 %v1294_v5, %v1295_v3  ;;  %v1638_v3 = vld [vmem:[#allocation12 + $0x240] sm:$0xff] }
 0x5ae   :  { %v1496_v5 = vld [vmem:[#allocation12 + $0x20] sm:$0xff] }
 0x5af   :  { %v1297_v8 = vmax.f32 %v1296_v7, 0.0  ;;  %v1637_v7 = vld [vmem:[#allocation12 + $0x238] sm:$0xff] }
 0x5b1   :  { %v1298_v10 = vadd.f32 1e-05, %v1297_v8  ;;  %v1495_v8 = vld [vmem:[#allocation12 + $0x18] sm:$0xff] }
 0x5b3   :  { %4841 = vrsqrt.f32 %v1298_v10  ;;  %v1636_v10 = vld [vmem:[#allocation12 + $0x230] sm:$0xff] }
 0x5c0   :  { %v4842_v12 = vpop.eup %4841 }
 0x5c1   :  { %v1301_v14 = vmul.f32 %v4842_v12, %v1300_v11  ;;  %v1494_v11 = vld [vmem:[#allocation12 + $0x10] sm:$0xff]  ;;  %v1635_v12 = vld [vmem:[#allocation12 + $0x228] sm:$0xff] }
 0x5c3   :  { %4325 = vmatmul.mubr.msk.f32.vlgmr.msra.gmra.mxu1 %vm1321_vm4, %v1301_v14  ;;  %v1303_v19 = vmul.f32 %v1301_v14, %v1293_v1  ;;  %v1639_v1 = vld [vmem:[#allocation12 + $0x248] sm:$0xff] }
 0x5c4   :  { %1557 = vmatpush1.msra.mxu1 %v1522_v15  ;;  %v1493_v14 = vld [vmem:[#allocation12 + $0x8] sm:$0xff]  ;;  %v1634_v15 = vld [vmem:[#allocation12 + $0x220] sm:$0xff] }
 0x5c5   :  { %v1304_v22 = vsub.f32 %v1302_v16, %v1303_v19  ;;  %1558 = vmatprep.subr.mxu1 %v1521_v18  ;;  %v1492_v16 = vld [vmem:[#allocation12] sm:$0xff]  ;;  %v1633_v18 = vld [vmem:[#allocation12 + $0x218] sm:$0xff] }
 0x5c6   :  { %1559 = vmatpush1.msra.mxu1 %v1520_v20  ;;  %v1555_v19 = vld [vmem:[#allocation12 + $0x1f8] sm:$0xff]  ;;  %v1632_v20 = vld [vmem:[#allocation12 + $0x210] sm:$0xff] }
 0x5c7   :  { %4326 = vmatmul.mubr.msk.f32.vlgmr.msra.gmra.mxu0 %vm1321_vm4, %v1304_v22  ;;  %1560 = vmatprep.subr.mxu1 %v1519_v21  ;;  %v1554_v21 = vld [vmem:[#allocation12 + $0x1f0] sm:$0xff]  ;;  %v1631_v22 = vld [vmem:[#allocation12 + $0x208] sm:$0xff] }
 0x5c8   :  { %1695 = vmatpush1.msra.mxu0 %v1660_v23  ;;  %1561 = vmatpush1.msra.mxu1 %v1518_v24  ;;  %v1553_v23 = vld [vmem:[#allocation12 + $0x1e8] sm:$0xff]  ;;  %v1630_v24 = vld [vmem:[#allocation12 + $0x200] sm:$0xff] }
 0x5c9   :  { %1696 = vmatprep.subr.mxu0 %v1659_v25  ;;  %1562 = vmatprep.subr.mxu1 %v1517_v26  ;;  %v1552_v25 = vld [vmem:[#allocation12 + $0x1e0] sm:$0xff]  ;;  %v1693_v26 = vld [vmem:[#allocation12 + $0x3f8] sm:$0xff] }
 0x5ca   :  { %1697 = vmatpush1.msra.mxu0 %v1658_v27  ;;  %1563 = vmatpush1.msra.mxu1 %v1516_v28  ;;  %v1551_v27 = vld [vmem:[#allocation12 + $0x1d8] sm:$0xff]  ;;  %v1692_v28 = vld [vmem:[#allocation12 + $0x3f0] sm:$0xff] }
 0x5cb   :  { %1698 = vmatprep.subr.mxu0 %v1657_v9  ;;  %1564 = vmatprep.subr.mxu1 %v1515_v29  ;;  %v1550_v9 = vld [vmem:[#allocation12 + $0x1d0] sm:$0xff]  ;;  %v1691_v29 = vld [vmem:[#allocation12 + $0x3e8] sm:$0xff] }
 0x5cc   :  { %1699 = vmatpush1.msra.mxu0 %v1656_v30  ;;  %1565 = vmatpush1.msra.mxu1 %v1514_v31  ;;  %v1549_v30 = vld [vmem:[#allocation12 + $0x1c8] sm:$0xff]  ;;  %v1690_v31 = vld [vmem:[#allocation12 + $0x3e0] sm:$0xff] }
 0x5cd   :  { %1700 = vmatprep.subr.mxu0 %v1655_v32  ;;  %1566 = vmatprep.subr.mxu1 %v1513_v33  ;;  %v1548_v32 = vld [vmem:[#allocation12 + $0x1c0] sm:$0xff]  ;;  %v1689_v33 = vld [vmem:[#allocation12 + $0x3d8] sm:$0xff] }
 0x5ce   :  { %1701 = vmatpush1.msra.mxu0 %v1654_v34  ;;  %1567 = vmatpush1.msra.mxu1 %v1512_v35  ;;  %v1547_v34 = vld [vmem:[#allocation12 + $0x1b8] sm:$0xff]  ;;  %v1688_v35 = vld [vmem:[#allocation12 + $0x3d0] sm:$0xff] }
 0x5cf   :  { %1702 = vmatprep.subr.mxu0 %v1653_v36  ;;  %1568 = vmatprep.subr.mxu1 %v1511_v37  ;;  %v1546_v36 = vld [vmem:[#allocation12 + $0x1b0] sm:$0xff]  ;;  %v1687_v37 = vld [vmem:[#allocation12 + $0x3c8] sm:$0xff] }
 0x5d0   :  { %1703 = vmatpush1.msra.mxu0 %v1652_v38  ;;  %1569 = vmatpush1.msra.mxu1 %v1510_v39  ;;  %v1545_v38 = vld [vmem:[#allocation12 + $0x1a8] sm:$0xff]  ;;  %v1686_v39 = vld [vmem:[#allocation12 + $0x3c0] sm:$0xff] }
 0x5d1   :  { %1704 = vmatprep.subr.mxu0 %v1651_v40  ;;  %1570 = vmatprep.subr.mxu1 %v1509_v41  ;;  %v1544_v40 = vld [vmem:[#allocation12 + $0x1a0] sm:$0xff]  ;;  %v1685_v41 = vld [vmem:[#allocation12 + $0x3b8] sm:$0xff] }
 0x5d2   :  { %1705 = vmatpush1.msra.mxu0 %v1650_v42  ;;  %1571 = vmatpush1.msra.mxu1 %v1508_v43  ;;  %v1543_v42 = vld [vmem:[#allocation12 + $0x198] sm:$0xff]  ;;  %v1684_v43 = vld [vmem:[#allocation12 + $0x3b0] sm:$0xff] }
 0x5d3   :  { %1706 = vmatprep.subr.mxu0 %v1649_v44  ;;  %1572 = vmatprep.subr.mxu1 %v1507_v45  ;;  %v1542_v44 = vld [vmem:[#allocation12 + $0x190] sm:$0xff]  ;;  %v1683_v45 = vld [vmem:[#allocation12 + $0x3a8] sm:$0xff] }
 0x5d4   :  { %1707 = vmatpush1.msra.mxu0 %v1648_v46  ;;  %1573 = vmatpush1.msra.mxu1 %v1506_v47  ;;  %v1541_v46 = vld [vmem:[#allocation12 + $0x188] sm:$0xff]  ;;  %v1682_v47 = vld [vmem:[#allocation12 + $0x3a0] sm:$0xff] }
 0x5d5   :  { %1708 = vmatprep.subr.mxu0 %v1647_v48  ;;  %1574 = vmatprep.subr.mxu1 %v1505_v49  ;;  %v1540_v48 = vld [vmem:[#allocation12 + $0x180] sm:$0xff]  ;;  %v1681_v49 = vld [vmem:[#allocation12 + $0x398] sm:$0xff] }
 0x5d6   :  { %1709 = vmatpush1.msra.mxu0 %v1646_v50  ;;  %1575 = vmatpush1.msra.mxu1 %v1504_v51  ;;  %v1539_v50 = vld [vmem:[#allocation12 + $0x178] sm:$0xff]  ;;  %v1680_v51 = vld [vmem:[#allocation12 + $0x390] sm:$0xff] }
 0x5d7   :  { %1710 = vmatprep.subr.mxu0 %v1645_v52  ;;  %1576 = vmatprep.subr.mxu1 %v1503_v53  ;;  %v1538_v52 = vld [vmem:[#allocation12 + $0x170] sm:$0xff]  ;;  %v1679_v53 = vld [vmem:[#allocation12 + $0x388] sm:$0xff] }
 0x5d8   :  { %1711 = vmatpush1.msra.mxu0 %v1644_v54  ;;  %1577 = vmatpush1.msra.mxu1 %v1502_v55  ;;  %v1678_v54 = vld [vmem:[#allocation12 + $0x380] sm:$0xff]  ;;  %v1677_v55 = vld [vmem:[#allocation12 + $0x378] sm:$0xff] }
 0x5d9   :  { %1712 = vmatprep.subr.mxu0 %v1643_v56  ;;  %1578 = vmatprep.subr.mxu1 %v1501_v57  ;;  %v1676_v56 = vld [vmem:[#allocation12 + $0x370] sm:$0xff]  ;;  %v1537_v57 = vld [vmem:[#allocation12 + $0x168] sm:$0xff] }
 0x5da   :  { %1713 = vmatpush1.msra.mxu0 %v1642_v58  ;;  %1579 = vmatpush1.msra.mxu1 %v1500_v59  ;;  %v1675_v58 = vld [vmem:[#allocation12 + $0x368] sm:$0xff]  ;;  %v1536_v59 = vld [vmem:[#allocation12 + $0x160] sm:$0xff] }
 0x5db   :  { %1714 = vmatprep.subr.mxu0 %v1641_v60  ;;  %1580 = vmatprep.subr.mxu1 %v1499_v61  ;;  %v1674_v60 = vld [vmem:[#allocation12 + $0x360] sm:$0xff]  ;;  %v1535_v61 = vld [vmem:[#allocation12 + $0x158] sm:$0xff] }
 0x5dc   :  { %1715 = vmatpush1.msra.mxu0 %v1640_v62  ;;  %1581 = vmatpush1.msra.mxu1 %v1498_v63  ;;  %v1673_v62 = vld [vmem:[#allocation12 + $0x358] sm:$0xff]  ;;  %v1534_v63 = vld [vmem:[#allocation12 + $0x150] sm:$0xff] }
 0x5dd   :  { %1716 = vmatprep.subr.mxu0 %v1639_v1  ;;  %1582 = vmatprep.subr.mxu1 %v1497_v2  ;;  %v1672_v1 = vld [vmem:[#allocation12 + $0x350] sm:$0xff]  ;;  %v1533_v2 = vld [vmem:[#allocation12 + $0x148] sm:$0xff] }
 0x5de   :  { %1717 = vmatpush1.msra.mxu0 %v1638_v3  ;;  %1583 = vmatpush1.msra.mxu1 %v1496_v5  ;;  %v1671_v3 = vld [vmem:[#allocation12 + $0x348] sm:$0xff]  ;;  %v1532_v5 = vld [vmem:[#allocation12 + $0x140] sm:$0xff] }
 0x5df   :  { %1718 = vmatprep.subr.mxu0 %v1637_v7  ;;  %1584 = vmatprep.subr.mxu1 %v1495_v8  ;;  %v1670_v7 = vld [vmem:[#allocation12 + $0x340] sm:$0xff]  ;;  %v1531_v8 = vld [vmem:[#allocation12 + $0x138] sm:$0xff] }
 0x5e0   :  { %1719 = vmatpush1.msra.mxu0 %v1636_v10  ;;  %1585 = vmatpush1.msra.mxu1 %v1494_v11  ;;  %v1669_v10 = vld [vmem:[#allocation12 + $0x338] sm:$0xff]  ;;  %v1530_v11 = vld [vmem:[#allocation12 + $0x130] sm:$0xff] }
 0x5e1   :  { %1720 = vmatprep.subr.mxu0 %v1635_v12  ;;  %1586 = vmatprep.subr.mxu1 %v1493_v14  ;;  %v1668_v12 = vld [vmem:[#allocation12 + $0x330] sm:$0xff]  ;;  %v1529_v14 = vld [vmem:[#allocation12 + $0x128] sm:$0xff] }
 0x5e2   :  { %1721 = vmatpush1.msra.mxu0 %v1634_v15  ;;  %1587 = vmatpush1.msra.mxu1 %v1492_v16  ;;  %v1667_v15 = vld [vmem:[#allocation12 + $0x328] sm:$0xff]  ;;  %v1528_v16 = vld [vmem:[#allocation12 + $0x120] sm:$0xff] }
 0x5e3   :  { %1722 = vmatprep.subr.mxu0 %v1633_v18  ;;  %1588 = vmatprep.subr.mxu1 %v1555_v19  ;;  %v1666_v18 = vld [vmem:[#allocation12 + $0x320] sm:$0xff]  ;;  %v1527_v19 = vld [vmem:[#allocation12 + $0x118] sm:$0xff] }
 0x5e4   :  { %1723 = vmatpush1.msra.mxu0 %v1632_v20  ;;  %1589 = vmatpush2.msra.mxu1 %v1554_v21  ;;  %v1665_v20 = vld [vmem:[#allocation12 + $0x318] sm:$0xff]  ;;  %v1526_v21 = vld [vmem:[#allocation12 + $0x110] sm:$0xff] }
 0x5e5   :  { %1724 = vmatprep.subr.mxu0 %v1631_v22  ;;  %1590 = vmatprep.subr.mxu1 %v1553_v23  ;;  %v1664_v22 = vld [vmem:[#allocation12 + $0x310] sm:$0xff]  ;;  %v1525_v23 = vld [vmem:[#allocation12 + $0x108] sm:$0xff] }
 0x5e6   :  { %1725 = vmatpush1.msra.mxu0 %v1630_v24  ;;  %1591 = vmatpush2.msra.mxu1 %v1552_v25  ;;  %v1663_v24 = vld [vmem:[#allocation12 + $0x308] sm:$0xff]  ;;  %v1524_v25 = vld [vmem:[#allocation12 + $0x100] sm:$0xff] }
 0x5e7   :  { %1726 = vmatprep.subr.mxu0 %v1693_v26  ;;  %1592 = vmatprep.subr.mxu1 %v1551_v27  ;;  %v1662_v26 = vld [vmem:[#allocation12 + $0x300] sm:$0xff] }
 0x5e8   :  { %1727 = vmatpush2.msra.mxu0 %v1692_v28  ;;  %1593 = vmatpush2.msra.mxu1 %v1550_v9 }
 0x5e9   :  { %1728 = vmatprep.subr.mxu0 %v1691_v29  ;;  %1594 = vmatprep.subr.mxu1 %v1549_v30 }
 0x5ea   :  { %1729 = vmatpush2.msra.mxu0 %v1690_v31  ;;  %1595 = vmatpush2.msra.mxu1 %v1548_v32 }
 0x5eb   :  { %1730 = vmatprep.subr.mxu0 %v1689_v33  ;;  %1596 = vmatprep.subr.mxu1 %v1547_v34 }
 0x5ec   :  { %1731 = vmatpush2.msra.mxu0 %v1688_v35  ;;  %1597 = vmatpush2.msra.mxu1 %v1546_v36 }
 0x5ed   :  { %1732 = vmatprep.subr.mxu0 %v1687_v37  ;;  %1598 = vmatprep.subr.mxu1 %v1545_v38 }
 0x5ee   :  { %1733 = vmatpush2.msra.mxu0 %v1686_v39  ;;  %1599 = vmatpush2.msra.mxu1 %v1544_v40 }
 0x5ef   :  { %1734 = vmatprep.subr.mxu0 %v1685_v41  ;;  %1600 = vmatprep.subr.mxu1 %v1543_v42  ;;  %v4327_v42 = vld [vmem:[%s6604_s11 + $0x10] sm:$0xff] }
 0x5f0   :  { %1735 = vmatpush2.msra.mxu0 %v1684_v43  ;;  %1601 = vmatpush2.msra.mxu1 %v1542_v44  ;;  %v1627_v43 = vld [vmem:[%s6604_s11] sm:$0xff]  ;;  %v1967_v44 = vld [vmem:[#allocation12 + $0x4f8] sm:$0xff] }
 0x5f1   :  { %1736 = vmatprep.subr.mxu0 %v1683_v45  ;;  %1602 = vmatprep.subr.mxu1 %v1541_v46  ;;  %v1966_v45 = vld [vmem:[#allocation12 + $0x4f0] sm:$0xff]  ;;  %v1965_v46 = vld [vmem:[#allocation12 + $0x4e8] sm:$0xff] }
 0x5f2   :  { %1737 = vmatpush2.msra.mxu0 %v1682_v47  ;;  %1603 = vmatpush2.msra.mxu1 %v1540_v48  ;;  %v1964_v47 = vld [vmem:[#allocation12 + $0x4e0] sm:$0xff]  ;;  %v1628_v48 = vld [vmem:[%s6604_s11 + $0x8] sm:$0x3f] }
 0x5f3   :  { %1738 = vmatprep.subr.mxu0 %v1681_v49  ;;  %1604 = vmatprep.subr.mxu1 %v1539_v50  ;;  %v4328_v49 = vld [vmem:[%s6604_s11 + $0x18] sm:$0x3f]  ;;  %v1963_v50 = vld [vmem:[#allocation12 + $0x4d8] sm:$0xff] }
 0x5f4   :  { %1739 = vmatpush2.msra.mxu0 %v1680_v51  ;;  %1605 = vmatpush2.msra.mxu1 %v1538_v52  ;;  %v1962_v51 = vld [vmem:[#allocation12 + $0x4d0] sm:$0xff]  ;;  %v1961_v52 = vld [vmem:[#allocation12 + $0x4c8] sm:$0xff] }
 0x5f5   :  { %1740 = vmatprep.subr.mxu0 %v1679_v53  ;;  %1606 = vmatprep.subr.mxu1 %v1537_v57  ;;  %v1960_v53 = vld [vmem:[#allocation12 + $0x4c0] sm:$0xff] }
 0x5f6   :  { %1741 = vmatpush2.msra.mxu0 %v1678_v54  ;;  %1607 = vmatpush2.msra.mxu1 %v1536_v59  ;;  %v1959_v54 = vld [vmem:[#allocation12 + $0x4b8] sm:$0xff]  ;;  %v1956_v57 = vld [vmem:[#allocation12 + $0x4a0] sm:$0xff]  ;;  %v1954_v59 = vld [vmem:[#allocation12 + $0x490] sm:$0xff] }
 0x5f7   :  { %1742 = vmatprep.subr.mxu0 %v1677_v55  ;;  %1608 = vmatprep.subr.mxu1 %v1535_v61  ;;  %v1958_v55 = vld [vmem:[#allocation12 + $0x4b0] sm:$0xff]  ;;  %v1952_v61 = vld [vmem:[#allocation12 + $0x480] sm:$0xff] }
 0x5f8   :  { %1743 = vmatpush2.msra.mxu0 %v1676_v56  ;;  %1609 = vmatpush2.msra.mxu1 %v1534_v63  ;;  %v1957_v56 = vld [vmem:[#allocation12 + $0x4a8] sm:$0xff]  ;;  %v1950_v63 = vld [vmem:[#allocation12 + $0x470] sm:$0xff] }
 0x5f9   :  { %1744 = vmatprep.subr.mxu0 %v1675_v58  ;;  %1610 = vmatprep.subr.mxu1 %v1533_v2  ;;  %v1955_v58 = vld [vmem:[#allocation12 + $0x498] sm:$0xff]  ;;  %v1948_v2 = vld [vmem:[#allocation12 + $0x460] sm:$0xff] }
 0x5fa   :  { %1745 = vmatpush2.msra.mxu0 %v1674_v60  ;;  %1611 = vmatpush2.msra.mxu1 %v1532_v5  ;;  %v1953_v60 = vld [vmem:[#allocation12 + $0x488] sm:$0xff]  ;;  %v1946_v5 = vld [vmem:[#allocation12 + $0x450] sm:$0xff] }
 0x5fb   :  { %1746 = vmatprep.subr.mxu0 %v1673_v62  ;;  %1612 = vmatprep.subr.mxu1 %v1531_v8  ;;  %v1951_v62 = vld [vmem:[#allocation12 + $0x478] sm:$0xff]  ;;  %v1944_v8 = vld [vmem:[#allocation12 + $0x440] sm:$0xff] }
 0x5fc   :  { %1747 = vmatpush2.msra.mxu0 %v1672_v1  ;;  %1613 = vmatpush2.msra.mxu1 %v1530_v11  ;;  %v1949_v1 = vld [vmem:[#allocation12 + $0x468] sm:$0xff]  ;;  %v1942_v11 = vld [vmem:[#allocation12 + $0x430] sm:$0xff] }
 0x5fd   :  { %1748 = vmatprep.subr.mxu0 %v1671_v3  ;;  %1614 = vmatprep.subr.mxu1 %v1529_v14  ;;  %v1947_v3 = vld [vmem:[#allocation12 + $0x458] sm:$0xff]  ;;  %v1940_v14 = vld [vmem:[#allocation12 + $0x420] sm:$0xff] }
 0x5fe   :  { %1749 = vmatpush2.msra.mxu0 %v1670_v7  ;;  %1615 = vmatpush2.msra.mxu1 %v1528_v16  ;;  %v1945_v7 = vld [vmem:[#allocation12 + $0x448] sm:$0xff]  ;;  %v1938_v16 = vld [vmem:[#allocation12 + $0x410] sm:$0xff] }
 0x5ff   :  { %1750 = vmatprep.subr.mxu0 %v1669_v10  ;;  %1616 = vmatprep.subr.mxu1 %v1527_v19  ;;  %v1943_v10 = vld [vmem:[#allocation12 + $0x438] sm:$0xff]  ;;  %v1936_v19 = vld [vmem:[#allocation12 + $0x400] sm:$0xff] }
 0x600   :  { %1751 = vmatpush2.msra.mxu0 %v1668_v12  ;;  %1617 = vmatpush2.msra.mxu1 %v1526_v21  ;;  %v1941_v12 = vld [vmem:[#allocation12 + $0x428] sm:$0xff]  ;;  %v1998_v21 = vld [vmem:[#allocation12 + $0x5f0] sm:$0xff] }
 0x601   :  { %1752 = vmatprep.subr.mxu0 %v1667_v15  ;;  %1618 = vmatprep.subr.mxu1 %v1525_v23  ;;  %v1939_v15 = vld [vmem:[#allocation12 + $0x418] sm:$0xff]  ;;  %v1996_v23 = vld [vmem:[#allocation12 + $0x5e0] sm:$0xff] }
 0x602   :  { %1753 = vmatpush2.msra.mxu0 %v1666_v18  ;;  %1619 = vmatpush2.msra.mxu1 %v1524_v25  ;;  %v1937_v18 = vld [vmem:[#allocation12 + $0x408] sm:$0xff]  ;;  %v1994_v25 = vld [vmem:[#allocation12 + $0x5d0] sm:$0xff] }
 0x603   :  { %1754 = vmatprep.subr.mxu0 %v1665_v20  ;;  %v1999_v20 = vld [vmem:[#allocation12 + $0x5f8] sm:$0xff] }
 0x604   :  { %1755 = vmatpush2.msra.mxu0 %v1664_v22  ;;  %v1997_v22 = vld [vmem:[#allocation12 + $0x5e8] sm:$0xff] }
 0x605   :  { %1756 = vmatprep.subr.mxu0 %v1663_v24  ;;  %v1995_v24 = vld [vmem:[#allocation12 + $0x5d8] sm:$0xff] }
 0x606   :  { %1757 = vmatpush2.msra.mxu0 %v1662_v26  ;;  %v1993_v26 = vld [vmem:[#allocation12 + $0x5c8] sm:$0xff] }
 0x683   :  { %v1391_v27 = vpop.f32.mrf.mxu1 }
 0x684   :  { %v1473_v28 = vrot.slane %v1391_v27, %v5904_v4  ;;  %v1992_v27 = vld [vmem:[#allocation12 + $0x5c0] sm:$0xff] }
 0x685   :  { %v1393_v9 = vpop.f32.mrf.mxu1 }
 0x686   :  { %v1477_v29 = vrot.slane %v1393_v9, %v5904_v4  ;;  %v1478_v32 = vmul.f32 %v1473_v28, %v5911_v13  ;;  %v1991_v28 = vld [vmem:[#allocation12 + $0x5b8] sm:$0xff]  ;;  %v1990_v9 = vld [vmem:[#allocation12 + $0x5b0] sm:$0xff] }
 0x687   :  { %v1465_v30 = vpop.f32.mrf.mxu0 }
 0x688   :  { %v1483_v31 = vrot.slane %v1465_v30, %v5904_v4  ;;  %v1479_v34 = vmul.f32 %v1477_v29, %v5917_v17  ;;  %v1989_v29 = vld [vmem:[#allocation12 + $0x5a8] sm:$0xff]  ;;  %v1988_v30 = vld [vmem:[#allocation12 + $0x5a0] sm:$0xff] }
 0x689   :  { %v1467_v33 = vpop.f32.mrf.mxu0 }
 0x68a   :  { %v1487_v35 = vrot.slane %v1467_v33, %v5904_v4  ;;  %v1488_v36 = vadd.f32 %v1483_v31, %v1478_v32  ;;  %v1987_v31 = vld [vmem:[#allocation12 + $0x598] sm:$0xff]  ;;  %v1986_v32 = vld [vmem:[#allocation12 + $0x590] sm:$0xff]  ;;  %v1985_v33 = vld [vmem:[#allocation12 + $0x588] sm:$0xff] }
 0x68c   :  { %v1489_v37 = vadd.f32 %v1487_v35, %v1479_v34  ;;  %v5934_v39 = vmax.f32 %v1488_v36, 0.0  ;;  %v1984_v34 = vld [vmem:[#allocation12 + $0x580] sm:$0xff]  ;;  %v1983_v35 = vld [vmem:[#allocation12 + $0x578] sm:$0xff]  ;;  %v1982_v36 = vld [vmem:[#allocation12 + $0x570] sm:$0xff] }
 0x68e   :  { %v1491_v38 = vmax.f32 %v1489_v37, 0.0  ;;  %v1981_v37 = vld [vmem:[#allocation12 + $0x568] sm:$0xff] }
 0x690   :  { %1620 = vmatprep.mubr.f32.mxu1 %v1491_v38  ;;  %1758 = vmatprep.mubr.f32.mxu0 %v1491_v38 }
 0x691   :  { %1621 = vmatmul.mubr.f32.vlgmr.msra.gmra.mxu1 %v5934_v39  ;;  %1759 = vmatmul.mubr.f32.vlgmr.msra.gmra.mxu0 %v5934_v39 }
 0x692   :  { %1839 = vmatprep.mubr.f32.mxu1 %v5187_v0  ;;  %1922 = vmatprep.mubr.f32.mxu0 %v5187_v0 }
 0x751   :  { %v1622_v13 = vpop.f32.mrf.mxu1  ;;  %v1760_v40 = vpop.f32.mrf.mxu0 }
 0x753   :  { %v1624_v17 = vpop.f32.mrf.mxu1  ;;  %v1762_v41 = vpop.f32.mrf.mxu0 }
 0x754   :  { %1805 = vmatprep.subr.mxu1 %v1762_v41  ;;  %1888 = vmatprep.subr.mxu0 %v1624_v17  ;;  %v1977_v17 = vld [vmem:[#allocation12 + $0x548] sm:$0xff]  ;;  %v1976_v41 = vld [vmem:[#allocation12 + $0x540] sm:$0xff] }
 0x755   :  { %1806 = vmatpush1.msra.mxu1 %v1760_v40  ;;  %1889 = vmatpush1.msra.mxu0 %v1622_v13  ;;  %v1979_v13 = vld [vmem:[#allocation12 + $0x558] sm:$0xff]  ;;  %v1978_v40 = vld [vmem:[#allocation12 + $0x550] sm:$0xff] }
 0x756   :  { %4329 = vmatmul.mubr.msk.f32.vlgmr.msra.gmra.mxu1 %vm1768_vm5, %v4327_v42  ;;  %4331 = vmatmul.mubr.msk.f32.vlgmr.msra.gmra.mxu0 %vm1768_vm5, %v1627_v43  ;;  %v1975_v42 = vld [vmem:[#allocation12 + $0x538] sm:$0xff]  ;;  %v1974_v43 = vld [vmem:[#allocation12 + $0x530] sm:$0xff] }
 0x757   :  { %2000 = vmatprep.subr.mxu1 %v1967_v44  ;;  %1845 = vmatprep.mubr.f32.mxu1 %v5187_v0  ;;  %v1973_v44 = vld [vmem:[#allocation12 + $0x528] sm:$0xff] }
 0x758   :  { %2001 = vmatpush1.msra.mxu1 %v1966_v45  ;;  %1928 = vmatprep.mubr.f32.mxu0 %v5187_v0  ;;  %v1972_v45 = vld [vmem:[#allocation12 + $0x520] sm:$0xff] }
 0x759   :  { %2002 = vmatprep.subr.mxu1 %v1965_v46  ;;  %v1971_v46 = vld [vmem:[#allocation12 + $0x518] sm:$0xff] }
 0x75a   :  { %2003 = vmatpush1.msra.mxu1 %v1964_v47  ;;  %4332 = vmatmul.mubr.msk.f32.gmra.mxu0 %vm1768_vm5, %v1628_v48  ;;  %v1970_v47 = vld [vmem:[#allocation12 + $0x510] sm:$0xff]  ;;  %v1969_v48 = vld [vmem:[#allocation12 + $0x508] sm:$0xff] }
 0x75b   :  { %4330 = vmatmul.mubr.msk.f32.gmra.mxu1 %vm1768_vm5, %v4328_v49  ;;  %2004 = vmatprep.subr.mxu1 %v1963_v50  ;;  %v1968_v49 = vld [vmem:[#allocation12 + $0x500] sm:$0xff] }
 0x75c   :  { %2005 = vmatpush1.msra.mxu1 %v1962_v51  ;;  %2064 = vmatprep.mubr.f32.mxu1 %v1491_v38  ;;  %v1980_v38 = vld [vmem:[#allocation12 + $0x560] sm:$0xff] }
 0x75d   :  { %2006 = vmatprep.subr.mxu1 %v1961_v52  ;;  %2144 = vmatprep.mubr.f32.mxu0 %v5187_v0 }
 0x75e   :  { %2007 = vmatpush1.msra.mxu1 %v1960_v53 }
 0x75f   :  { %2008 = vmatprep.subr.mxu1 %v1959_v54 }
 0x760   :  { %2009 = vmatpush1.msra.mxu1 %v1958_v55 }
 0x761   :  { %2010 = vmatprep.subr.mxu1 %v1957_v56  ;;  %v4333_v56 = vld [vmem:[%s6604_s11 + $0x20] sm:$0xff] }
 0x762   :  { %2011 = vmatpush1.msra.mxu1 %v1956_v57  ;;  %v5980_v57 = vld [vmem:[%s6608_s15 + $0x78] sm:$0xff] }
 0x763   :  { %2012 = vmatprep.subr.mxu1 %v1955_v58  ;;  %v5985_v58 = vld [vmem:[%s6608_s15 + $0xf0] sm:$0xff] }
 0x764   :  { %2013 = vmatpush1.msra.mxu1 %v1954_v59  ;;  %v5992_v59 = vld [vmem:[%s6608_s15 + $0x70] sm:$0xff] }
 0x765   :  { %2014 = vmatprep.subr.mxu1 %v1953_v60  ;;  %v4334_v60 = vld [vmem:[%s6604_s11 + $0x28] sm:$0x3f] }
 0x766   :  { %2015 = vmatpush1.msra.mxu1 %v1952_v61  ;;  %v6002_v61 = vld [vmem:[%s6608_s15 + $0xe8] sm:$0xff] }
 0x767   :  { %2016 = vmatprep.subr.mxu1 %v1951_v62  ;;  %v6008_v62 = vld [vmem:[%s6608_s15 + $0x68] sm:$0xff] }
 0x768   :  { %2017 = vmatpush1.msra.mxu1 %v1950_v63  ;;  %v6017_v63 = vld [vmem:[%s6608_s15 + $0xe0] sm:$0xff] }
 0x769   :  { %2018 = vmatprep.subr.mxu1 %v1949_v1  ;;  %v6023_v1 = vld [vmem:[%s6608_s15 + $0x60] sm:$0xff] }
 0x76a   :  { %2019 = vmatpush1.msra.mxu1 %v1948_v2  ;;  %v6029_v2 = vld [vmem:[%s6608_s15 + $0xd8] sm:$0xff] }
 0x76b   :  { %2020 = vmatprep.subr.mxu1 %v1947_v3  ;;  %v6035_v3 = vld [vmem:[%s6608_s15 + $0x58] sm:$0xff] }
 0x76c   :  { %2021 = vmatpush1.msra.mxu1 %v1946_v5  ;;  %v6041_v5 = vld [vmem:[%s6608_s15 + $0xd0] sm:$0xff] }
 0x76d   :  { %2022 = vmatprep.subr.mxu1 %v1945_v7  ;;  %v6047_v7 = vld [vmem:[%s6608_s15 + $0x50] sm:$0xff] }
 0x76e   :  { %2023 = vmatpush1.msra.mxu1 %v1944_v8  ;;  %v6053_v8 = vld [vmem:[%s6608_s15 + $0xc8] sm:$0xff] }
 0x76f   :  { %2024 = vmatprep.subr.mxu1 %v1943_v10  ;;  %v6059_v10 = vld [vmem:[%s6608_s15 + $0x48] sm:$0xff] }
 0x770   :  { %2025 = vmatpush1.msra.mxu1 %v1942_v11  ;;  %v6065_v11 = vld [vmem:[%s6608_s15 + $0xc0] sm:$0xff] }
 0x771   :  { %2026 = vmatprep.subr.mxu1 %v1941_v12  ;;  %v6071_v12 = vld [vmem:[%s6608_s15 + $0x40] sm:$0xff] }
 0x772   :  { %2027 = vmatpush1.msra.mxu1 %v1940_v14  ;;  %v6077_v14 = vld [vmem:[%s6608_s15 + $0xb8] sm:$0xff] }
 0x773   :  { %2028 = vmatprep.subr.mxu1 %v1939_v15  ;;  %v6083_v15 = vld [vmem:[%s6608_s15 + $0x38] sm:$0xff] }
 0x774   :  { %2029 = vmatpush1.msra.mxu1 %v1938_v16  ;;  %v6089_v16 = vld [vmem:[%s6608_s15 + $0xb0] sm:$0xff] }
 0x775   :  { %2030 = vmatprep.subr.mxu1 %v1937_v18  ;;  %v6095_v18 = vld [vmem:[%s6608_s15 + $0x30] sm:$0xff] }
 0x776   :  { %2031 = vmatpush1.msra.mxu1 %v1936_v19  ;;  %v6101_v19 = vld [vmem:[%s6608_s15 + $0xa8] sm:$0xff] }
 0x777   :  { %2032 = vmatprep.subr.mxu1 %v1999_v20  ;;  %v6107_v20 = vld [vmem:[%s6608_s15 + $0x28] sm:$0xff] }
 0x778   :  { %2033 = vmatpush2.msra.mxu1 %v1998_v21  ;;  %v6113_v21 = vld [vmem:[%s6608_s15 + $0xa0] sm:$0xff] }
 0x779   :  { %2034 = vmatprep.subr.mxu1 %v1997_v22  ;;  %v6119_v22 = vld [vmem:[%s6608_s15 + $0x20] sm:$0xff] }
 0x77a   :  { %2035 = vmatpush2.msra.mxu1 %v1996_v23  ;;  %v6125_v23 = vld [vmem:[%s6608_s15 + $0x98] sm:$0xff] }
 0x77b   :  { %2036 = vmatprep.subr.mxu1 %v1995_v24  ;;  %v6131_v24 = vld [vmem:[%s6608_s15 + $0x18] sm:$0xff] }
 0x77c   :  { %2037 = vmatpush2.msra.mxu1 %v1994_v25  ;;  %v6136_v25 = vld [vmem:[%s6608_s15 + $0x90] sm:$0xff] }
 0x77d   :  { %2038 = vmatprep.subr.mxu1 %v1993_v26  ;;  %v6141_v26 = vld [vmem:[%s6608_s15 + $0x10] sm:$0xff] }
 0x77e   :  { %2039 = vmatpush2.msra.mxu1 %v1992_v27  ;;  %v6147_v27 = vld [vmem:[%s6608_s15 + $0x88] sm:$0xff] }
 0x77f   :  { %2040 = vmatprep.subr.mxu1 %v1991_v28  ;;  %v6153_v28 = vld [vmem:[%s6608_s15 + $0x8] sm:$0xff] }
 0x780   :  { %2041 = vmatpush2.msra.mxu1 %v1990_v9  ;;  %v6159_v9 = vld [vmem:[%s6608_s15 + $0x80] sm:$0xff] }
 0x781   :  { %2042 = vmatprep.subr.mxu1 %v1989_v29  ;;  %v6165_v29 = vld [vmem:[%s6608_s15] sm:$0xff] }
 0x782   :  { %2043 = vmatpush2.msra.mxu1 %v1988_v30 }
 0x783   :  { %2044 = vmatprep.subr.mxu1 %v1987_v31 }
 0x784   :  { %2045 = vmatpush2.msra.mxu1 %v1986_v32 }
 0x785   :  { %2046 = vmatprep.subr.mxu1 %v1985_v33 }
 0x786   :  { %2047 = vmatpush2.msra.mxu1 %v1984_v34 }
 0x787   :  { %2048 = vmatprep.subr.mxu1 %v1983_v35  ;;  %v2161_v35 = vld [vmem:[#allocation13] sm:$0x3] }
 0x788   :  { %2049 = vmatpush2.msra.mxu1 %v1982_v36 }
 0x789   :  { %2050 = vmatprep.subr.mxu1 %v1981_v37 }
 0x78a   :  { %2051 = vmatpush2.msra.mxu1 %v1980_v38 }
 0x78b   :  { %2052 = vmatprep.subr.mxu1 %v1979_v13 }
 0x78c   :  { %2053 = vmatpush2.msra.mxu1 %v1978_v40 }
 0x78d   :  { %2054 = vmatprep.subr.mxu1 %v1977_v17  ;;  %v2166_v17 = vrot.slane %v2161_v35, %v5904_v4 }
 0x78e   :  { %2055 = vmatpush2.msra.mxu1 %v1976_v41 }
 0x78f   :  { %2056 = vmatprep.subr.mxu1 %v1975_v42  ;;  %v2170_v42 = vrot.slane %v2161_v35, %v5906_v6 }
 0x790   :  { %2057 = vmatpush2.msra.mxu1 %v1974_v43 }
 0x791   :  { %2058 = vmatprep.subr.mxu1 %v1973_v44 }
 0x792   :  { %2059 = vmatpush2.msra.mxu1 %v1972_v45 }
 0x793   :  { %2060 = vmatprep.subr.mxu1 %v1971_v46 }
 0x794   :  { %2061 = vmatpush2.msra.mxu1 %v1970_v47 }
 0x795   :  { %2062 = vmatprep.subr.mxu1 %v1969_v48 }
 0x796   :  { %2063 = vmatpush2.msra.mxu1 %v1968_v49 }
 0x797   :  { %2065 = vmatmul.mubr.f32.vlgmr.msra.gmra.mxu1 %v5934_v39  ;;  %v5975_v39 = vld [vmem:[%s6608_s15 + $0xf8] sm:$0xff] }
 0x798   :  { %2474 = vmatprep.mubr.f32.mxu1 %v5187_v0 }
 0x816   :  { %v5961_v50 = vpop.f32.mrf.mxu1  ;;  %v1924_v30 = vpop.f32.mrf.mxu0 }
 0x817   :  { %v1925_v36 = vadd.f32 %v1924_v30, %v5961_v50 }
 0x818   :  { %v5963_v51 = vpop.f32.mrf.mxu1  ;;  %v1926_v31 = vpop.f32.mrf.mxu0 }
 0x819   :  { %v1927_v37 = vadd.f32 %v1926_v31, %v5963_v51 }
 0x81a   :  { %v1930_v32 = vpop.f32.mrf.mxu0 }
 0x81b   :  { %v5965_v52 = vpop.f32.mrf.mxu1 }
 0x81c   :  { %v1932_v33 = vpop.f32.mrf.mxu0  ;;  %v1931_v13 = vadd.f32 %v1930_v32, %v5965_v52 }
 0x81d   :  { %v5967_v53 = vpop.f32.mrf.mxu1 }
 0x81e   :  { %v1933_v44 = vadd.f32 %v1932_v33, %v5967_v53 }
 0x857   :  { %v2066_v54 = vpop.f32.mrf.mxu1 }
 0x859   :  { %v2068_v55 = vpop.f32.mrf.mxu1 }
 0x85a   :  { %2110 = vmatprep.subr.mxu0 %v2068_v55 }
 0x85b   :  { %2111 = vmatpush1.msra.mxu0 %v2066_v54 }
 0x85c   :  { %4335 = vmatmul.mubr.msk.f32.vlgmr.msra.gmra.mxu0 %vm1768_vm5, %v4333_v56  ;;  %4484 = vmatprep.subr.mxu0 %v5975_v39 }
 0x85d   :  { %2150 = vmatprep.mubr.f32.mxu0 %v5187_v0  ;;  %4485 = vmatpush3.msra.mxu0 %v5980_v57 }
 0x85e   :  { %4486 = vmatprep.subr.mxu0 %v5985_v58 }
 0x85f   :  { %4487 = vmatpush3.msra.mxu0 %v5992_v59 }
 0x860   :  { %4336 = vmatmul.mubr.msk.f32.gmra.mxu0 %vm1768_vm5, %v4334_v60  ;;  %4488 = vmatprep.subr.mxu0 %v6002_v61 }
 0x861   :  { %4489 = vmatpush3.msra.mxu0 %v6008_v62 }
 0x862   :  { %4490 = vmatprep.subr.mxu0 %v6017_v63 }
 0x863   :  { %4491 = vmatpush3.msra.mxu0 %v6023_v1 }
 0x864   :  { %4492 = vmatprep.subr.mxu0 %v6029_v2 }
 0x865   :  { %4493 = vmatpush3.msra.mxu0 %v6035_v3 }
 0x866   :  { %4494 = vmatprep.subr.mxu0 %v6041_v5 }
 0x867   :  { %4495 = vmatpush3.msra.mxu0 %v6047_v7 }
 0x868   :  { %4496 = vmatprep.subr.mxu0 %v6053_v8 }
 0x869   :  { %4497 = vmatpush3.msra.mxu0 %v6059_v10 }
 0x86a   :  { %4498 = vmatprep.subr.mxu0 %v6065_v11 }
 0x86b   :  { %4499 = vmatpush3.msra.mxu0 %v6071_v12 }
 0x86c   :  { %4500 = vmatprep.subr.mxu0 %v6077_v14 }
 0x86d   :  { %4501 = vmatpush3.msra.mxu0 %v6083_v15 }
 0x86e   :  { %4502 = vmatprep.subr.mxu0 %v6089_v16 }
 0x86f   :  { %4503 = vmatpush3.msra.mxu0 %v6095_v18 }
 0x870   :  { %4504 = vmatprep.subr.mxu0 %v6101_v19 }
 0x871   :  { %4505 = vmatpush3.msra.mxu0 %v6107_v20 }
 0x872   :  { %4506 = vmatprep.subr.mxu0 %v6113_v21 }
 0x873   :  { %4507 = vmatpush3.msra.mxu0 %v6119_v22 }
 0x874   :  { %4508 = vmatprep.subr.mxu0 %v6125_v23 }
 0x875   :  { %4509 = vmatpush3.msra.mxu0 %v6131_v24 }
 0x876   :  { %4510 = vmatprep.subr.mxu0 %v6136_v25 }
 0x877   :  { %4511 = vmatpush3.msra.mxu0 %v6141_v26 }
 0x878   :  { %4512 = vmatprep.subr.mxu0 %v6147_v27 }
 0x879   :  { %4513 = vmatpush3.msra.mxu0 %v6153_v28 }
 0x87a   :  { %4514 = vmatprep.subr.mxu0 %v6159_v9 }
 0x87b   :  { %4515 = vmatpush3.msra.mxu0 %v6165_v29 }
 0x87c   :  { %4519 = vmatprep.subr.mxu0 %v5975_v39 }
 0x91c   :  { %v2146_v34 = vpop.f32.mrf.mxu0 }
 0x91d   :  { %v2157_v40 = vadd.f32 %v2146_v34, %v1925_v36 }
 0x91e   :  { %v2148_v38 = vpop.f32.mrf.mxu0 }
 0x91f   :  { %v2158_v41 = vadd.f32 %v2148_v38, %v1927_v37  ;;  %v6179_v49 = vadd.f32 %v2166_v17, %v2157_v40 }
 0x920   :  { %v2152_v43 = vpop.f32.mrf.mxu0 }
 0x921   :  { %v2159_v45 = vadd.f32 %v2152_v43, %v1931_v13  ;;  %v6181_v50 = vadd.f32 %v2170_v42, %v2158_v41 }
 0x922   :  { %v2154_v46 = vpop.f32.mrf.mxu0 }
 0x923   :  { %v6177_v47 = vadd.f32 %v2166_v17, %v2159_v45  ;;  %v2160_v48 = vadd.f32 %v2154_v46, %v1933_v44  ;;  %v2195_v56 = vmul.f32 %v6181_v50, %v6181_v50 }
 0x925   :  { %v2178_v51 = vsel %vm2177_vm6, %v6177_v47, 0.0  ;;  %v6185_v52 = vadd.f32 %v2170_v42, %v2160_v48  ;;  %v2196_v48 = vmul.f32 %v6177_v47, %v6177_v47 }
 0x926   :  { %v2179_v54 = vadd.f32 %v2178_v51, %v6179_v49 }
 0x927   :  { %v2186_v53 = vsel %vm2177_vm6, %v6185_v52, 0.0  ;;  %v2197_v55 = vmul.f32 %v6185_v52, %v6185_v52 }
 0x928   :  { %v2180_v39 = vrot.slane %v2179_v54, 4  ;;  %v2187_v60 = vadd.f32 %v2186_v53, %v6181_v50  ;;  %v2194_v53 = vmul.f32 %v6179_v49, %v6179_v49 }
 0x929   :  { %v2206_v30 = vsel %vm2177_vm6, %v2197_v55, 0.0 }
 0x92a   :  { %v2181_v31 = vadd.f32 %v2180_v39, %v2179_v54  ;;  %v2188_v32 = vrot.slane %v2187_v60, 4  ;;  %v2207_v33 = vadd.f32 %v2206_v30, %v2195_v56  ;;  %v2198_v54 = vsel %vm2177_vm6, %v2196_v48, 0.0  ;;  %v2597_v56 = vld [vmem:[#allocation19 + $0x70] sm:$0xff]  ;;  %v2596_v39 = vld [vmem:[#allocation19 + $0x68] sm:$0xff]  ;;  %v2594_v30 = vld [vmem:[#allocation19 + $0x58] sm:$0xff] }
 0x92b   :  { %v2199_v55 = vadd.f32 %v2198_v54, %v2194_v53  ;;  %v2640_v48 = vld [vmem:[#allocation19 + $0x1c8] sm:$0xff]  ;;  %v2638_v54 = vld [vmem:[#allocation19 + $0x1b8] sm:$0xff]  ;;  %v2637_v53 = vld [vmem:[#allocation19 + $0x1b0] sm:$0xff] }
 0x92c   :  { %v2182_v34 = vrot.slane %v2181_v31, 2  ;;  %v2189_v35 = vadd.f32 %v2188_v32, %v2187_v60  ;;  %v2208_v36 = vrot.slane %v2207_v33, 4  ;;  %v2595_v60 = vld [vmem:[#allocation19 + $0x60] sm:$0xff]  ;;  %v2592_v32 = vld [vmem:[#allocation19 + $0x48] sm:$0xff] }
 0x92e   :  { %v2183_v37 = vadd.f32 %v2182_v34, %v2181_v31  ;;  %v2190_v38 = vrot.slane %v2189_v35, 2  ;;  %v2209_v13 = vadd.f32 %v2208_v36, %v2207_v33  ;;  %v2593_v31 = vld [vmem:[#allocation19 + $0x50] sm:$0xff]  ;;  %v2591_v33 = vld [vmem:[#allocation19 + $0x40] sm:$0xff]  ;;  %v2590_v34 = vld [vmem:[#allocation19 + $0x38] sm:$0xff] }
 0x92f   :  { %v2588_v36 = vld [vmem:[#allocation19 + $0x28] sm:$0xff] }
 0x930   :  { %v2191_v40 = vadd.f32 %v2190_v38, %v2189_v35  ;;  %v2210_v17 = vrot.slane %v2209_v13, 2  ;;  %v2184_v41 = vrot.slane %v2183_v37, 1  ;;  %v2589_v35 = vld [vmem:[#allocation19 + $0x30] sm:$0xff]  ;;  %v2586_v38 = vld [vmem:[#allocation19 + $0x18] sm:$0xff] }
 0x932   :  { %v2192_v42 = vrot.slane %v2191_v40, 1  ;;  %v2211_v43 = vadd.f32 %v2210_v17, %v2209_v13  ;;  %v2185_v46 = vadd.f32 %v2184_v41, %v2183_v37  ;;  %v2587_v37 = vld [vmem:[#allocation19 + $0x20] sm:$0xff]  ;;  %v2585_v13 = vld [vmem:[#allocation19 + $0x10] sm:$0xff]  ;;  %v2646_v41 = vld [vmem:[#allocation19 + $0x1f8] sm:$0xff] }
 0x933   :  { %v2583_v17 = vld [vmem:[#allocation19] sm:$0xff] }
 0x934   :  { %v2193_v44 = vadd.f32 %v2192_v42, %v2191_v40  ;;  %v2212_v45 = vrot.slane %v2211_v43, 1  ;;  %v2584_v40 = vld [vmem:[#allocation19 + $0x8] sm:$0xff]  ;;  %v2645_v42 = vld [vmem:[#allocation19 + $0x1f0] sm:$0xff] }
 0x936   :  { %2310 = vmatprep.mubr.f32.mxu0 %v2193_v44  ;;  %v2213_v51 = vadd.f32 %v2212_v45, %v2211_v43  ;;  %v2644_v43 = vld [vmem:[#allocation19 + $0x1e8] sm:$0xff]  ;;  %v2643_v44 = vld [vmem:[#allocation19 + $0x1e0] sm:$0xff]  ;;  %v2642_v45 = vld [vmem:[#allocation19 + $0x1d8] sm:$0xff] }
 0x937   :  { %2311 = vmatmul.mubr.f32.vlgmr.msra.gmra.mxu0 %v2185_v46  ;;  %v2641_v46 = vld [vmem:[#allocation19 + $0x1d0] sm:$0xff] }
 0x938   :  { %4520 = vmatpush3.msra.mxu0 %v5980_v57  ;;  %2380 = vmatprep.mubr.f32.mxu0 %v2213_v51  ;;  %v2200_v57 = vrot.slane %v2199_v55, 4  ;;  %v2639_v51 = vld [vmem:[#allocation19 + $0x1c0] sm:$0xff] }
 0x939   :  { %4521 = vmatprep.subr.mxu0 %v5985_v58 }
 0x93a   :  { %4522 = vmatpush3.msra.mxu0 %v5992_v59  ;;  %v2201_v58 = vadd.f32 %v2200_v57, %v2199_v55  ;;  %v2636_v55 = vld [vmem:[#allocation19 + $0x1a8] sm:$0xff]  ;;  %v2635_v57 = vld [vmem:[#allocation19 + $0x1a0] sm:$0xff] }
 0x93b   :  { %4523 = vmatprep.subr.mxu0 %v6002_v61 }
 0x93c   :  { %4524 = vmatpush3.msra.mxu0 %v6008_v62  ;;  %v2202_v59 = vrot.slane %v2201_v58, 2 }
 0x93d   :  { %4525 = vmatprep.subr.mxu0 %v6017_v63 }
 0x93e   :  { %4526 = vmatpush3.msra.mxu0 %v6023_v1  ;;  %v2203_v61 = vadd.f32 %v2202_v59, %v2201_v58  ;;  %v2405_v1 = vld [vmem:[#allocation18 + $0x38] sm:$0xff]  ;;  %v2633_v59 = vld [vmem:[#allocation19 + $0x190] sm:$0xff] }
 0x93f   :  { %4527 = vmatprep.subr.mxu0 %v6029_v2  ;;  %v6232_v2 = vld [vmem:[#allocation18 + $0x30] sm:$0xff]  ;;  %2434 = vmatprep.subr.mxu1 %v2405_v1  ;;  %v2634_v58 = vld [vmem:[#allocation19 + $0x198] sm:$0xff] }
 0x940   :  { %4528 = vmatpush3.msra.mxu0 %v6035_v3  ;;  %v2204_v62 = vrot.slane %v2203_v61, 1  ;;  %v6234_v3 = vld [vmem:[#allocation18 + $0x28] sm:$0xff]  ;;  %2435 = vmatpush1.msra.mxu1 %v6232_v2 }
 0x941   :  { %4529 = vmatprep.subr.mxu0 %v6041_v5  ;;  %v6236_v5 = vld [vmem:[#allocation18 + $0x20] sm:$0xff]  ;;  %2436 = vmatprep.subr.mxu1 %v6234_v3 }
 0x942   :  { %4530 = vmatpush3.msra.mxu0 %v6047_v7  ;;  %v2205_v63 = vadd.f32 %v2204_v62, %v2203_v61  ;;  %v6239_v7 = vld [vmem:[#allocation18 + $0x18] sm:$0xff]  ;;  %2437 = vmatpush1.msra.mxu1 %v6236_v5  ;;  %v2632_v61 = vld [vmem:[#allocation19 + $0x188] sm:$0xff] }
 0x943   :  { %4531 = vmatprep.subr.mxu0 %v6053_v8  ;;  %v6242_v8 = vld [vmem:[#allocation18 + $0x10] sm:$0xff]  ;;  %2438 = vmatprep.subr.mxu1 %v6239_v7 }
 0x944   :  { %4532 = vmatpush3.msra.mxu0 %v6059_v10  ;;  %v6245_v10 = vld [vmem:[#allocation18 + $0x8] sm:$0xff]  ;;  %2439 = vmatpush1.msra.mxu1 %v6242_v8 }
 0x945   :  { %4533 = vmatprep.subr.mxu0 %v6065_v11  ;;  %v6248_v11 = vld [vmem:[#allocation18] sm:$0xff]  ;;  %2440 = vmatprep.subr.mxu1 %v6245_v10 }
 0x946   :  { %4534 = vmatpush3.msra.mxu0 %v6071_v12  ;;  %2441 = vmatpush1.msra.mxu1 %v6248_v11  ;;  %v2614_v12 = vld [vmem:[#allocation19 + $0xf8] sm:$0xff] }
 0x947   :  { %4535 = vmatprep.subr.mxu0 %v6077_v14  ;;  %2508 = vmatprep.subr.mxu1 %v2405_v1  ;;  %v2613_v14 = vld [vmem:[#allocation19 + $0xf0] sm:$0xff] }
 0x948   :  { %4536 = vmatpush3.msra.mxu0 %v6083_v15  ;;  %v2612_v15 = vld [vmem:[#allocation19 + $0xe8] sm:$0xff] }
 0x949   :  { %4537 = vmatprep.subr.mxu0 %v6089_v16  ;;  %v2611_v16 = vld [vmem:[#allocation19 + $0xe0] sm:$0xff] }
 0x94a   :  { %4538 = vmatpush3.msra.mxu0 %v6095_v18  ;;  %v2610_v18 = vld [vmem:[#allocation19 + $0xd8] sm:$0xff] }
 0x94b   :  { %4539 = vmatprep.subr.mxu0 %v6101_v19  ;;  %v2609_v19 = vld [vmem:[#allocation19 + $0xd0] sm:$0xff] }
 0x94c   :  { %4540 = vmatpush3.msra.mxu0 %v6107_v20  ;;  %v2608_v20 = vld [vmem:[#allocation19 + $0xc8] sm:$0xff] }
 0x94d   :  { %4541 = vmatprep.subr.mxu0 %v6113_v21  ;;  %v2607_v21 = vld [vmem:[#allocation19 + $0xc0] sm:$0xff] }
 0x94e   :  { %4542 = vmatpush3.msra.mxu0 %v6119_v22  ;;  %v2606_v22 = vld [vmem:[#allocation19 + $0xb8] sm:$0xff] }
 0x94f   :  { %4543 = vmatprep.subr.mxu0 %v6125_v23  ;;  %v2605_v23 = vld [vmem:[#allocation19 + $0xb0] sm:$0xff] }
 0x950   :  { %4544 = vmatpush3.msra.mxu0 %v6131_v24  ;;  %v2604_v24 = vld [vmem:[#allocation19 + $0xa8] sm:$0xff] }
 0x951   :  { %4545 = vmatprep.subr.mxu0 %v6136_v25  ;;  %v2603_v25 = vld [vmem:[#allocation19 + $0xa0] sm:$0xff] }
 0x952   :  { %4546 = vmatpush3.msra.mxu0 %v6141_v26  ;;  %v2602_v26 = vld [vmem:[#allocation19 + $0x98] sm:$0xff] }
 0x953   :  { %4547 = vmatprep.subr.mxu0 %v6147_v27  ;;  %v2601_v27 = vld [vmem:[#allocation19 + $0x90] sm:$0xff] }
 0x954   :  { %4548 = vmatpush3.msra.mxu0 %v6153_v28  ;;  %v2600_v28 = vld [vmem:[#allocation19 + $0x88] sm:$0xff] }
 0x955   :  { %4549 = vmatprep.subr.mxu0 %v6159_v9  ;;  %v2599_v9 = vld [vmem:[#allocation19 + $0x80] sm:$0xff] }
 0x956   :  { %4550 = vmatpush3.msra.mxu0 %v6165_v29  ;;  %v2598_v29 = vld [vmem:[#allocation19 + $0x78] sm:$0xff] }
 0x957   :  { %2381 = vmatmul.mubr.f32.vlgmr.msra.gmra.mxu0 %v2205_v63  ;;  %2647 = vmatprep.subr.mxu0 %v2614_v12 }
 0x958   :  { %2648 = vmatpush1.msra.mxu0 %v2613_v14 }
 0x959   :  { %2649 = vmatprep.subr.mxu0 %v2612_v15 }
 0x95a   :  { %2650 = vmatpush1.msra.mxu0 %v2611_v16 }
 0x95b   :  { %2651 = vmatprep.subr.mxu0 %v2610_v18 }
 0x95c   :  { %2652 = vmatpush1.msra.mxu0 %v2609_v19 }
 0x95d   :  { %2653 = vmatprep.subr.mxu0 %v2608_v20 }
 0x95e   :  { %2654 = vmatpush1.msra.mxu0 %v2607_v21 }
 0x95f   :  { %2655 = vmatprep.subr.mxu0 %v2606_v22 }
 0x960   :  { %2656 = vmatpush1.msra.mxu0 %v2605_v23  ;;  %v2393_v23 = vld [vmem:[#allocation15] sm:$0x1] }
 0x961   :  { %2657 = vmatprep.subr.mxu0 %v2604_v24 }
 0x962   :  { %2658 = vmatpush1.msra.mxu0 %v2603_v25 }
 0x963   :  { %2659 = vmatprep.subr.mxu0 %v2602_v26 }
 0x964   :  { %2660 = vmatpush1.msra.mxu0 %v2601_v27  ;;  %v2395_v27 = vld [vmem:[#allocation16] sm:$0x1] }
 0x965   :  { %2661 = vmatprep.subr.mxu0 %v2600_v28  ;;  %v2760_v28 = vld [vmem:[#allocation19 + $0x2f8] sm:$0xff] }
 0x966   :  { %2662 = vmatpush1.msra.mxu0 %v2599_v9 }
 0x967   :  { %2663 = vmatprep.subr.mxu0 %v2598_v29  ;;  %v2759_v29 = vld [vmem:[#allocation19 + $0x2f0] sm:$0xff] }
 0x968   :  { %2664 = vmatpush1.msra.mxu0 %v2597_v56  ;;  %v2756_v56 = vld [vmem:[#allocation19 + $0x2d8] sm:$0xff] }
 0x969   :  { %2665 = vmatprep.subr.mxu0 %v2596_v39  ;;  %v2752_v39 = vld [vmem:[#allocation19 + $0x2b8] sm:$0xff] }
 0x96a   :  { %2666 = vmatpush1.msra.mxu0 %v2595_v60  ;;  %v2750_v60 = vld [vmem:[#allocation19 + $0x2a8] sm:$0xff] }
 0x96b   :  { %2667 = vmatprep.subr.mxu0 %v2594_v30  ;;  %v2748_v30 = vld [vmem:[#allocation19 + $0x298] sm:$0xff] }
 0x96c   :  { %2668 = vmatpush1.msra.mxu0 %v2593_v31  ;;  %v2747_v31 = vld [vmem:[#allocation19 + $0x290] sm:$0xff] }
 0x96d   :  { %2669 = vmatprep.subr.mxu0 %v2592_v32  ;;  %v2746_v32 = vld [vmem:[#allocation19 + $0x288] sm:$0xff] }
 0x96e   :  { %2670 = vmatpush1.msra.mxu0 %v2591_v33  ;;  %v2745_v33 = vld [vmem:[#allocation19 + $0x280] sm:$0xff] }
 0x96f   :  { %2671 = vmatprep.subr.mxu0 %v2590_v34  ;;  %v2744_v34 = vld [vmem:[#allocation19 + $0x278] sm:$0xff] }
 0x970   :  { %2672 = vmatpush1.msra.mxu0 %v2589_v35  ;;  %v2743_v35 = vld [vmem:[#allocation19 + $0x270] sm:$0xff] }
 0x971   :  { %2673 = vmatprep.subr.mxu0 %v2588_v36  ;;  %v2742_v36 = vld [vmem:[#allocation19 + $0x268] sm:$0xff] }
 0x972   :  { %2674 = vmatpush1.msra.mxu0 %v2587_v37  ;;  %v2741_v37 = vld [vmem:[#allocation19 + $0x260] sm:$0xff] }
 0x973   :  { %2675 = vmatprep.subr.mxu0 %v2586_v38  ;;  %v2740_v38 = vld [vmem:[#allocation19 + $0x258] sm:$0xff] }
 0x974   :  { %2676 = vmatpush1.msra.mxu0 %v2585_v13  ;;  %v2739_v13 = vld [vmem:[#allocation19 + $0x250] sm:$0xff] }
 0x975   :  { %2677 = vmatprep.subr.mxu0 %v2584_v40  ;;  %v2738_v40 = vld [vmem:[#allocation19 + $0x248] sm:$0xff] }
 0x976   :  { %2678 = vmatpush1.msra.mxu0 %v2583_v17  ;;  %v2737_v17 = vld [vmem:[#allocation19 + $0x240] sm:$0xff] }
 0x977   :  { %2679 = vmatprep.subr.mxu0 %v2646_v41  ;;  %v2736_v41 = vld [vmem:[#allocation19 + $0x238] sm:$0xff] }
 0x978   :  { %2680 = vmatpush2.msra.mxu0 %v2645_v42  ;;  %v2735_v42 = vld [vmem:[#allocation19 + $0x230] sm:$0xff] }
 0x979   :  { %2681 = vmatprep.subr.mxu0 %v2644_v43  ;;  %v2734_v43 = vld [vmem:[#allocation19 + $0x228] sm:$0xff] }
 0x97a   :  { %2682 = vmatpush2.msra.mxu0 %v2643_v44  ;;  %v2733_v44 = vld [vmem:[#allocation19 + $0x220] sm:$0xff] }
 0x97b   :  { %2683 = vmatprep.subr.mxu0 %v2642_v45  ;;  %v2732_v45 = vld [vmem:[#allocation19 + $0x218] sm:$0xff] }
 0x97c   :  { %2684 = vmatpush2.msra.mxu0 %v2641_v46  ;;  %v2731_v46 = vld [vmem:[#allocation19 + $0x210] sm:$0xff] }
 0x97d   :  { %2685 = vmatprep.subr.mxu0 %v2640_v48  ;;  %v2730_v48 = vld [vmem:[#allocation19 + $0x208] sm:$0xff] }
 0x97e   :  { %2686 = vmatpush2.msra.mxu0 %v2639_v51  ;;  %v2729_v51 = vld [vmem:[#allocation19 + $0x200] sm:$0xff] }
 0x97f   :  { %2687 = vmatprep.subr.mxu0 %v2638_v54  ;;  %v2792_v54 = vld [vmem:[#allocation19 + $0x3f8] sm:$0xff] }
 0x980   :  { %2688 = vmatpush2.msra.mxu0 %v2637_v53  ;;  %v2791_v53 = vld [vmem:[#allocation19 + $0x3f0] sm:$0xff] }
 0x981   :  { %2689 = vmatprep.subr.mxu0 %v2636_v55  ;;  %v2790_v55 = vld [vmem:[#allocation19 + $0x3e8] sm:$0xff] }
 0x982   :  { %2690 = vmatpush2.msra.mxu0 %v2635_v57  ;;  %v2789_v57 = vld [vmem:[#allocation19 + $0x3e0] sm:$0xff] }
 0x983   :  { %2691 = vmatprep.subr.mxu0 %v2634_v58  ;;  %v2788_v58 = vld [vmem:[#allocation19 + $0x3d8] sm:$0xff] }
 0x984   :  { %2692 = vmatpush2.msra.mxu0 %v2633_v59  ;;  %v2787_v59 = vld [vmem:[#allocation19 + $0x3d0] sm:$0xff] }
 0x985   :  { %2693 = vmatprep.subr.mxu0 %v2632_v61  ;;  %v2786_v61 = vld [vmem:[#allocation19 + $0x3c8] sm:$0xff] }
 0x9f7   :  { %v4516_v62 = vpop.f32.mrf.mxu0 }
 0x9f9   :  { %v4517_v63 = vpop.f32.mrf.mxu0 }
 0x9fa   :  { %v4518_v1 = vadd.f32 %v4517_v63, %v4516_v62  ;;  %v2785_v62 = vld [vmem:[#allocation19 + $0x3c0] sm:$0xff]  ;;  %v2784_v63 = vld [vmem:[#allocation19 + $0x3b8] sm:$0xff] }
 0x9fc   :  { %v2386_v14 = vmul.f32 0.010204081, %v4518_v1  ;;  %v2783_v1 = vld [vmem:[#allocation19 + $0x3b0] sm:$0xff] }
 0x9fe   :  { %v2388_v18 = vmul.f32 %v2386_v14, %v2386_v14 }
 0xa17   :  { %v4551_v12 = vpop.f32.mrf.mxu0 }
 0xa19   :  { %v4552_v15 = vpop.f32.mrf.mxu0 }
 0xa1a   :  { %v4553_v16 = vadd.f32 %v4552_v15, %v4551_v12  ;;  %v2782_v12 = vld [vmem:[#allocation19 + $0x3a8] sm:$0xff]  ;;  %v2780_v15 = vld [vmem:[#allocation19 + $0x398] sm:$0xff] }
 0xa1c   :  { %v2387_v19 = vmul.f32 0.010204081, %v4553_v16  ;;  %v2779_v16 = vld [vmem:[#allocation19 + $0x390] sm:$0xff] }
 0xa1e   :  { %v2389_v20 = vsub.f32 %v2387_v19, %v2388_v18  ;;  %v2778_v18 = vld [vmem:[#allocation19 + $0x388] sm:$0xff]  ;;  %v2631_v19 = vld [vmem:[#allocation19 + $0x180] sm:$0xff] }
 0xa1f   :  { %2694 = vmatpush2.msra.mxu0 %v2631_v19 }
 0xa20   :  { %v2390_v21 = vmax.f32 %v2389_v20, 0.0  ;;  %v2777_v20 = vld [vmem:[#allocation19 + $0x380] sm:$0xff] }
 0xa22   :  { %v2391_v22 = vadd.f32 1e-05, %v2390_v21  ;;  %v2630_v21 = vld [vmem:[#allocation19 + $0x178] sm:$0xff] }
 0xa23   :  { %2695 = vmatprep.subr.mxu0 %v2630_v21  ;;  %v2724_v21 = vld [vmem:[%s6611_s18] sm:$0xff] }
 0xa24   :  { %4843 = vrsqrt.f32 %v2391_v22  ;;  %v2776_v22 = vld [vmem:[#allocation19 + $0x378] sm:$0xff] }
 0xa31   :  { %v4844_v24 = vpop.eup %4843 }
 0xa32   :  { %v2394_v25 = vmul.f32 %v4844_v24, %v2393_v23  ;;  %v2629_v23 = vld [vmem:[#allocation19 + $0x170] sm:$0xff] }
 0xa33   :  { %v2775_v24 = vld [vmem:[#allocation19 + $0x370] sm:$0xff]  ;;  %2696 = vmatpush2.msra.mxu0 %v2629_v23 }
 0xa34   :  { %4337 = vmatmul.mubr.msk.f32.vlgmr.msra.gmra.mxu1 %vm2406_vm7, %v2394_v25  ;;  %v2396_v26 = vmul.f32 %v2394_v25, %v2386_v14  ;;  %v2781_v14 = vld [vmem:[#allocation19 + $0x3a0] sm:$0xff]  ;;  %v2628_v25 = vld [vmem:[#allocation19 + $0x168] sm:$0xff]  ;;  %v3121_v23 = vld [vmem:[#allocation19 + $0x4f0] sm:$0xff] }
 0xa35   :  { %2509 = vmatpush1.msra.mxu1 %v6232_v2  ;;  %2548 = vmatprep.mubr.f32.mxu1 %v5187_v0  ;;  %v2758_v2 = vld [vmem:[#allocation19 + $0x2e8] sm:$0xff] }
 0xa36   :  { %2510 = vmatprep.subr.mxu1 %v6234_v3  ;;  %v2397_v9 = vsub.f32 %v2395_v27, %v2396_v26  ;;  %v2757_v3 = vld [vmem:[#allocation19 + $0x2e0] sm:$0xff]  ;;  %v2774_v26 = vld [vmem:[#allocation19 + $0x368] sm:$0xff]  ;;  %2697 = vmatprep.subr.mxu0 %v2628_v25 }
 0xa37   :  { %2511 = vmatpush1.msra.mxu1 %v6236_v5  ;;  %v2755_v5 = vld [vmem:[#allocation19 + $0x2d0] sm:$0xff]  ;;  %v2627_v27 = vld [vmem:[#allocation19 + $0x160] sm:$0xff] }
 0xa38   :  { %2512 = vmatprep.subr.mxu1 %v6239_v7  ;;  %v2754_v7 = vld [vmem:[#allocation19 + $0x2c8] sm:$0xff]  ;;  %2698 = vmatpush2.msra.mxu0 %v2627_v27  ;;  %v3119_v25 = vld [vmem:[#allocation19 + $0x4e0] sm:$0xff] }
 0xa39   :  { %2513 = vmatpush1.msra.mxu1 %v6242_v8  ;;  %v2753_v8 = vld [vmem:[#allocation19 + $0x2c0] sm:$0xff]  ;;  %v4340_v27 = vld [vmem:[%s6611_s18 + $0x28] sm:$0xff] }
 0xa3a   :  { %2514 = vmatprep.subr.mxu1 %v6245_v10  ;;  %v2751_v10 = vld [vmem:[#allocation19 + $0x2b0] sm:$0xff] }
 0xa3b   :  { %2515 = vmatpush1.msra.mxu1 %v6248_v11  ;;  %v2749_v11 = vld [vmem:[#allocation19 + $0x2a0] sm:$0xff] }
 0xa3c   :  { %4338 = vmatmul.mubr.msk.f32.vlgmr.msra.gmra.mxu1 %vm2406_vm7, %v2397_v9  ;;  %2793 = vmatprep.subr.mxu1 %v2760_v28  ;;  %v2773_v28 = vld [vmem:[#allocation19 + $0x360] sm:$0xff]  ;;  %v2626_v9 = vld [vmem:[#allocation19 + $0x158] sm:$0xff] }
 0xa3d   :  { %2794 = vmatpush1.msra.mxu1 %v2759_v29  ;;  %v2772_v29 = vld [vmem:[#allocation19 + $0x358] sm:$0xff]  ;;  %2699 = vmatprep.subr.mxu0 %v2626_v9  ;;  %v3117_v9 = vld [vmem:[#allocation19 + $0x4d0] sm:$0xff] }
 0xa3e   :  { %2795 = vmatprep.subr.mxu1 %v2758_v2  ;;  %v2625_v2 = vld [vmem:[#allocation19 + $0x150] sm:$0xff] }
 0xa3f   :  { %2796 = vmatpush1.msra.mxu1 %v2757_v3  ;;  %v2771_v3 = vld [vmem:[#allocation19 + $0x350] sm:$0xff]  ;;  %2700 = vmatpush2.msra.mxu0 %v2625_v2  ;;  %v3115_v2 = vld [vmem:[#allocation19 + $0x4c0] sm:$0xff] }
 0xa40   :  { %2797 = vmatprep.subr.mxu1 %v2756_v56  ;;  %v2624_v56 = vld [vmem:[#allocation19 + $0x148] sm:$0xff] }
 0xa41   :  { %2798 = vmatpush1.msra.mxu1 %v2755_v5  ;;  %v2770_v5 = vld [vmem:[#allocation19 + $0x348] sm:$0xff]  ;;  %2701 = vmatprep.subr.mxu0 %v2624_v56  ;;  %v4341_v56 = vld [vmem:[%s6611_s18 + $0x30] sm:$0xff] }
 0xa42   :  { %2799 = vmatprep.subr.mxu1 %v2754_v7  ;;  %v2623_v7 = vld [vmem:[#allocation19 + $0x140] sm:$0xff] }
 0xa43   :  { %2800 = vmatpush1.msra.mxu1 %v2753_v8  ;;  %v2769_v8 = vld [vmem:[#allocation19 + $0x340] sm:$0xff]  ;;  %2702 = vmatpush2.msra.mxu0 %v2623_v7  ;;  %v3113_v7 = vld [vmem:[#allocation19 + $0x4b0] sm:$0xff] }
 0xa44   :  { %2801 = vmatprep.subr.mxu1 %v2752_v39  ;;  %v2622_v39 = vld [vmem:[#allocation19 + $0x138] sm:$0xff] }
 0xa45   :  { %2802 = vmatpush1.msra.mxu1 %v2751_v10  ;;  %v2768_v10 = vld [vmem:[#allocation19 + $0x338] sm:$0xff]  ;;  %2703 = vmatprep.subr.mxu0 %v2622_v39  ;;  %v3111_v39 = vld [vmem:[#allocation19 + $0x4a0] sm:$0xff] }
 0xa46   :  { %2803 = vmatprep.subr.mxu1 %v2750_v60  ;;  %v2621_v60 = vld [vmem:[#allocation19 + $0x130] sm:$0xff] }
 0xa47   :  { %2804 = vmatpush1.msra.mxu1 %v2749_v11  ;;  %v2767_v11 = vld [vmem:[#allocation19 + $0x330] sm:$0xff]  ;;  %2704 = vmatpush2.msra.mxu0 %v2621_v60  ;;  %v4342_v60 = vld [vmem:[%s6611_s18 + $0x38] sm:$0xf] }
 0xa48   :  { %2805 = vmatprep.subr.mxu1 %v2748_v30  ;;  %v2620_v30 = vld [vmem:[#allocation19 + $0x128] sm:$0xff] }
 0xa49   :  { %2806 = vmatpush1.msra.mxu1 %v2747_v31  ;;  %v2766_v31 = vld [vmem:[#allocation19 + $0x328] sm:$0xff]  ;;  %2705 = vmatprep.subr.mxu0 %v2620_v30  ;;  %v3109_v30 = vld [vmem:[#allocation19 + $0x490] sm:$0xff] }
 0xa4a   :  { %2807 = vmatprep.subr.mxu1 %v2746_v32  ;;  %v2619_v32 = vld [vmem:[#allocation19 + $0x120] sm:$0xff] }
 0xa4b   :  { %2808 = vmatpush1.msra.mxu1 %v2745_v33  ;;  %v2765_v33 = vld [vmem:[#allocation19 + $0x320] sm:$0xff]  ;;  %2706 = vmatpush2.msra.mxu0 %v2619_v32 }
 0xa4c   :  { %2809 = vmatprep.subr.mxu1 %v2744_v34  ;;  %v2618_v34 = vld [vmem:[#allocation19 + $0x118] sm:$0xff]  ;;  %v3107_v32 = vld [vmem:[#allocation19 + $0x480] sm:$0xff] }
 0xa4d   :  { %2810 = vmatpush1.msra.mxu1 %v2743_v35  ;;  %v2764_v35 = vld [vmem:[#allocation19 + $0x318] sm:$0xff]  ;;  %2707 = vmatprep.subr.mxu0 %v2618_v34  ;;  %v3105_v34 = vld [vmem:[#allocation19 + $0x470] sm:$0xff] }
 0xa4e   :  { %2811 = vmatprep.subr.mxu1 %v2742_v36  ;;  %v2617_v36 = vld [vmem:[#allocation19 + $0x110] sm:$0xff] }
 0xa4f   :  { %2812 = vmatpush1.msra.mxu1 %v2741_v37  ;;  %v2763_v37 = vld [vmem:[#allocation19 + $0x310] sm:$0xff]  ;;  %2708 = vmatpush2.msra.mxu0 %v2617_v36  ;;  %v3103_v36 = vld [vmem:[#allocation19 + $0x460] sm:$0xff] }
 0xa50   :  { %2813 = vmatprep.subr.mxu1 %v2740_v38  ;;  %v2616_v38 = vld [vmem:[#allocation19 + $0x108] sm:$0xff] }
 0xa51   :  { %2814 = vmatpush1.msra.mxu1 %v2739_v13  ;;  %v2762_v13 = vld [vmem:[#allocation19 + $0x308] sm:$0xff]  ;;  %2709 = vmatprep.subr.mxu0 %v2616_v38  ;;  %v3101_v38 = vld [vmem:[#allocation19 + $0x450] sm:$0xff] }
 0xa52   :  { %2815 = vmatprep.subr.mxu1 %v2738_v40  ;;  %v2615_v40 = vld [vmem:[#allocation19 + $0x100] sm:$0xff] }
 0xa53   :  { %2816 = vmatpush1.msra.mxu1 %v2737_v17  ;;  %v2761_v17 = vld [vmem:[#allocation19 + $0x300] sm:$0xff]  ;;  %2710 = vmatpush2.msra.mxu0 %v2615_v40 }
 0xa54   :  { %2817 = vmatprep.subr.mxu1 %v2736_v41  ;;  %v3099_v40 = vld [vmem:[#allocation19 + $0x440] sm:$0xff] }
 0xa55   :  { %2818 = vmatpush1.msra.mxu1 %v2735_v42 }
 0xa56   :  { %2819 = vmatprep.subr.mxu1 %v2734_v43 }
 0xa57   :  { %2820 = vmatpush1.msra.mxu1 %v2733_v44 }
 0xa58   :  { %2821 = vmatprep.subr.mxu1 %v2732_v45 }
 0xa59   :  { %2822 = vmatpush1.msra.mxu1 %v2731_v46 }
 0xa5a   :  { %2823 = vmatprep.subr.mxu1 %v2730_v48 }
 0xa5b   :  { %2824 = vmatpush1.msra.mxu1 %v2729_v51 }
 0xa5c   :  { %2825 = vmatprep.subr.mxu1 %v2792_v54 }
 0xa5d   :  { %2826 = vmatpush2.msra.mxu1 %v2791_v53 }
 0xa5e   :  { %2827 = vmatprep.subr.mxu1 %v2790_v55 }
 0xa5f   :  { %2828 = vmatpush2.msra.mxu1 %v2789_v57 }
 0xa60   :  { %2829 = vmatprep.subr.mxu1 %v2788_v58 }
 0xa61   :  { %2830 = vmatpush2.msra.mxu1 %v2787_v59 }
 0xa62   :  { %2831 = vmatprep.subr.mxu1 %v2786_v61 }
 0xa63   :  { %2832 = vmatpush2.msra.mxu1 %v2785_v62 }
 0xa64   :  { %2833 = vmatprep.subr.mxu1 %v2784_v63 }
 0xa65   :  { %2834 = vmatpush2.msra.mxu1 %v2783_v1 }
 0xa66   :  { %2835 = vmatprep.subr.mxu1 %v2782_v12 }
 0xa67   :  { %2836 = vmatpush2.msra.mxu1 %v2781_v14 }
 0xa68   :  { %2837 = vmatprep.subr.mxu1 %v2780_v15 }
 0xa69   :  { %2838 = vmatpush2.msra.mxu1 %v2779_v16 }
 0xa6a   :  { %2839 = vmatprep.subr.mxu1 %v2778_v18 }
 0xa6b   :  { %2840 = vmatpush2.msra.mxu1 %v2777_v20  ;;  %v4339_v20 = vld [vmem:[%s6611_s18 + $0x20] sm:$0xff] }
 0xa6c   :  { %2841 = vmatprep.subr.mxu1 %v2776_v22  ;;  %v3122_v22 = vld [vmem:[#allocation19 + $0x4f8] sm:$0xff] }
 0xa6d   :  { %2842 = vmatpush2.msra.mxu1 %v2775_v24  ;;  %v3120_v24 = vld [vmem:[#allocation19 + $0x4e8] sm:$0xff] }
 0xa6e   :  { %2843 = vmatprep.subr.mxu1 %v2774_v26  ;;  %v2725_v26 = vld [vmem:[%s6611_s18 + $0x8] sm:$0xff] }
 0xa6f   :  { %2844 = vmatpush2.msra.mxu1 %v2773_v28  ;;  %v3118_v28 = vld [vmem:[#allocation19 + $0x4d8] sm:$0xff] }
 0xa70   :  { %2845 = vmatprep.subr.mxu1 %v2772_v29  ;;  %v3116_v29 = vld [vmem:[#allocation19 + $0x4c8] sm:$0xff] }
 0xa71   :  { %2846 = vmatpush2.msra.mxu1 %v2771_v3  ;;  %v2726_v3 = vld [vmem:[%s6611_s18 + $0x10] sm:$0xff] }
 0xa72   :  { %2847 = vmatprep.subr.mxu1 %v2770_v5  ;;  %v3114_v5 = vld [vmem:[#allocation19 + $0x4b8] sm:$0xff] }
 0xa73   :  { %2848 = vmatpush2.msra.mxu1 %v2769_v8  ;;  %v3112_v8 = vld [vmem:[#allocation19 + $0x4a8] sm:$0xff] }
 0xa74   :  { %2849 = vmatprep.subr.mxu1 %v2768_v10  ;;  %v2727_v10 = vld [vmem:[%s6611_s18 + $0x18] sm:$0xf] }
 0xa75   :  { %2850 = vmatpush2.msra.mxu1 %v2767_v11  ;;  %v3110_v11 = vld [vmem:[#allocation19 + $0x498] sm:$0xff] }
 0xa76   :  { %2851 = vmatprep.subr.mxu1 %v2766_v31  ;;  %v3108_v31 = vld [vmem:[#allocation19 + $0x488] sm:$0xff] }
 0xa77   :  { %2852 = vmatpush2.msra.mxu1 %v2765_v33  ;;  %v3106_v33 = vld [vmem:[#allocation19 + $0x478] sm:$0xff] }
 0xa78   :  { %2853 = vmatprep.subr.mxu1 %v2764_v35  ;;  %v3104_v35 = vld [vmem:[#allocation19 + $0x468] sm:$0xff] }
 0xa79   :  { %2854 = vmatpush2.msra.mxu1 %v2763_v37  ;;  %v3102_v37 = vld [vmem:[#allocation19 + $0x458] sm:$0xff] }
 0xa7a   :  { %2855 = vmatprep.subr.mxu1 %v2762_v13  ;;  %v3100_v13 = vld [vmem:[#allocation19 + $0x448] sm:$0xff] }
 0xa7b   :  { %2856 = vmatpush2.msra.mxu1 %v2761_v17  ;;  %v3098_v17 = vld [vmem:[#allocation19 + $0x438] sm:$0xff] }
 0xaf4   :  { %v2476_v41 = vpop.f32.mrf.mxu1 }
 0xaf5   :  { %v2558_v43 = vrot.slane %v2476_v41, %v5904_v4  ;;  %v3097_v41 = vld [vmem:[#allocation19 + $0x430] sm:$0xff] }
 0xaf6   :  { %v2478_v42 = vpop.f32.mrf.mxu1 }
 0xaf7   :  { %v2562_v44 = vrot.slane %v2478_v42, %v5904_v4  ;;  %v2563_v48 = vmul.f32 %v2558_v43, %v6179_v49  ;;  %v2565_v61 = vmul.f32 %v2558_v43, %v6177_v47  ;;  %v3096_v42 = vld [vmem:[#allocation19 + $0x428] sm:$0xff]  ;;  %v3095_v43 = vld [vmem:[#allocation19 + $0x420] sm:$0xff] }
 0xaf9   :  { %v2564_v54 = vmul.f32 %v2562_v44, %v6181_v50  ;;  %v2566_v53 = vmul.f32 %v2562_v44, %v6185_v52  ;;  %v3094_v44 = vld [vmem:[#allocation19 + $0x418] sm:$0xff] }
 0xafc   :  { %v2550_v45 = vpop.f32.mrf.mxu1 }
 0xafd   :  { %v2570_v46 = vrot.slane %v2550_v45, %v5904_v4  ;;  %v3093_v45 = vld [vmem:[#allocation19 + $0x410] sm:$0xff] }
 0xafe   :  { %v2552_v51 = vpop.f32.mrf.mxu1 }
 0xaff   :  { %v2574_v55 = vrot.slane %v2552_v51, %v5904_v4  ;;  %v2575_v57 = vadd.f32 %v2570_v46, %v2563_v48  ;;  %v2577_v63 = vadd.f32 %v2570_v46, %v2565_v61  ;;  %v3092_v46 = vld [vmem:[#allocation19 + $0x408] sm:$0xff]  ;;  %v3091_v48 = vld [vmem:[#allocation19 + $0x400] sm:$0xff]  ;;  %v3154_v51 = vld [vmem:[#allocation19 + $0x5f8] sm:$0xff] }
 0xb00   :  { %v3147_v61 = vld [vmem:[#allocation19 + $0x5c0] sm:$0xff] }
 0xb01   :  { %v2576_v58 = vadd.f32 %v2574_v55, %v2564_v54  ;;  %v2578_v59 = vadd.f32 %v2574_v55, %v2566_v53  ;;  %v6273_v1 = vmax.f32 %v2575_v57, 0.0  ;;  %v6283_v47 = vmax.f32 %v2577_v63, 0.0  ;;  %v3153_v54 = vld [vmem:[#allocation19 + $0x5f0] sm:$0xff]  ;;  %v3152_v53 = vld [vmem:[#allocation19 + $0x5e8] sm:$0xff]  ;;  %v3151_v55 = vld [vmem:[#allocation19 + $0x5e0] sm:$0xff] }
 0xb02   :  { %v3150_v57 = vld [vmem:[#allocation19 + $0x5d8] sm:$0xff]  ;;  %v3145_v63 = vld [vmem:[#allocation19 + $0x5b0] sm:$0xff] }
 0xb03   :  { %v6271_v62 = vmax.f32 %v2576_v58, 0.0  ;;  %v6275_v12 = vmax.f32 %v2578_v59, 0.0  ;;  %v3149_v58 = vld [vmem:[#allocation19 + $0x5d0] sm:$0xff]  ;;  %v3148_v59 = vld [vmem:[#allocation19 + $0x5c8] sm:$0xff] }
 0xb05   :  { %2711 = vmatprep.mubr.f32.mxu0 %v6271_v62  ;;  %2857 = vmatprep.mubr.f32.mxu1 %v6271_v62 }
 0xb06   :  { %2712 = vmatmul.mubr.f32.vlgmr.msra.gmra.mxu0 %v6273_v1  ;;  %2858 = vmatmul.mubr.f32.vlgmr.msra.gmra.mxu1 %v6273_v1 }
 0xb07   :  { %2717 = vmatprep.mubr.f32.mxu0 %v6275_v12  ;;  %2863 = vmatprep.mubr.f32.mxu1 %v6275_v12 }
 0xb0a   :  { %2718 = vmatmul.mubr.f32.gmra.mxu0 %v6283_v47  ;;  %2864 = vmatmul.mubr.f32.gmra.mxu1 %v6283_v47 }
 0xb0b   :  { %2958 = vmatprep.mubr.f32.mxu0 %v5187_v0  ;;  %3065 = vmatprep.mubr.f32.mxu1 %v5187_v0 }
 0xbc6   :  { %v2713_v49 = vpop.f32.mrf.mxu0  ;;  %v2859_v50 = vpop.f32.mrf.mxu1 }
 0xbc8   :  { %v2715_v52 = vpop.f32.mrf.mxu0  ;;  %v2861_v14 = vpop.f32.mrf.mxu1 }
 0xbca   :  { %v2719_v15 = vpop.f32.mrf.mxu0  ;;  %v2865_v16 = vpop.f32.mrf.mxu1 }
 0xbcc   :  { %v2721_v18 = vpop.f32.mrf.mxu0  ;;  %v2867_v19 = vpop.f32.mrf.mxu1 }
 0xbcd   :  { %4343 = vmatprep.subr.msk.mxu0 %vm2177_vm6, %v2867_v19  ;;  %4349 = vmatprep.subr.msk.mxu1 %vm2177_vm6, %v2721_v18  ;;  %v3138_v18 = vld [vmem:[#allocation19 + $0x578] sm:$0xff]  ;;  %v3137_v19 = vld [vmem:[#allocation19 + $0x570] sm:$0xff] }
 0xbce   :  { %4344 = vmatpush1.msk.msra.mxu0 %vm2177_vm6, %v2865_v16  ;;  %4350 = vmatpush1.msk.msra.mxu1 %vm2177_vm6, %v2719_v15  ;;  %v3140_v15 = vld [vmem:[#allocation19 + $0x588] sm:$0xff]  ;;  %v3139_v16 = vld [vmem:[#allocation19 + $0x580] sm:$0xff] }
 0xbcf   :  { %2924 = vmatprep.subr.mxu0 %v2861_v14  ;;  %3031 = vmatprep.subr.mxu1 %v2715_v52  ;;  %v3142_v52 = vld [vmem:[#allocation19 + $0x598] sm:$0xff]  ;;  %v3141_v14 = vld [vmem:[#allocation19 + $0x590] sm:$0xff] }
 0xbd0   :  { %2925 = vmatpush1.msra.mxu0 %v2859_v50  ;;  %3032 = vmatpush1.msra.mxu1 %v2713_v49  ;;  %v3144_v49 = vld [vmem:[#allocation19 + $0x5a8] sm:$0xff]  ;;  %v3143_v50 = vld [vmem:[#allocation19 + $0x5a0] sm:$0xff] }
 0xbd1   :  { %4345 = vmatmul.mubr.msk.f32.vlgmr.msra.gmra.mxu0 %vm2875_vm8, %v4339_v20  ;;  %4351 = vmatmul.mubr.msk.f32.vlgmr.msra.gmra.mxu1 %vm2875_vm8, %v2724_v21  ;;  %v3136_v20 = vld [vmem:[#allocation19 + $0x568] sm:$0xff]  ;;  %v3135_v21 = vld [vmem:[#allocation19 + $0x560] sm:$0xff] }
 0xbd2   :  { %3155 = vmatprep.subr.mxu0 %v3122_v22  ;;  %2964 = vmatprep.mubr.f32.mxu0 %v5187_v0  ;;  %v3134_v22 = vld [vmem:[#allocation19 + $0x558] sm:$0xff] }
 0xbd3   :  { %3156 = vmatpush1.msra.mxu0 %v3121_v23  ;;  %3071 = vmatprep.mubr.f32.mxu1 %v5187_v0  ;;  %v3133_v23 = vld [vmem:[#allocation19 + $0x550] sm:$0xff] }
 0xbd4   :  { %3157 = vmatprep.subr.mxu0 %v3120_v24  ;;  %v3132_v24 = vld [vmem:[#allocation19 + $0x548] sm:$0xff] }
 0xbd5   :  { %3158 = vmatpush1.msra.mxu0 %v3119_v25  ;;  %4352 = vmatmul.mubr.msk.f32.gmra.mxu1 %vm2875_vm8, %v2725_v26  ;;  %v3131_v25 = vld [vmem:[#allocation19 + $0x540] sm:$0xff]  ;;  %v3130_v26 = vld [vmem:[#allocation19 + $0x538] sm:$0xff] }
 0xbd6   :  { %4346 = vmatmul.mubr.msk.f32.gmra.mxu0 %vm2875_vm8, %v4340_v27  ;;  %3159 = vmatprep.subr.mxu0 %v3118_v28  ;;  %v3129_v27 = vld [vmem:[#allocation19 + $0x530] sm:$0xff]  ;;  %v3128_v28 = vld [vmem:[#allocation19 + $0x528] sm:$0xff] }
 0xbd7   :  { %3160 = vmatpush1.msra.mxu0 %v3117_v9  ;;  %2970 = vmatprep.mubr.f32.mxu0 %v5187_v0  ;;  %v3127_v9 = vld [vmem:[#allocation19 + $0x520] sm:$0xff] }
 0xbd8   :  { %3161 = vmatprep.subr.mxu0 %v3116_v29  ;;  %3077 = vmatprep.mubr.f32.mxu1 %v5187_v0  ;;  %v3126_v29 = vld [vmem:[#allocation19 + $0x518] sm:$0xff] }
 0xbd9   :  { %3162 = vmatpush1.msra.mxu0 %v3115_v2  ;;  %4353 = vmatmul.mubr.msk.f32.gmra.mxu1 %vm2875_vm8, %v2726_v3  ;;  %v3125_v2 = vld [vmem:[#allocation19 + $0x510] sm:$0xff]  ;;  %v3124_v3 = vld [vmem:[#allocation19 + $0x508] sm:$0xff] }
 0xbda   :  { %4347 = vmatmul.mubr.msk.f32.gmra.mxu0 %vm2875_vm8, %v4341_v56  ;;  %3163 = vmatprep.subr.mxu0 %v3114_v5  ;;  %v3123_v56 = vld [vmem:[#allocation19 + $0x500] sm:$0xff] }
 0xbdb   :  { %3164 = vmatpush1.msra.mxu0 %v3113_v7  ;;  %2976 = vmatprep.mubr.f32.mxu0 %v5187_v0 }
 0xbdc   :  { %3165 = vmatprep.subr.mxu0 %v3112_v8  ;;  %3083 = vmatprep.mubr.f32.mxu1 %v5187_v0 }
 0xbdd   :  { %3166 = vmatpush1.msra.mxu0 %v3111_v39  ;;  %4354 = vmatmul.mubr.msk.f32.gmra.mxu1 %vm2875_vm8, %v2727_v10 }
 0xbde   :  { %4348 = vmatmul.mubr.msk.f32.gmra.mxu0 %vm2875_vm8, %v4342_v60  ;;  %3167 = vmatprep.subr.mxu0 %v3110_v11 }
 0xbdf   :  { %3168 = vmatpush1.msra.mxu0 %v3109_v30  ;;  %3219 = vmatprep.mubr.f32.mxu0 %v6271_v62  ;;  %v3146_v62 = vld [vmem:[#allocation19 + $0x5b8] sm:$0xff] }
 0xbe0   :  { %3169 = vmatprep.subr.mxu0 %v3108_v31  ;;  %3319 = vmatprep.mubr.f32.mxu1 %v5187_v0 }
 0xbe1   :  { %3170 = vmatpush1.msra.mxu0 %v3107_v32  ;;  %v4355_v32 = vld [vmem:[%s6611_s18 + $0x40] sm:$0xff] }
 0xbe2   :  { %3171 = vmatprep.subr.mxu0 %v3106_v33  ;;  %v3411_v33 = vld [vmem:[#allocation22 + $0xf8] sm:$0xff] }
 0xbe3   :  { %3172 = vmatpush1.msra.mxu0 %v3105_v34  ;;  %v3395_v34 = vld [vmem:[#allocation22 + $0x78] sm:$0xff] }
 0xbe4   :  { %3173 = vmatprep.subr.mxu0 %v3104_v35  ;;  %v3410_v35 = vld [vmem:[#allocation22 + $0xf0] sm:$0xff] }
 0xbe5   :  { %3174 = vmatpush1.msra.mxu0 %v3103_v36  ;;  %v3394_v36 = vld [vmem:[#allocation22 + $0x70] sm:$0xff] }
 0xbe6   :  { %3175 = vmatprep.subr.mxu0 %v3102_v37  ;;  %v4356_v37 = vld [vmem:[%s6611_s18 + $0x48] sm:$0xff] }
 0xbe7   :  { %3176 = vmatpush1.msra.mxu0 %v3101_v38  ;;  %v3409_v38 = vld [vmem:[#allocation22 + $0xe8] sm:$0xff] }
 0xbe8   :  { %3177 = vmatprep.subr.mxu0 %v3100_v13  ;;  %v3393_v13 = vld [vmem:[#allocation22 + $0x68] sm:$0xff] }
 0xbe9   :  { %3178 = vmatpush1.msra.mxu0 %v3099_v40  ;;  %v3408_v40 = vld [vmem:[#allocation22 + $0xe0] sm:$0xff] }
 0xbea   :  { %3179 = vmatprep.subr.mxu0 %v3098_v17  ;;  %v3392_v17 = vld [vmem:[#allocation22 + $0x60] sm:$0xff] }
 0xbeb   :  { %3180 = vmatpush1.msra.mxu0 %v3097_v41  ;;  %v4357_v41 = vld [vmem:[%s6611_s18 + $0x50] sm:$0xff] }
 0xbec   :  { %3181 = vmatprep.subr.mxu0 %v3096_v42  ;;  %v3407_v42 = vld [vmem:[#allocation22 + $0xd8] sm:$0xff] }
 0xbed   :  { %3182 = vmatpush1.msra.mxu0 %v3095_v43  ;;  %v3391_v43 = vld [vmem:[#allocation22 + $0x58] sm:$0xff] }
 0xbee   :  { %3183 = vmatprep.subr.mxu0 %v3094_v44  ;;  %v3406_v44 = vld [vmem:[#allocation22 + $0xd0] sm:$0xff] }
 0xbef   :  { %3184 = vmatpush1.msra.mxu0 %v3093_v45  ;;  %v3390_v45 = vld [vmem:[#allocation22 + $0x50] sm:$0xff] }
 0xbf0   :  { %3185 = vmatprep.subr.mxu0 %v3092_v46  ;;  %v4358_v46 = vld [vmem:[%s6611_s18 + $0x58] sm:$0xf] }
 0xbf1   :  { %3186 = vmatpush1.msra.mxu0 %v3091_v48  ;;  %v3405_v48 = vld [vmem:[#allocation22 + $0xc8] sm:$0xff] }
 0xbf2   :  { %3187 = vmatprep.subr.mxu0 %v3154_v51  ;;  %v3389_v51 = vld [vmem:[#allocation22 + $0x48] sm:$0xff] }
 0xbf3   :  { %3188 = vmatpush2.msra.mxu0 %v3153_v54  ;;  %v3404_v54 = vld [vmem:[#allocation22 + $0xc0] sm:$0xff] }
 0xbf4   :  { %3189 = vmatprep.subr.mxu0 %v3152_v53  ;;  %v3388_v53 = vld [vmem:[#allocation22 + $0x40] sm:$0xff] }
 0xbf5   :  { %3190 = vmatpush2.msra.mxu0 %v3151_v55  ;;  %v3403_v55 = vld [vmem:[#allocation22 + $0xb8] sm:$0xff] }
 0xbf6   :  { %3191 = vmatprep.subr.mxu0 %v3150_v57  ;;  %v3387_v57 = vld [vmem:[#allocation22 + $0x38] sm:$0xff] }
 0xbf7   :  { %3192 = vmatpush2.msra.mxu0 %v3149_v58  ;;  %v3402_v58 = vld [vmem:[#allocation22 + $0xb0] sm:$0xff] }
 0xbf8   :  { %3193 = vmatprep.subr.mxu0 %v3148_v59  ;;  %v3386_v59 = vld [vmem:[#allocation22 + $0x30] sm:$0xff] }
 0xbf9   :  { %3194 = vmatpush2.msra.mxu0 %v3147_v61  ;;  %v3401_v61 = vld [vmem:[#allocation22 + $0xa8] sm:$0xff] }
 0xbfa   :  { %3195 = vmatprep.subr.mxu0 %v3146_v62  ;;  %v3385_v62 = vld [vmem:[#allocation22 + $0x28] sm:$0xff] }
 0xbfb   :  { %3196 = vmatpush2.msra.mxu0 %v3145_v63  ;;  %v3400_v63 = vld [vmem:[#allocation22 + $0xa0] sm:$0xff] }
 0xbfc   :  { %3197 = vmatprep.subr.mxu0 %v3144_v49  ;;  %v3384_v49 = vld [vmem:[#allocation22 + $0x20] sm:$0xff] }
 0xbfd   :  { %3198 = vmatpush2.msra.mxu0 %v3143_v50  ;;  %v3399_v50 = vld [vmem:[#allocation22 + $0x98] sm:$0xff] }
 0xbfe   :  { %3199 = vmatprep.subr.mxu0 %v3142_v52  ;;  %v3383_v52 = vld [vmem:[#allocation22 + $0x18] sm:$0xff] }
 0xbff   :  { %3200 = vmatpush2.msra.mxu0 %v3141_v14  ;;  %v3398_v14 = vld [vmem:[#allocation22 + $0x90] sm:$0xff] }
 0xc00   :  { %3201 = vmatprep.subr.mxu0 %v3140_v15  ;;  %v3382_v15 = vld [vmem:[#allocation22 + $0x10] sm:$0xff] }
 0xc01   :  { %3202 = vmatpush2.msra.mxu0 %v3139_v16  ;;  %v3397_v16 = vld [vmem:[#allocation22 + $0x88] sm:$0xff] }
 0xc02   :  { %3203 = vmatprep.subr.mxu0 %v3138_v18  ;;  %v3381_v18 = vld [vmem:[#allocation22 + $0x8] sm:$0xff] }
 0xc03   :  { %3204 = vmatpush2.msra.mxu0 %v3137_v19  ;;  %v3396_v19 = vld [vmem:[#allocation22 + $0x80] sm:$0xff] }
 0xc04   :  { %3205 = vmatprep.subr.mxu0 %v3136_v20  ;;  %v3380_v20 = vld [vmem:[#allocation22] sm:$0xff] }
 0xc05   :  { %3206 = vmatpush2.msra.mxu0 %v3135_v21  ;;  %v3536_v21 = vld [vmem:[#allocation22 + $0x1f8] sm:$0xff] }
 0xc06   :  { %3207 = vmatprep.subr.mxu0 %v3134_v22 }
 0xc07   :  { %3208 = vmatpush2.msra.mxu0 %v3133_v23 }
 0xc08   :  { %3209 = vmatprep.subr.mxu0 %v3132_v24 }
 0xc09   :  { %3210 = vmatpush2.msra.mxu0 %v3131_v25 }
 0xc0a   :  { %3211 = vmatprep.subr.mxu0 %v3130_v26 }
 0xc0b   :  { %3212 = vmatpush2.msra.mxu0 %v3129_v27 }
 0xc0c   :  { %3213 = vmatprep.subr.mxu0 %v3128_v28 }
 0xc0d   :  { %3214 = vmatpush2.msra.mxu0 %v3127_v9  ;;  %v3352_v9 = vld [vmem:[#allocation21] sm:$0x3] }
 0xc0e   :  { %3215 = vmatprep.subr.mxu0 %v3126_v29 }
 0xc0f   :  { %3216 = vmatpush2.msra.mxu0 %v3125_v2 }
 0xc10   :  { %3217 = vmatprep.subr.mxu0 %v3124_v3 }
 0xc11   :  { %3218 = vmatpush2.msra.mxu0 %v3123_v56  ;;  %v3357_v56 = vrot.slane %v3352_v9, %v5904_v4 }
 0xc12   :  { %3220 = vmatmul.mubr.f32.vlgmr.msra.gmra.mxu0 %v6273_v1  ;;  %4726 = vmatprep.subr.mxu0 %v5187_v0 }
 0xc13   :  { %3225 = vmatprep.mubr.f32.mxu0 %v6275_v12 }
 0xc16   :  { %3226 = vmatmul.mubr.f32.gmra.mxu0 %v6283_v47 }
 0xc17   :  { %4734 = vmatprep.mubr.msk.f32.mxu0 %vm5188_vm0, %v5187_v0 }
 0xc91   :  { %v6339_v5 = vpop.f32.mrf.mxu0  ;;  %v3067_v22 = vpop.f32.mrf.mxu1 }
 0xc92   :  { %v3068_v2 = vadd.f32 %v3067_v22, %v6339_v5  ;;  %v3514_v22 = vld [vmem:[#allocation22 + $0x148] sm:$0xff] }
 0xc93   :  { %v6341_v7 = vpop.f32.mrf.mxu0  ;;  %v3069_v23 = vpop.f32.mrf.mxu1 }
 0xc95   :  { %v3073_v24 = vpop.f32.mrf.mxu1 }
 0xc96   :  { %v6343_v8 = vpop.f32.mrf.mxu0 }
 0xc97   :  { %v3075_v25 = vpop.f32.mrf.mxu1 }
 0xc98   :  { %v6345_v39 = vpop.f32.mrf.mxu0 }
 0xc99   :  { %v3079_v26 = vpop.f32.mrf.mxu1 }
 0xc9a   :  { %v6347_v10 = vpop.f32.mrf.mxu0 }
 0xc9b   :  { %v3081_v27 = vpop.f32.mrf.mxu1  ;;  %v3080_v5 = vadd.f32 %v3079_v26, %v6347_v10  ;;  %v3512_v26 = vld [vmem:[#allocation22 + $0x138] sm:$0xff] }
 0xc9c   :  { %v6349_v1 = vpop.f32.mrf.mxu0 }
 0xc9d   :  { %v3085_v28 = vpop.f32.mrf.mxu1 }
 0xc9e   :  { %v6351_v60 = vpop.f32.mrf.mxu0 }
 0xc9f   :  { %v3087_v29 = vpop.f32.mrf.mxu1  ;;  %v3086_v10 = vadd.f32 %v3085_v28, %v6351_v60  ;;  %v3511_v28 = vld [vmem:[#allocation22 + $0x130] sm:$0xff] }
 0xca0   :  { %v6353_v12 = vpop.f32.mrf.mxu0 }
 0xcd2   :  { %v3221_v47 = vpop.f32.mrf.mxu0 }
 0xcd4   :  { %v3223_v11 = vpop.f32.mrf.mxu0 }
 0xcd6   :  { %v3227_v30 = vpop.f32.mrf.mxu0 }
 0xcd8   :  { %v3229_v31 = vpop.f32.mrf.mxu0 }
 0xcd9   :  { %4359 = vmatprep.subr.msk.mxu1 %vm2177_vm6, %v3229_v31 }
 0xcda   :  { %4360 = vmatpush1.msk.msra.mxu1 %vm2177_vm6, %v3227_v30  ;;  %v3361_v30 = vrot.slane %v3352_v9, %v5906_v6  ;;  %v3526_v9 = vld [vmem:[#allocation22 + $0x1a8] sm:$0xff] }
 0xcdb   :  { %3285 = vmatprep.subr.mxu1 %v3223_v11 }
 0xcdc   :  { %3286 = vmatpush1.msra.mxu1 %v3221_v47  ;;  %v3070_v47 = vadd.f32 %v3069_v23, %v6341_v7  ;;  %v3529_v23 = vld [vmem:[#allocation22 + $0x1c0] sm:$0xff] }
 0xcdd   :  { %4361 = vmatmul.mubr.msk.f32.vlgmr.msra.gmra.mxu1 %vm2875_vm8, %v4355_v32  ;;  %4554 = vmatprep.subr.mxu1 %v3411_v33  ;;  %v3074_v32 = vadd.f32 %v3073_v24, %v6343_v8  ;;  %v3082_v8 = vadd.f32 %v3081_v27, %v6349_v1  ;;  %v3513_v24 = vld [vmem:[#allocation22 + $0x140] sm:$0xff]  ;;  %v3527_v27 = vld [vmem:[#allocation22 + $0x1b0] sm:$0xff] }
 0xcde   :  { %3325 = vmatprep.mubr.f32.mxu1 %v5187_v0  ;;  %4555 = vmatpush3.msra.mxu1 %v3395_v34 }
 0xcdf   :  { %4556 = vmatprep.subr.mxu1 %v3410_v35 }
 0xce0   :  { %4557 = vmatpush3.msra.mxu1 %v3394_v36  ;;  %v3076_v36 = vadd.f32 %v3075_v25, %v6345_v39  ;;  %v3535_v39 = vld [vmem:[#allocation22 + $0x1f0] sm:$0xff]  ;;  %v3528_v25 = vld [vmem:[#allocation22 + $0x1b8] sm:$0xff] }
 0xce1   :  { %4362 = vmatmul.mubr.msk.f32.gmra.mxu1 %vm2875_vm8, %v4356_v37  ;;  %4558 = vmatprep.subr.mxu1 %v3409_v38 }
 0xce2   :  { %3331 = vmatprep.mubr.f32.mxu1 %v5187_v0  ;;  %4559 = vmatpush3.msra.mxu1 %v3393_v13 }
 0xce3   :  { %4560 = vmatprep.subr.mxu1 %v3408_v40 }
 0xce4   :  { %4561 = vmatpush3.msra.mxu1 %v3392_v17 }
 0xce5   :  { %4363 = vmatmul.mubr.msk.f32.gmra.mxu1 %vm2875_vm8, %v4357_v41  ;;  %4562 = vmatprep.subr.mxu1 %v3407_v42  ;;  %v3520_v41 = vld [vmem:[#allocation22 + $0x178] sm:$0xff] }
 0xce6   :  { %3337 = vmatprep.mubr.f32.mxu1 %v5187_v0  ;;  %4563 = vmatpush3.msra.mxu1 %v3391_v43 }
 0xce7   :  { %4564 = vmatprep.subr.mxu1 %v3406_v44 }
 0xce8   :  { %4565 = vmatpush3.msra.mxu1 %v3390_v45  ;;  %v3519_v45 = vld [vmem:[#allocation22 + $0x170] sm:$0xff] }
 0xce9   :  { %4364 = vmatmul.mubr.msk.f32.gmra.mxu1 %vm2875_vm8, %v4358_v46  ;;  %4566 = vmatprep.subr.mxu1 %v3405_v48 }
 0xcea   :  { %4567 = vmatpush3.msra.mxu1 %v3389_v51  ;;  %v3534_v51 = vld [vmem:[#allocation22 + $0x1e8] sm:$0xff] }
 0xceb   :  { %4568 = vmatprep.subr.mxu1 %v3404_v54 }
 0xcec   :  { %4569 = vmatpush3.msra.mxu1 %v3388_v53 }
 0xced   :  { %4570 = vmatprep.subr.mxu1 %v3403_v55  ;;  %v3518_v55 = vld [vmem:[#allocation22 + $0x168] sm:$0xff] }
 0xcee   :  { %4571 = vmatpush3.msra.mxu1 %v3387_v57  ;;  %v3088_v57 = vadd.f32 %v3087_v29, %v6353_v12  ;;  %v3516_v12 = vld [vmem:[#allocation22 + $0x158] sm:$0xff]  ;;  %v3510_v29 = vld [vmem:[#allocation22 + $0x128] sm:$0xff] }
 0xcef   :  { %4572 = vmatprep.subr.mxu1 %v3402_v58 }
 0xcf0   :  { %4573 = vmatpush3.msra.mxu1 %v3386_v59 }
 0xcf1   :  { %4574 = vmatprep.subr.mxu1 %v3401_v61  ;;  %v3533_v61 = vld [vmem:[#allocation22 + $0x1e0] sm:$0xff] }
 0xcf2   :  { %4575 = vmatpush3.msra.mxu1 %v3385_v62  ;;  %v3517_v62 = vld [vmem:[#allocation22 + $0x160] sm:$0xff] }
 0xcf3   :  { %4576 = vmatprep.subr.mxu1 %v3400_v63 }
 0xcf4   :  { %4577 = vmatpush3.msra.mxu1 %v3384_v49 }
 0xcf5   :  { %4578 = vmatprep.subr.mxu1 %v3399_v50  ;;  %v3532_v50 = vld [vmem:[#allocation22 + $0x1d8] sm:$0xff] }
 0xcf6   :  { %4579 = vmatpush3.msra.mxu1 %v3383_v52 }
 0xcf7   :  { %4580 = vmatprep.subr.mxu1 %v3398_v14 }
 0xcf8   :  { %4581 = vmatpush3.msra.mxu1 %v3382_v15 }
 0xcf9   :  { %4582 = vmatprep.subr.mxu1 %v3397_v16  ;;  %v3531_v16 = vld [vmem:[#allocation22 + $0x1d0] sm:$0xff] }
 0xcfa   :  { %4583 = vmatpush3.msra.mxu1 %v3381_v18  ;;  %v3515_v18 = vld [vmem:[#allocation22 + $0x150] sm:$0xff] }
 0xcfb   :  { %4584 = vmatprep.subr.mxu1 %v3396_v19 }
 0xcfc   :  { %4585 = vmatpush3.msra.mxu1 %v3380_v20  ;;  %v3530_v20 = vld [vmem:[#allocation22 + $0x1c8] sm:$0xff] }
 0xcfd   :  { %4598 = vmatprep.subr.mxu1 %v3536_v21 }
 0xd9d   :  { %v3321_v3 = vpop.f32.mrf.mxu1 }
 0xd9e   :  { %v3344_v11 = vadd.f32 %v3321_v3, %v3068_v2  ;;  %v3525_v2 = vld [vmem:[#allocation22 + $0x1a0] sm:$0xff] }
 0xd9f   :  { %v3323_v31 = vpop.f32.mrf.mxu1  ;;  %v3509_v3 = vld [vmem:[#allocation22 + $0x120] sm:$0xff] }
 0xda0   :  { %v3345_v33 = vadd.f32 %v3323_v31, %v3070_v47  ;;  %v3364_v34 = vadd.f32 %v3357_v56, %v3344_v11  ;;  %v3508_v47 = vld [vmem:[#allocation22 + $0x118] sm:$0xff]  ;;  %v3523_v11 = vld [vmem:[#allocation22 + $0x190] sm:$0xff]  ;;  %v3522_v31 = vld [vmem:[#allocation22 + $0x188] sm:$0xff] }
 0xda1   :  { %v3327_v35 = vpop.f32.mrf.mxu1 }
 0xda2   :  { %v3365_v37 = vadd.f32 %v3361_v30, %v3345_v33  ;;  %v3346_v38 = vadd.f32 %v3327_v35, %v3074_v32  ;;  %v6385_v7 = vmax.f32 %v3364_v34, 0.0  ;;  %v3506_v32 = vld [vmem:[#allocation22 + $0x108] sm:$0xff]  ;;  %v3521_v33 = vld [vmem:[#allocation22 + $0x180] sm:$0xff]  ;;  %v3912_v35 = vld [vmem:[#allocation22 + $0x2f8] sm:$0xff] }
 0xda3   :  { %v3329_v13 = vpop.f32.mrf.mxu1  ;;  %v3505_v34 = vld [vmem:[#allocation22 + $0x100] sm:$0xff] }
 0xda4   :  { %v6383_v40 = vmax.f32 %v3365_v37, 0.0  ;;  %v3347_v4 = vadd.f32 %v3329_v13, %v3076_v36  ;;  %v3366_v17 = vadd.f32 %v3357_v56, %v3346_v38  ;;  %v3896_v36 = vld [vmem:[#allocation22 + $0x278] sm:$0xff]  ;;  %v3911_v37 = vld [vmem:[#allocation22 + $0x2f0] sm:$0xff]  ;;  %v3910_v13 = vld [vmem:[#allocation22 + $0x2e8] sm:$0xff] }
 0xda5   :  { %v3333_v6 = vpop.f32.mrf.mxu1  ;;  %v3895_v38 = vld [vmem:[#allocation22 + $0x270] sm:$0xff] }
 0xda6   :  { %v3367_v42 = vadd.f32 %v3361_v30, %v3347_v4  ;;  %v3348_v43 = vadd.f32 %v3333_v6, %v3080_v5  ;;  %3476 = vmatprep.mubr.f32.mxu1 %v6383_v40  ;;  %v6393_v54 = vmax.f32 %v3366_v17, 0.0  ;;  %v3894_v5 = vld [vmem:[#allocation22 + $0x268] sm:$0xff]  ;;  %v3909_v4 = vld [vmem:[#allocation22 + $0x2e0] sm:$0xff]  ;;  %v3908_v6 = vld [vmem:[#allocation22 + $0x2d8] sm:$0xff] }
 0xda7   :  { %v3335_v44 = vpop.f32.mrf.mxu1  ;;  %3477 = vmatmul.mubr.f32.vlgmr.msra.gmra.mxu1 %v6385_v7  ;;  %v3893_v17 = vld [vmem:[#allocation22 + $0x260] sm:$0xff] }
 0xda8   :  { %v6391_v46 = vmax.f32 %v3367_v42, 0.0  ;;  %v3349_v48 = vadd.f32 %v3335_v44, %v3082_v8  ;;  %4599 = vmatpush3.msra.mxu1 %v3520_v41  ;;  %v3368_v53 = vadd.f32 %v3357_v56, %v3348_v43  ;;  %v3892_v41 = vld [vmem:[#allocation22 + $0x258] sm:$0xff]  ;;  %v3907_v8 = vld [vmem:[#allocation22 + $0x2d0] sm:$0xff]  ;;  %v3906_v43 = vld [vmem:[#allocation22 + $0x2c8] sm:$0xff] }
 0xda9   :  { %4600 = vmatprep.subr.mxu1 %v3535_v39  ;;  %v3339_v1 = vpop.f32.mrf.mxu1  ;;  %v3891_v42 = vld [vmem:[#allocation22 + $0x250] sm:$0xff]  ;;  %v3890_v39 = vld [vmem:[#allocation22 + $0x248] sm:$0xff]  ;;  %v3905_v44 = vld [vmem:[#allocation22 + $0x2c0] sm:$0xff] }
 0xdaa   :  { %v3369_v58 = vadd.f32 %v3361_v30, %v3349_v48  ;;  %v3350_v59 = vadd.f32 %v3339_v1, %v3086_v10  ;;  %4601 = vmatpush3.msra.mxu1 %v3519_v45  ;;  %3481 = vmatprep.mubr.f32.mxu1 %v6391_v46  ;;  %v6400_v52 = vmax.f32 %v3368_v53, 0.0  ;;  %v3889_v45 = vld [vmem:[#allocation22 + $0x240] sm:$0xff]  ;;  %v3904_v10 = vld [vmem:[#allocation22 + $0x2b8] sm:$0xff]  ;;  %v3887_v53 = vld [vmem:[#allocation22 + $0x230] sm:$0xff] }
 0xdab   :  { %4602 = vmatprep.subr.mxu1 %v3534_v51  ;;  %v3341_v60 = vpop.f32.mrf.mxu1  ;;  %3482 = vmatmul.mubr.f32.gmra.mxu1 %v6393_v54  ;;  %v3888_v48 = vld [vmem:[#allocation22 + $0x238] sm:$0xff]  ;;  %v3903_v51 = vld [vmem:[#allocation22 + $0x2b0] sm:$0xff]  ;;  %v3902_v1 = vld [vmem:[#allocation22 + $0x2a8] sm:$0xff] }
 0xdac   :  { %v6398_v63 = vmax.f32 %v3369_v58, 0.0  ;;  %v3351_v49 = vadd.f32 %v3341_v60, %v3088_v57  ;;  %4603 = vmatpush3.msra.mxu1 %v3518_v55  ;;  %v3370_v14 = vadd.f32 %v3357_v56, %v3350_v59  ;;  %v3524_v56 = vld [vmem:[#allocation22 + $0x198] sm:$0xff]  ;;  %v3886_v55 = vld [vmem:[#allocation22 + $0x228] sm:$0xff]  ;;  %v3901_v57 = vld [vmem:[#allocation22 + $0x2a0] sm:$0xff] }
 0xdad   :  { %4604 = vmatprep.subr.mxu1 %v3533_v61  ;;  %v3885_v58 = vld [vmem:[#allocation22 + $0x220] sm:$0xff]  ;;  %v3900_v59 = vld [vmem:[#allocation22 + $0x298] sm:$0xff]  ;;  %v3883_v60 = vld [vmem:[#allocation22 + $0x210] sm:$0xff] }
 0xdae   :  { %v3371_v15 = vadd.f32 %v3361_v30, %v3351_v49  ;;  %4605 = vmatpush3.msra.mxu1 %v3517_v62  ;;  %3486 = vmatprep.mubr.f32.mxu1 %v6398_v63  ;;  %v6406_v21 = vmax.f32 %v3370_v14, 0.0  ;;  %v3507_v30 = vld [vmem:[#allocation22 + $0x110] sm:$0xff]  ;;  %v3884_v61 = vld [vmem:[#allocation22 + $0x218] sm:$0xff]  ;;  %v3898_v62 = vld [vmem:[#allocation22 + $0x288] sm:$0xff] }
 0xdaf   :  { %4606 = vmatprep.subr.mxu1 %v3532_v50  ;;  %3487 = vmatmul.mubr.f32.gmra.mxu1 %v6400_v52  ;;  %v3882_v49 = vld [vmem:[#allocation22 + $0x208] sm:$0xff]  ;;  %v3897_v50 = vld [vmem:[#allocation22 + $0x280] sm:$0xff] }
 0xdb0   :  { %v6404_v19 = vmax.f32 %v3371_v15, 0.0  ;;  %4607 = vmatpush3.msra.mxu1 %v3516_v12  ;;  %v3881_v14 = vld [vmem:[#allocation22 + $0x200] sm:$0xff] }
 0xdb1   :  { %4608 = vmatprep.subr.mxu1 %v3531_v16 }
 0xdb2   :  { %4609 = vmatpush3.msra.mxu1 %v3515_v18  ;;  %3491 = vmatprep.mubr.f32.mxu1 %v6404_v19 }
 0xdb3   :  { %4610 = vmatprep.subr.mxu1 %v3530_v20  ;;  %3492 = vmatmul.mubr.f32.gmra.mxu1 %v6406_v21 }
 0xdb4   :  { %4611 = vmatpush3.msra.mxu1 %v3514_v22  ;;  %3601 = vmatprep.mubr.f32.mxu1 %v6383_v40 }
 0xdb5   :  { %4612 = vmatprep.subr.mxu1 %v3529_v23 }
 0xdb6   :  { %4613 = vmatpush3.msra.mxu1 %v3513_v24 }
 0xdb7   :  { %4614 = vmatprep.subr.mxu1 %v3528_v25 }
 0xdb8   :  { %4615 = vmatpush3.msra.mxu1 %v3512_v26 }
 0xdb9   :  { %4616 = vmatprep.subr.mxu1 %v3527_v27 }
 0xdba   :  { %4617 = vmatpush3.msra.mxu1 %v3511_v28 }
 0xdbb   :  { %4618 = vmatprep.subr.mxu1 %v3526_v9 }
 0xdbc   :  { %4619 = vmatpush3.msra.mxu1 %v3510_v29  ;;  %v4365_v29 = vld [vmem:[%s6614_s21 + $0x38] sm:$0xff] }
 0xdbd   :  { %4620 = vmatprep.subr.mxu1 %v3525_v2 }
 0xdbe   :  { %4621 = vmatpush3.msra.mxu1 %v3509_v3 }
 0xdbf   :  { %4622 = vmatprep.subr.mxu1 %v3524_v56  ;;  %v4366_v56 = vld [vmem:[%s6614_s21 + $0x40] sm:$0xff] }
 0xdc0   :  { %4623 = vmatpush3.msra.mxu1 %v3508_v47 }
 0xdc1   :  { %4624 = vmatprep.subr.mxu1 %v3523_v11 }
 0xdc2   :  { %4625 = vmatpush3.msra.mxu1 %v3507_v30  ;;  %v4367_v30 = vld [vmem:[%s6614_s21 + $0x48] sm:$0xff] }
 0xdc3   :  { %4626 = vmatprep.subr.mxu1 %v3522_v31 }
 0xdc4   :  { %4627 = vmatpush3.msra.mxu1 %v3506_v32  ;;  %v4368_v32 = vld [vmem:[%s6614_s21 + $0x50] sm:$0xff] }
 0xdc5   :  { %4628 = vmatprep.subr.mxu1 %v3521_v33 }
 0xdc6   :  { %4629 = vmatpush3.msra.mxu1 %v3505_v34 }
 0xdc7   :  { %3602 = vmatmul.mubr.f32.vlgmr.msra.gmra.mxu1 %v6385_v7  ;;  %4664 = vmatprep.subr.mxu1 %v3912_v35  ;;  %v4369_v35 = vld [vmem:[%s6614_s21 + $0x58] sm:$0xff] }
 0xdc8   :  { %3606 = vmatprep.mubr.f32.mxu1 %v6391_v46  ;;  %4665 = vmatpush3.msra.mxu1 %v3896_v36 }
 0xdc9   :  { %4666 = vmatprep.subr.mxu1 %v3911_v37 }
 0xdca   :  { %4667 = vmatpush3.msra.mxu1 %v3895_v38  ;;  %v4370_v38 = vld [vmem:[%s6614_s21 + $0x60] sm:$0xff] }
 0xdcb   :  { %3607 = vmatmul.mubr.f32.gmra.mxu1 %v6393_v54  ;;  %4668 = vmatprep.subr.mxu1 %v3910_v13 }
 0xdcc   :  { %3611 = vmatprep.mubr.f32.mxu1 %v6398_v63  ;;  %4669 = vmatpush3.msra.mxu1 %v3894_v5 }
 0xdcd   :  { %4670 = vmatprep.subr.mxu1 %v3909_v4  ;;  %v4371_v4 = vld [vmem:[%s6614_s21 + $0x68] sm:$0xff] }
 0xdce   :  { %4671 = vmatpush3.msra.mxu1 %v3893_v17 }
 0xdcf   :  { %3612 = vmatmul.mubr.f32.gmra.mxu1 %v6400_v52  ;;  %4672 = vmatprep.subr.mxu1 %v3908_v6 }
 0xdd0   :  { %3616 = vmatprep.mubr.f32.mxu1 %v6404_v19  ;;  %4673 = vmatpush3.msra.mxu1 %v3892_v41 }
 0xdd1   :  { %4674 = vmatprep.subr.mxu1 %v3907_v8  ;;  %v3497_v8 = vld [vmem:[%s6614_s21] sm:$0xff] }
 0xdd2   :  { %4675 = vmatpush3.msra.mxu1 %v3891_v42 }
 0xdd3   :  { %3617 = vmatmul.mubr.f32.gmra.mxu1 %v6406_v21  ;;  %4676 = vmatprep.subr.mxu1 %v3906_v43 }
 0xdd4   :  { %4677 = vmatpush3.msra.mxu1 %v3890_v39  ;;  %3977 = vmatprep.mubr.f32.mxu1 %v6383_v40  ;;  %v3899_v40 = vld [vmem:[#allocation22 + $0x290] sm:$0xff]  ;;  %v3498_v39 = vld [vmem:[%s6614_s21 + $0x8] sm:$0xff] }
 0xdd5   :  { %4678 = vmatprep.subr.mxu1 %v3905_v44  ;;  %v4392_v44 = vld [vmem:[%s6614_s21 + $0x90] sm:$0xff] }
 0xdd6   :  { %4679 = vmatpush3.msra.mxu1 %v3889_v45  ;;  %v3499_v45 = vld [vmem:[%s6614_s21 + $0x10] sm:$0xff] }
 0xdd7   :  { %4680 = vmatprep.subr.mxu1 %v3904_v10  ;;  %v4393_v10 = vld [vmem:[%s6614_s21 + $0x98] sm:$0xff] }
 0xdd8   :  { %4681 = vmatpush3.msra.mxu1 %v3888_v48  ;;  %v3500_v48 = vld [vmem:[%s6614_s21 + $0x18] sm:$0xff] }
 0xdd9   :  { %4682 = vmatprep.subr.mxu1 %v3903_v51  ;;  %v4394_v51 = vld [vmem:[%s6614_s21 + $0xa0] sm:$0xff] }
 0xdda   :  { %4683 = vmatpush3.msra.mxu1 %v3887_v53  ;;  %v3501_v53 = vld [vmem:[%s6614_s21 + $0x20] sm:$0xff] }
 0xddb   :  { %4684 = vmatprep.subr.mxu1 %v3902_v1  ;;  %v3502_v1 = vld [vmem:[%s6614_s21 + $0x28] sm:$0xff] }
 0xddc   :  { %4685 = vmatpush3.msra.mxu1 %v3886_v55  ;;  %v3503_v55 = vld [vmem:[%s6614_s21 + $0x30] sm:$0xff] }
 0xddd   :  { %4686 = vmatprep.subr.mxu1 %v3901_v57  ;;  %v4388_v57 = vld [vmem:[%s6614_s21 + $0x70] sm:$0xff] }
 0xdde   :  { %4687 = vmatpush3.msra.mxu1 %v3885_v58  ;;  %v4389_v58 = vld [vmem:[%s6614_s21 + $0x78] sm:$0xff] }
 0xddf   :  { %4688 = vmatprep.subr.mxu1 %v3900_v59  ;;  %v4390_v59 = vld [vmem:[%s6614_s21 + $0x80] sm:$0xff] }
 0xde0   :  { %4689 = vmatpush3.msra.mxu1 %v3884_v61  ;;  %v4391_v61 = vld [vmem:[%s6614_s21 + $0x88] sm:$0xff] }
 0xde1   :  { %4690 = vmatprep.subr.mxu1 %v3899_v40 }
 0xde2   :  { %4691 = vmatpush3.msra.mxu1 %v3883_v60 }
 0xde3   :  { %4692 = vmatprep.subr.mxu1 %v3898_v62 }
 0xde4   :  { %4693 = vmatpush3.msra.mxu1 %v3882_v49 }
 0xde5   :  { %4694 = vmatprep.subr.mxu1 %v3897_v50 }
 0xde6   :  { %4695 = vmatpush3.msra.mxu1 %v3881_v14 }
 0xde7   :  { %3978 = vmatmul.mubr.f32.vlgmr.msra.gmra.mxu1 %v6385_v7  ;;  %4813 = vmatprep.subr.mxu1 %v5187_v0 }
 0xde8   :  { %3982 = vmatprep.mubr.f32.mxu1 %v6391_v46 }
 0xdeb   :  { %3983 = vmatmul.mubr.f32.gmra.mxu1 %v6393_v54 }
 0xdec   :  { %3987 = vmatprep.mubr.f32.mxu1 %v6398_v63 }
 0xdef   :  { %3988 = vmatmul.mubr.f32.gmra.mxu1 %v6400_v52 }
 0xdf0   :  { %3992 = vmatprep.mubr.f32.mxu1 %v6404_v19 }
 0xdf3   :  { %3993 = vmatmul.mubr.f32.gmra.mxu1 %v6406_v21 }
 0xdf4   :  { %4804 = vmatprep.mubr.msk.f32.mxu1 %vm5188_vm0, %v5187_v0 }
 0xe67   :  { %v4586_v12 = vpop.f32.mrf.mxu1 }
 0xe69   :  { %v4587_v15 = vpop.f32.mrf.mxu1 }
 0xe6a   :  { %v4588_v11 = vadd.f32 %v4587_v15, %v4586_v12 }
 0xe6b   :  { %v4589_v7 = vpop.f32.mrf.mxu1 }
 0xe6d   :  { %v4590_v16 = vpop.f32.mrf.mxu1 }
 0xe6e   :  { %v4591_v47 = vadd.f32 %v4590_v16, %v4589_v7 }
 0xe6f   :  { %v4592_v18 = vpop.f32.mrf.mxu1 }
 0xe71   :  { %v4593_v20 = vpop.f32.mrf.mxu1 }
 0xe72   :  { %v4594_v3 = vadd.f32 %v4593_v20, %v4592_v18 }
 0xe73   :  { %v4595_v46 = vpop.f32.mrf.mxu1 }
 0xe75   :  { %v4596_v22 = vpop.f32.mrf.mxu1 }
 0xe76   :  { %v4597_v2 = vadd.f32 %v4596_v22, %v4595_v46 }
 0xe87   :  { %v4630_v54 = vpop.f32.mrf.mxu1 }
 0xe89   :  { %v4631_v23 = vpop.f32.mrf.mxu1 }
 0xe8a   :  { %v4632_v9 = vadd.f32 %v4631_v23, %v4630_v54 }
 0xe8b   :  { %v4633_v63 = vpop.f32.mrf.mxu1 }
 0xe8d   :  { %v4634_v24 = vpop.f32.mrf.mxu1 }
 0xe8e   :  { %v4635_v28 = vadd.f32 %v4634_v24, %v4633_v63 }
 0xe8f   :  { %v4636_v52 = vpop.f32.mrf.mxu1 }
 0xe91   :  { %v4637_v25 = vpop.f32.mrf.mxu1 }
 0xe92   :  { %v4638_v27 = vadd.f32 %v4637_v25, %v4636_v52 }
 0xe93   :  { %v4639_v19 = vpop.f32.mrf.mxu1 }
 0xe95   :  { %v4640_v26 = vpop.f32.mrf.mxu1 }
 0xe96   :  { %v4641_v21 = vadd.f32 %v4640_v26, %v4639_v19 }
 0xe98   :  { %4727 = vmatpush3.msk.msra.mxu0 %vm3652_vm9, %v4641_v21 }
 0xe99   :  { %4728 = vmatprep.subr.mxu0 %v5187_v0 }
 0xe9a   :  { %4729 = vmatpush3.msra.mxu0 %v4638_v27 }
 0xe9b   :  { %4730 = vmatprep.subr.mxu0 %v5187_v0 }
 0xe9c   :  { %4731 = vmatpush3.msra.mxu0 %v4635_v28 }
 0xe9d   :  { %4732 = vmatprep.subr.mxu0 %v5187_v0 }
 0xe9e   :  { %4733 = vmatpush3.msra.mxu0 %v4632_v9 }
 0xe9f   :  { %4735 = vmatmul.mubr.msk.f32.vlgmr.msra.gmra.mxu0 %vm3630_vm10, %v4365_v29  ;;  %4755 = vmatprep.subr.mxu0 %v5187_v0 }
 0xea0   :  { %4756 = vmatpush3.msk.msra.mxu0 %vm3652_vm9, %v4597_v2  ;;  %4737 = vmatprep.mubr.msk.f32.mxu0 %vm5188_vm0, %v5187_v0 }
 0xea1   :  { %4757 = vmatprep.subr.mxu0 %v5187_v0 }
 0xea2   :  { %4758 = vmatpush3.msra.mxu0 %v4594_v3 }
 0xea3   :  { %4738 = vmatmul.mubr.msk.f32.gmra.mxu0 %vm3630_vm10, %v4366_v56  ;;  %4759 = vmatprep.subr.mxu0 %v5187_v0 }
 0xea4   :  { %4760 = vmatpush3.msra.mxu0 %v4591_v47  ;;  %4740 = vmatprep.mubr.msk.f32.mxu0 %vm5188_vm0, %v5187_v0  ;;  %v4403_v47 = vld [vmem:[%s6615_s22] ss:$0 sm:$0xff] }
 0xea5   :  { %4761 = vmatprep.subr.mxu0 %v5187_v0 }
 0xea6   :  { %4762 = vmatpush3.msra.mxu0 %v4588_v11 }
 0xea7   :  { %4741 = vmatmul.mubr.msk.f32.gmra.mxu0 %vm3630_vm10, %v4367_v30  ;;  %v4696_v31 = vpop.f32.mrf.mxu1  ;;  %4784 = vmatprep.subr.mxu0 %v5187_v0 }
 0xea8   :  { %4743 = vmatprep.mubr.msk.f32.mxu0 %vm5188_vm0, %v5187_v0 }
 0xea9   :  { %v4697_v33 = vpop.f32.mrf.mxu1 }
 0xeaa   :  { %v4698_v43 = vadd.f32 %v4697_v33, %v4696_v31 }
 0xeab   :  { %4744 = vmatmul.mubr.msk.f32.gmra.mxu0 %vm3630_vm10, %v4368_v32  ;;  %v4699_v34 = vpop.f32.mrf.mxu1 }
 0xeac   :  { %4746 = vmatprep.mubr.msk.f32.mxu0 %vm5188_vm0, %v5187_v0 }
 0xead   :  { %v4700_v36 = vpop.f32.mrf.mxu1 }
 0xeae   :  { %v4701_v42 = vadd.f32 %v4700_v36, %v4699_v34 }
 0xeaf   :  { %4747 = vmatmul.mubr.msk.f32.gmra.mxu0 %vm3630_vm10, %v4369_v35  ;;  %v4702_v37 = vpop.f32.mrf.mxu1 }
 0xeb0   :  { %4749 = vmatprep.mubr.msk.f32.mxu0 %vm5188_vm0, %v5187_v0 }
 0xeb1   :  { %v4703_v13 = vpop.f32.mrf.mxu1 }
 0xeb2   :  { %v4704_v41 = vadd.f32 %v4703_v13, %v4702_v37 }
 0xeb3   :  { %4750 = vmatmul.mubr.msk.f32.gmra.mxu0 %vm3630_vm10, %v4370_v38  ;;  %v4705_v5 = vpop.f32.mrf.mxu1 }
 0xeb4   :  { %4752 = vmatprep.mubr.msk.f32.mxu0 %vm5188_vm0, %v5187_v0 }
 0xeb5   :  { %v4706_v17 = vpop.f32.mrf.mxu1 }
 0xeb6   :  { %v4707_v6 = vadd.f32 %v4706_v17, %v4705_v5 }
 0xeb7   :  { %4753 = vmatmul.mubr.msk.f32.gmra.mxu0 %vm3630_vm10, %v4371_v4 }
 0xeb8   :  { %4817 = vmatpush3.msk.msra.mxu1 %vm3652_vm9, %v4707_v6  ;;  %4763 = vmatprep.mubr.msk.f32.mxu0 %vm5188_vm0, %v5187_v0 }
 0xeb9   :  { %4814 = vmatprep.subr.mxu1 %v5187_v0 }
 0xeba   :  { %4818 = vmatpush3.msra.mxu1 %v4704_v41 }
 0xebb   :  { %4764 = vmatmul.mubr.msk.f32.vlgmr.msra.gmra.mxu0 %vm3630_vm10, %v3497_v8  ;;  %4815 = vmatprep.subr.mxu1 %v5187_v0 }
 0xebc   :  { %4785 = vmatpush3.msk.msra.mxu0 %vm3652_vm9, %v4707_v6  ;;  %4819 = vmatpush3.msra.mxu1 %v4701_v42 }
 0xebd   :  { %4786 = vmatprep.subr.mxu0 %v5187_v0  ;;  %4816 = vmatprep.subr.mxu1 %v5187_v0 }
 0xebe   :  { %4787 = vmatpush3.msra.mxu0 %v4704_v41  ;;  %4766 = vmatprep.mubr.msk.f32.mxu0 %vm5188_vm0, %v5187_v0 }
 0xebf   :  { %4788 = vmatprep.subr.mxu0 %v5187_v0  ;;  %4820 = vmatpush3.msra.mxu1 %v4698_v43 }
 0xec0   :  { %4767 = vmatmul.mubr.msk.f32.gmra.mxu0 %vm3630_vm10, %v3498_v39  ;;  %4805 = vmatmul.mubr.msk.f32.vlgmr.msra.gmra.mxu1 %vm3630_vm10, %v4392_v44 }
 0xec1   :  { %4789 = vmatpush3.msra.mxu0 %v4701_v42  ;;  %4769 = vmatprep.mubr.msk.f32.mxu0 %vm5188_vm0, %v5187_v0 }
 0xec2   :  { %4790 = vmatprep.subr.mxu0 %v5187_v0  ;;  %4807 = vmatprep.mubr.msk.f32.mxu1 %vm5188_vm0, %v5187_v0 }
 0xec3   :  { %4791 = vmatpush3.msra.mxu0 %v4698_v43 }
 0xec4   :  { %4770 = vmatmul.mubr.msk.f32.gmra.mxu0 %vm3630_vm10, %v3499_v45  ;;  %4808 = vmatmul.mubr.msk.f32.gmra.mxu1 %vm3630_vm10, %v4393_v10 }
 0xec5   :  { %4772 = vmatprep.mubr.msk.f32.mxu0 %vm5188_vm0, %v5187_v0  ;;  %4810 = vmatprep.mubr.msk.f32.mxu1 %vm5188_vm0, %v5187_v0 }
 0xec8   :  { %4773 = vmatmul.mubr.msk.f32.gmra.mxu0 %vm3630_vm10, %v3500_v48  ;;  %4811 = vmatmul.mubr.msk.f32.gmra.mxu1 %vm3630_vm10, %v4394_v51 }
 0xec9   :  { %4775 = vmatprep.mubr.msk.f32.mxu0 %vm5188_vm0, %v5187_v0 }
 0xecc   :  { %4776 = vmatmul.mubr.msk.f32.gmra.mxu0 %vm3630_vm10, %v3501_v53 }
 0xecd   :  { %4778 = vmatprep.mubr.msk.f32.mxu0 %vm5188_vm0, %v5187_v0 }
 0xed0   :  { %4779 = vmatmul.mubr.msk.f32.gmra.mxu0 %vm3630_vm10, %v3502_v1 }
 0xed1   :  { %4781 = vmatprep.mubr.msk.f32.mxu0 %vm5188_vm0, %v5187_v0 }
 0xed4   :  { %4782 = vmatmul.mubr.msk.f32.gmra.mxu0 %vm3630_vm10, %v3503_v55 }
 0xed5   :  { %4792 = vmatprep.mubr.msk.f32.mxu0 %vm5188_vm0, %v5187_v0 }
 0xed8   :  { %4793 = vmatmul.mubr.msk.f32.vlgmr.msra.gmra.mxu0 %vm3630_vm10, %v4388_v57 }
 0xed9   :  { %4795 = vmatprep.mubr.msk.f32.mxu0 %vm5188_vm0, %v5187_v0 }
 0xedc   :  { %4796 = vmatmul.mubr.msk.f32.gmra.mxu0 %vm3630_vm10, %v4389_v58 }
 0xedd   :  { %4798 = vmatprep.mubr.msk.f32.mxu0 %vm5188_vm0, %v5187_v0 }
 0xee0   :  { %4799 = vmatmul.mubr.msk.f32.gmra.mxu0 %vm3630_vm10, %v4390_v59 }
 0xee1   :  { %4801 = vmatprep.mubr.msk.f32.mxu0 %vm5188_vm0, %v5187_v0 }
 0xee4   :  { %4802 = vmatmul.mubr.msk.f32.gmra.mxu0 %vm3630_vm10, %v4391_v61 }
 0xf5f   :  { %v3722_v40 = vpop.f32.mrf.mxu0 }
 0xf61   :  { %v4736_v60 = vpop.f32.mrf.mxu0 }
 0xf63   :  { %v3727_v62 = vpop.f32.mrf.mxu0 }
 0xf65   :  { %v4739_v49 = vpop.f32.mrf.mxu0 }
 0xf67   :  { %v3732_v50 = vpop.f32.mrf.mxu0 }
 0xf69   :  { %v4742_v14 = vpop.f32.mrf.mxu0 }
 0xf6b   :  { %v3737_v12 = vpop.f32.mrf.mxu0 }
 0xf6d   :  { %v4745_v15 = vpop.f32.mrf.mxu0 }
 0xf6f   :  { %v3742_v7 = vpop.f32.mrf.mxu0 }
 0xf71   :  { %v4748_v16 = vpop.f32.mrf.mxu0 }
 0xf73   :  { %v3747_v18 = vpop.f32.mrf.mxu0 }
 0xf75   :  { %v4751_v20 = vpop.f32.mrf.mxu0 }
 0xf77   :  { %v3752_v46 = vpop.f32.mrf.mxu0 }
 0xf79   :  { %v4754_v0 = vpop.f32.mrf.mxu0 }
 0xf7b   :  { %v3846_v22 = vpop.f32.mrf.mxu0 }
 0xf7c   :  { %v3847_v5 = vadd.f32 %v3846_v22, %v3722_v40 }
 0xf7d   :  { %v4765_v54 = vpop.f32.mrf.mxu0 }
 0xf80   :  { %v3851_v23 = vpop.f32.mrf.mxu0  ;;  %v4116_v63 = vpop.f32.mrf.mxu1 }
 0xf81   :  { %v3852_v43 = vadd.f32 %v3851_v23, %v3727_v62 }
 0xf82   :  { %v4768_v24 = vpop.f32.mrf.mxu0  ;;  %v4806_v52 = vpop.f32.mrf.mxu1 }
 0xf84   :  { %v3856_v25 = vpop.f32.mrf.mxu0  ;;  %v4121_v19 = vpop.f32.mrf.mxu1 }
 0xf85   :  { %v3857_v53 = vadd.f32 %v3856_v25, %v3732_v50 }
 0xf86   :  { %v4771_v26 = vpop.f32.mrf.mxu0  ;;  %v4809_v21 = vpop.f32.mrf.mxu1 }
 0xf88   :  { %v3861_v27 = vpop.f32.mrf.mxu0  ;;  %v4126_v28 = vpop.f32.mrf.mxu1 }
 0xf89   :  { %v3862_v40 = vadd.f32 %v3861_v27, %v3737_v12 }
 0xf8a   :  { %v4774_v9 = vpop.f32.mrf.mxu0  ;;  %v4812_v29 = vpop.f32.mrf.mxu1 }
 0xf8c   :  { %v3866_v2 = vpop.f32.mrf.mxu0 }
 0xf8d   :  { %v3867_v3 = vadd.f32 %v3866_v2, %v3742_v7 }
 0xf8e   :  { %v4777_v56 = vpop.f32.mrf.mxu0 }
 0xf8f   :  { %v4134_v11 = vadd.f32 %v4116_v63, %v3867_v3 }
 0xf90   :  { %v3871_v30 = vpop.f32.mrf.mxu0 }
 0xf91   :  { %v4148_v31 = vadd.f32 %v4403_v47, %v4134_v11  ;;  %v3872_v32 = vadd.f32 %v3871_v30, %v3747_v18 }
 0xf92   :  { %v4780_v33 = vpop.f32.mrf.mxu0 }
 0xf93   :  { %v4408_v34 = vmul.f32 -1.442695, %v4148_v31  ;;  %v4135_v35 = vadd.f32 %v4121_v19, %v3872_v32 }
 0xf94   :  { %v3876_v36 = vpop.f32.mrf.mxu0 }
 0xf95   :  { %4845 = vpow2.f32 %v4408_v34  ;;  %v4149_v37 = vadd.f32 %v4403_v47, %v4135_v35  ;;  %v3877_v38 = vadd.f32 %v3876_v36, %v3752_v46 }
 0xf96   :  { %v4783_v13 = vpop.f32.mrf.mxu0 }
 0xf97   :  { %v4409_v4 = vmul.f32 -1.442695, %v4149_v37  ;;  %v4136_v17 = vadd.f32 %v4126_v28, %v3877_v38 }
 0xf98   :  { %v4096_v6 = vpop.f32.mrf.mxu0 }
 0xf99   :  { %4847 = vpow2.f32 %v4409_v4  ;;  %v4150_v41 = vadd.f32 %v4403_v47, %v4136_v17  ;;  %v4130_v8 = vadd.f32 %v4096_v6, %v3847_v5 }
 0xf9a   :  { %v4794_v42 = vpop.f32.mrf.mxu0 }
 0xf9b   :  { %v4410_v39 = vmul.f32 -1.442695, %v4150_v41  ;;  %v4144_v44 = vadd.f32 %v4403_v47, %v4130_v8 }
 0xf9c   :  { %v4101_v45 = vpop.f32.mrf.mxu0 }
 0xf9d   :  { %4849 = vpow2.f32 %v4410_v39  ;;  %v4404_v10 = vmul.f32 -1.442695, %v4144_v44  ;;  %v4131_v48 = vadd.f32 %v4101_v45, %v3852_v43 }
 0xf9e   :  { %v4797_v51 = vpop.f32.mrf.mxu0 }
 0xf9f   :  { %4851 = vpow2.f32 %v4404_v10  ;;  %v4145_v1 = vadd.f32 %v4403_v47, %v4131_v48 }
 0xfa0   :  { %v4106_v55 = vpop.f32.mrf.mxu0 }
 0xfa1   :  { %v4405_v57 = vmul.f32 -1.442695, %v4145_v1  ;;  %v4132_v58 = vadd.f32 %v4106_v55, %v3857_v53 }
 0xfa2   :  { %v4846_v59 = vpop.eup %4845  ;;  %v4800_v61 = vpop.f32.mrf.mxu0 }
 0xfa3   :  { %v4176_v60 = vadd.f32 1.0, %v4846_v59  ;;  %4853 = vpow2.f32 %v4405_v57  ;;  %v4146_v49 = vadd.f32 %v4403_v47, %v4132_v58 }
 0xfa4   :  { %v4111_v62 = vpop.f32.mrf.mxu0 }
 0xfa5   :  { %4855 = vrcp.f32 %v4176_v60  ;;  %v4406_v14 = vmul.f32 -1.442695, %v4146_v49  ;;  %v4133_v15 = vadd.f32 %v4111_v62, %v3862_v40 }
 0xfa6   :  { %v4848_v7 = vpop.eup %4847  ;;  %v4803_v16 = vpop.f32.mrf.mxu0 }
 0xfa7   :  { %v4177_v18 = vadd.f32 1.0, %v4848_v7  ;;  %4857 = vpow2.f32 %v4406_v14  ;;  %v4147_v50 = vadd.f32 %v4403_v47, %v4133_v15 }
 0xfa9   :  { %4859 = vrcp.f32 %v4177_v18  ;;  %v4407_v20 = vmul.f32 -1.442695, %v4147_v50 }
 0xfaa   :  { %v4850_v46 = vpop.eup %4849 }
 0xfab   :  { %v4178_v0 = vadd.f32 1.0, %v4850_v46  ;;  %4861 = vpow2.f32 %v4407_v20 }
 0xfac   :  { %v4852_v22 = vpop.eup %4851 }
 0xfad   :  { %4863 = vrcp.f32 %v4178_v0  ;;  %v4172_v12 = vadd.f32 1.0, %v4852_v22 }
 0xfaf   :  { %4865 = vrcp.f32 %v4172_v12 }
 0xfb0   :  { %v4854_v54 = vpop.eup %4853 }
 0xfb1   :  { %v4173_v23 = vadd.f32 1.0, %v4854_v54 }
 0xfb2   :  { %v4856_v63 = vpop.eup %4855 }
 0xfb3   :  { %4197 = vst [vmem:[%s6616_s23 + $0x20] sm:$0xff] %v4856_v63  ;;  %4867 = vrcp.f32 %v4173_v23 }
 0xfb4   :  { %v4858_v24 = vpop.eup %4857 }
 0xfb5   :  { %v4174_v52 = vadd.f32 1.0, %v4858_v24 }
 0xfb6   :  { %v4860_v25 = vpop.eup %4859 }
 0xfb7   :  { %4198 = vst [vmem:[%s6616_s23 + $0x28] sm:$0xff] %v4860_v25  ;;  %4869 = vrcp.f32 %v4174_v52 }
 0xfb8   :  { %v4862_v19 = vpop.eup %4861 }
 0xfb9   :  { %v4175_v26 = vadd.f32 1.0, %v4862_v19 }
 0xfba   :  { %v4864_v21 = vpop.eup %4863 }
 0xfbb   :  { %4199 = vst [vmem:[%s6616_s23 + $0x30] sm:$0xff] %v4864_v21  ;;  %4871 = vrcp.f32 %v4175_v26 }
 0xfbc   :  { %v4866_v27 = vpop.eup %4865 }
 0xfbd   :  { %4193 = vst [vmem:[%s6616_s23] sm:$0xff] %v4866_v27 }
 0xfc0   :  { %v4868_v28 = vpop.eup %4867 }
 0xfc1   :  { %4194 = vst [vmem:[%s6616_s23 + $0x8] sm:$0xff] %v4868_v28 }
 0xfc4   :  { %v4870_v9 = vpop.eup %4869 }
 0xfc5   :  { %4195 = vst [vmem:[%s6616_s23 + $0x10] sm:$0xff] %v4870_v9 }
 0xfc8   :  { %v4872_v29 = vpop.eup %4871 }
 0xfc9   :  { %4196 = vst [vmem:[%s6616_s23 + $0x18] sm:$0xff] %v4872_v29 }
 0xfca   :  { %4204 = vsyncpa [#allocation3], 1 }
 0xfcb   :  { %4205 = vsyncpa [#allocation5], 1 }
 0xfcc   :  { %4206 = vsyncpa [#allocation8], 1 }
 0xfcd   :  { %4207 = vsyncpa [#allocation11], 1 }
 0xfce   :  { %4208 = vsyncpa [#allocation14], 1 }
 0xfcf   :  { %4209 = vsyncpa [#allocation17], 1 }
 0xfd0   :  { %4210 = vsyncpa [#allocation20], 1 }
 0xfd1   :  { %4211 = vsyncpa [#allocation23], 1 }

</bundles_post_ra>
